<compile_context>
chip_gen: v5e
topology: v5e:2x2
jax: 0.10.0
libtpu: 0.0.40
codegen_flags: <defaults>
</compile_context>

<pallas_src>
import jax
import jax.numpy as jnp
from jax.experimental import pallas as pl
from jax.experimental.pallas import tpu as pltpu

B, C_IN, H, W = 2, 4, 16, 16   # batch, in-channels, spatial
C_MID = 8                      # base conv output channels
N_CLASSES = 10                 # head output features
K = 3                          # conv kernel size (padding=1, stride=1, "same")
KKC = K * K * C_IN             # 36: flattened conv contraction size
ROWS = B * H * W               # 512: batch folded into matmul rows
LANES = 128                    # lane-dense head / output width

# packed-parameter slab layout (f32, shape (PRM_ROWS, LANES)):
#   rows [0:36)  cols [0:8)    conv weight, (kh,kw,cin) flattened
#   row  36      cols [0:8)    conv bias
#   rows [40:48) cols [0:128)  head weight, zero-padded from 10 to 128 cols
#   row  48      cols [0:128)  head bias,   zero-padded
BC_ROW = KKC        # 36
WH_ROW = 40
BH_ROW = 48
PRM_ROWS = 56


# ---------------------------------------------------------------------------
# fused kernel: in-VMEM conv (9 tap matmuls) + bias + ReLU + pool + head linear
# ---------------------------------------------------------------------------
def fused_kernel(xp_ref, prm_ref, out_ref):
    # xp_ref : (B, H+2, W+2, C_IN)  zero-padded NHWC input (VMEM resident)
    # prm_ref: (PRM_ROWS, LANES)    packed parameters (VMEM resident)
    # out_ref: (B, LANES)           lane-dense logits (cols >= N_CLASSES are 0)
    inv_hw = 1.0 / (H * W)

    # conv(4->8, 3x3, SAME): 9 accumulated micro-matmuls, batch folded into rows
    acc = jnp.zeros((ROWS, C_MID), dtype=jnp.float32)
    for kh in range(K):
        for kw in range(K):
            t = kh * K + kw
            patch = xp_ref[:, kh:kh + H, kw:kw + W, :].reshape(ROWS, C_IN)
            w_t = prm_ref[t * C_IN:(t + 1) * C_IN, 0:C_MID]          # (4, 8)
            acc = acc + jnp.dot(patch, w_t,
                                preferred_element_type=jnp.float32)

    conv = jnp.maximum(acc + prm_ref[BC_ROW:BC_ROW + 1, 0:C_MID], 0.0)

    # global average pool: per-batch sublane reduction (no extra operand)
    feats = jnp.sum(conv.reshape(B, H * W, C_MID), axis=1) * inv_hw   # (B, 8)

    # head Linear(8->10), lane-padded to 128 so the store is a full block write
    out_ref[...] = (jnp.dot(feats, prm_ref[WH_ROW:WH_ROW + C_MID, :],
                            preferred_element_type=jnp.float32)
                    + prm_ref[BH_ROW:BH_ROW + 1, :])


# ---------------------------------------------------------------------------
# parameter packing (done once, outside jit) and jitted wrapper
# ---------------------------------------------------------------------------
def pack_params(params):
    """Pack the four tiny parameter tensors into one padded f32 slab."""
    slab = jnp.zeros((PRM_ROWS, LANES), jnp.float32)
    slab = slab.at[0:KKC, 0:C_MID].set(params["w_conv"].reshape(KKC, C_MID))
    slab = slab.at[BC_ROW:BC_ROW + 1, 0:C_MID].set(params["b_conv"])
    slab = slab.at[WH_ROW:WH_ROW + C_MID, 0:N_CLASSES].set(params["w_head"])
    slab = slab.at[BH_ROW:BH_ROW + 1, 0:N_CLASSES].set(params["b_head"])
    return slab


@jax.jit
def base_head_merge(x_nchw, packed):
    # forward(x): out = base(x); out = head(out)  -- one gridless pallas_call
    x = jnp.transpose(x_nchw, (0, 2, 3, 1)).astype(jnp.float32)   # NHWC
    xp = jnp.pad(x, ((0, 0), (1, 1), (1, 1), (0, 0)))             # padding=1
    out = pl.pallas_call(
        fused_kernel,
        out_shape=jax.ShapeDtypeStruct((B, LANES), jnp.float32),
        in_specs=[pl.BlockSpec(memory_space=pltpu.MemorySpace.VMEM),
                  pl.BlockSpec(memory_space=pltpu.MemorySpace.VMEM)],
        out_specs=pl.BlockSpec(memory_space=pltpu.MemorySpace.VMEM),
    )(xp, packed)
    return out[:, :N_CLASSES]


# ---------------------------------------------------------------------------
# pure-JAX reference (sanity check only)
# ---------------------------------------------------------------------------
def reference(x_nchw, params):
    x = jnp.transpose(x_nchw, (0, 2, 3, 1)).astype(jnp.float32)
    y = jax.lax.conv_general_dilated(
        x, params["w_conv"], window_strides=(1, 1), padding="SAME",
        dimension_numbers=("NHWC", "HWIO", "NHWC"))
    y = jnp.maximum(y + params["b_conv"][0], 0.0)
    feats = jnp.mean(y, axis=(1, 2))
    return feats @ params["w_head"] + params["b_head"][0]


if __name__ == "__main__":
    key = jax.random.PRNGKey(0)
    kx, kwc, kbc, kwh, kbh = jax.random.split(key, 5)

    x = jax.random.normal(kx, (B, C_IN, H, W), dtype=jnp.float32)   # NCHW
    params = {
        "w_conv": 0.1 * jax.random.normal(kwc, (K, K, C_IN, C_MID), jnp.float32),
        "b_conv": 0.1 * jax.random.normal(kbc, (1, C_MID), jnp.float32),
        "w_head": 0.1 * jax.random.normal(kwh, (C_MID, N_CLASSES), jnp.float32),
        "b_head": 0.1 * jax.random.normal(kbh, (1, N_CLASSES), jnp.float32),
    }

    packed = pack_params(params)          # once, outside jit

    out = base_head_merge(x, packed)
    out = jax.block_until_ready(out)

    ref = reference(x, params)
    assert out.shape == (B, N_CLASSES)
    assert jnp.allclose(out, ref, atol=1e-4, rtol=1e-4), "mismatch vs reference"

    print("KERNEL_OK")
</pallas_src>

<mosaic_0001>
module attributes {stable_mosaic.version = 11 : i64} {
  func.func @fused_kernel(%arg0: memref<2x18x18x4xf32, #tpu.memory_space<vmem>>, %arg1: memref<56x128xf32, #tpu.memory_space<vmem>>, %arg2: memref<2x128xf32, #tpu.memory_space<vmem>>) attributes {dimension_semantics = [], scalar_prefetch = 0 : i64, scratch_operands = 0 : i64, tpu.core_type = #tpu.core_type<tc>} {
    %cst = arith.constant 0.000000e+00 : f32
    %0 = vector.broadcast %cst : f32 to vector<512x8xf32>
    %c0 = arith.constant 0 : index
    %c0_0 = arith.constant 0 : index
    %c0_1 = arith.constant 0 : index
    %c0_2 = arith.constant 0 : index
    %1 = vector.load %arg0[%c0, %c0_0, %c0_1, %c0_2] : memref<2x18x18x4xf32, #tpu.memory_space<vmem>>, vector<2x16x16x4xf32>
    %2 = vector.shape_cast %1 : vector<2x16x16x4xf32> to vector<512x4xf32>
    %c0_3 = arith.constant 0 : index
    %c0_4 = arith.constant 0 : index
    %3 = vector.load %arg1[%c0_3, %c0_4] : memref<56x128xf32, #tpu.memory_space<vmem>>, vector<4x8xf32>
    %cst_5 = arith.constant dense<0.000000e+00> : vector<512x8xf32>
    %4 = tpu.matmul %2, %3, %cst_5 {dimension_numbers = #tpu.dot_dimension_numbers<[1], [0], [0], [1], [0, 0, 1, 1], [], []>} : vector<512x4xf32>, vector<4x8xf32>, vector<512x8xf32> -> vector<512x8xf32>
    %5 = arith.addf %0, %4 : vector<512x8xf32>
    %c0_6 = arith.constant 0 : index
    %c0_7 = arith.constant 0 : index
    %c1 = arith.constant 1 : index
    %c0_8 = arith.constant 0 : index
    %6 = vector.load %arg0[%c0_6, %c0_7, %c1, %c0_8] : memref<2x18x18x4xf32, #tpu.memory_space<vmem>>, vector<2x16x16x4xf32>
    %7 = vector.shape_cast %6 : vector<2x16x16x4xf32> to vector<512x4xf32>
    %c4 = arith.constant 4 : index
    %c0_9 = arith.constant 0 : index
    %8 = vector.load %arg1[%c4, %c0_9] : memref<56x128xf32, #tpu.memory_space<vmem>>, vector<4x8xf32>
    %cst_10 = arith.constant dense<0.000000e+00> : vector<512x8xf32>
    %9 = tpu.matmul %7, %8, %cst_10 {dimension_numbers = #tpu.dot_dimension_numbers<[1], [0], [0], [1], [0, 0, 1, 1], [], []>} : vector<512x4xf32>, vector<4x8xf32>, vector<512x8xf32> -> vector<512x8xf32>
    %10 = arith.addf %5, %9 : vector<512x8xf32>
    %c0_11 = arith.constant 0 : index
    %c0_12 = arith.constant 0 : index
    %c2 = arith.constant 2 : index
    %c0_13 = arith.constant 0 : index
    %11 = vector.load %arg0[%c0_11, %c0_12, %c2, %c0_13] : memref<2x18x18x4xf32, #tpu.memory_space<vmem>>, vector<2x16x16x4xf32>
    %12 = vector.shape_cast %11 : vector<2x16x16x4xf32> to vector<512x4xf32>
    %c8 = arith.constant 8 : index
    %c0_14 = arith.constant 0 : index
    %13 = vector.load %arg1[%c8, %c0_14] : memref<56x128xf32, #tpu.memory_space<vmem>>, vector<4x8xf32>
    %cst_15 = arith.constant dense<0.000000e+00> : vector<512x8xf32>
    %14 = tpu.matmul %12, %13, %cst_15 {dimension_numbers = #tpu.dot_dimension_numbers<[1], [0], [0], [1], [0, 0, 1, 1], [], []>} : vector<512x4xf32>, vector<4x8xf32>, vector<512x8xf32> -> vector<512x8xf32>
    %15 = arith.addf %10, %14 : vector<512x8xf32>
    %c0_16 = arith.constant 0 : index
    %c1_17 = arith.constant 1 : index
    %c0_18 = arith.constant 0 : index
    %c0_19 = arith.constant 0 : index
    %16 = vector.load %arg0[%c0_16, %c1_17, %c0_18, %c0_19] : memref<2x18x18x4xf32, #tpu.memory_space<vmem>>, vector<2x16x16x4xf32>
    %17 = vector.shape_cast %16 : vector<2x16x16x4xf32> to vector<512x4xf32>
    %c12 = arith.constant 12 : index
    %c0_20 = arith.constant 0 : index
    %18 = vector.load %arg1[%c12, %c0_20] : memref<56x128xf32, #tpu.memory_space<vmem>>, vector<4x8xf32>
    %cst_21 = arith.constant dense<0.000000e+00> : vector<512x8xf32>
    %19 = tpu.matmul %17, %18, %cst_21 {dimension_numbers = #tpu.dot_dimension_numbers<[1], [0], [0], [1], [0, 0, 1, 1], [], []>} : vector<512x4xf32>, vector<4x8xf32>, vector<512x8xf32> -> vector<512x8xf32>
    %20 = arith.addf %15, %19 : vector<512x8xf32>
    %c0_22 = arith.constant 0 : index
    %c1_23 = arith.constant 1 : index
    %c1_24 = arith.constant 1 : index
    %c0_25 = arith.constant 0 : index
    %21 = vector.load %arg0[%c0_22, %c1_23, %c1_24, %c0_25] : memref<2x18x18x4xf32, #tpu.memory_space<vmem>>, vector<2x16x16x4xf32>
    %22 = vector.shape_cast %21 : vector<2x16x16x4xf32> to vector<512x4xf32>
    %c16 = arith.constant 16 : index
    %c0_26 = arith.constant 0 : index
    %23 = vector.load %arg1[%c16, %c0_26] : memref<56x128xf32, #tpu.memory_space<vmem>>, vector<4x8xf32>
    %cst_27 = arith.constant dense<0.000000e+00> : vector<512x8xf32>
    %24 = tpu.matmul %22, %23, %cst_27 {dimension_numbers = #tpu.dot_dimension_numbers<[1], [0], [0], [1], [0, 0, 1, 1], [], []>} : vector<512x4xf32>, vector<4x8xf32>, vector<512x8xf32> -> vector<512x8xf32>
    %25 = arith.addf %20, %24 : vector<512x8xf32>
    %c0_28 = arith.constant 0 : index
    %c1_29 = arith.constant 1 : index
    %c2_30 = arith.constant 2 : index
    %c0_31 = arith.constant 0 : index
    %26 = vector.load %arg0[%c0_28, %c1_29, %c2_30, %c0_31] : memref<2x18x18x4xf32, #tpu.memory_space<vmem>>, vector<2x16x16x4xf32>
    %27 = vector.shape_cast %26 : vector<2x16x16x4xf32> to vector<512x4xf32>
    %c20 = arith.constant 20 : index
    %c0_32 = arith.constant 0 : index
    %28 = vector.load %arg1[%c20, %c0_32] : memref<56x128xf32, #tpu.memory_space<vmem>>, vector<4x8xf32>
    %cst_33 = arith.constant dense<0.000000e+00> : vector<512x8xf32>
    %29 = tpu.matmul %27, %28, %cst_33 {dimension_numbers = #tpu.dot_dimension_numbers<[1], [0], [0], [1], [0, 0, 1, 1], [], []>} : vector<512x4xf32>, vector<4x8xf32>, vector<512x8xf32> -> vector<512x8xf32>
    %30 = arith.addf %25, %29 : vector<512x8xf32>
    %c0_34 = arith.constant 0 : index
    %c2_35 = arith.constant 2 : index
    %c0_36 = arith.constant 0 : index
    %c0_37 = arith.constant 0 : index
    %31 = vector.load %arg0[%c0_34, %c2_35, %c0_36, %c0_37] : memref<2x18x18x4xf32, #tpu.memory_space<vmem>>, vector<2x16x16x4xf32>
    %32 = vector.shape_cast %31 : vector<2x16x16x4xf32> to vector<512x4xf32>
    %c24 = arith.constant 24 : index
    %c0_38 = arith.constant 0 : index
    %33 = vector.load %arg1[%c24, %c0_38] : memref<56x128xf32, #tpu.memory_space<vmem>>, vector<4x8xf32>
    %cst_39 = arith.constant dense<0.000000e+00> : vector<512x8xf32>
    %34 = tpu.matmul %32, %33, %cst_39 {dimension_numbers = #tpu.dot_dimension_numbers<[1], [0], [0], [1], [0, 0, 1, 1], [], []>} : vector<512x4xf32>, vector<4x8xf32>, vector<512x8xf32> -> vector<512x8xf32>
    %35 = arith.addf %30, %34 : vector<512x8xf32>
    %c0_40 = arith.constant 0 : index
    %c2_41 = arith.constant 2 : index
    %c1_42 = arith.constant 1 : index
    %c0_43 = arith.constant 0 : index
    %36 = vector.load %arg0[%c0_40, %c2_41, %c1_42, %c0_43] : memref<2x18x18x4xf32, #tpu.memory_space<vmem>>, vector<2x16x16x4xf32>
    %37 = vector.shape_cast %36 : vector<2x16x16x4xf32> to vector<512x4xf32>
    %c28 = arith.constant 28 : index
    %c0_44 = arith.constant 0 : index
    %38 = vector.load %arg1[%c28, %c0_44] : memref<56x128xf32, #tpu.memory_space<vmem>>, vector<4x8xf32>
    %cst_45 = arith.constant dense<0.000000e+00> : vector<512x8xf32>
    %39 = tpu.matmul %37, %38, %cst_45 {dimension_numbers = #tpu.dot_dimension_numbers<[1], [0], [0], [1], [0, 0, 1, 1], [], []>} : vector<512x4xf32>, vector<4x8xf32>, vector<512x8xf32> -> vector<512x8xf32>
    %40 = arith.addf %35, %39 : vector<512x8xf32>
    %c0_46 = arith.constant 0 : index
    %c2_47 = arith.constant 2 : index
    %c2_48 = arith.constant 2 : index
    %c0_49 = arith.constant 0 : index
    %41 = vector.load %arg0[%c0_46, %c2_47, %c2_48, %c0_49] : memref<2x18x18x4xf32, #tpu.memory_space<vmem>>, vector<2x16x16x4xf32>
    %42 = vector.shape_cast %41 : vector<2x16x16x4xf32> to vector<512x4xf32>
    %c32 = arith.constant 32 : index
    %c0_50 = arith.constant 0 : index
    %43 = vector.load %arg1[%c32, %c0_50] : memref<56x128xf32, #tpu.memory_space<vmem>>, vector<4x8xf32>
    %cst_51 = arith.constant dense<0.000000e+00> : vector<512x8xf32>
    %44 = tpu.matmul %42, %43, %cst_51 {dimension_numbers = #tpu.dot_dimension_numbers<[1], [0], [0], [1], [0, 0, 1, 1], [], []>} : vector<512x4xf32>, vector<4x8xf32>, vector<512x8xf32> -> vector<512x8xf32>
    %45 = arith.addf %40, %44 : vector<512x8xf32>
    %c36 = arith.constant 36 : index
    %c0_52 = arith.constant 0 : index
    %46 = vector.load %arg1[%c36, %c0_52] : memref<56x128xf32, #tpu.memory_space<vmem>>, vector<1x8xf32>
    %47 = vector.broadcast %46 : vector<1x8xf32> to vector<512x8xf32>
    %48 = arith.addf %45, %47 : vector<512x8xf32>
    %cst_53 = arith.constant 0.000000e+00 : f32
    %49 = vector.broadcast %cst_53 : f32 to vector<512x8xf32>
    %50 = arith.maximumf %48, %49 : vector<512x8xf32>
    %51 = vector.shape_cast %50 : vector<512x8xf32> to vector<2x256x8xf32>
    %cst_54 = arith.constant dense<0.000000e+00> : vector<2x8xf32>
    %52 = vector.multi_reduction <add>, %51, %cst_54 [1] : vector<2x256x8xf32> to vector<2x8xf32>
    %cst_55 = arith.constant 3.906250e-03 : f32
    %53 = vector.broadcast %cst_55 : f32 to vector<2x8xf32>
    %54 = arith.mulf %52, %53 : vector<2x8xf32>
    %c40 = arith.constant 40 : index
    %c0_56 = arith.constant 0 : index
    %55 = vector.load %arg1[%c40, %c0_56] : memref<56x128xf32, #tpu.memory_space<vmem>>, vector<8x128xf32>
    %cst_57 = arith.constant dense<0.000000e+00> : vector<2x128xf32>
    %56 = tpu.matmul %54, %55, %cst_57 {dimension_numbers = #tpu.dot_dimension_numbers<[1], [0], [0], [1], [0, 0, 1, 1], [], []>} : vector<2x8xf32>, vector<8x128xf32>, vector<2x128xf32> -> vector<2x128xf32>
    %c48 = arith.constant 48 : index
    %c0_58 = arith.constant 0 : index
    %57 = vector.load %arg1[%c48, %c0_58] : memref<56x128xf32, #tpu.memory_space<vmem>>, vector<1x128xf32>
    %58 = vector.broadcast %57 : vector<1x128xf32> to vector<2x128xf32>
    %59 = arith.addf %56, %58 : vector<2x128xf32>
    %c0_59 = arith.constant 0 : index
    %c0_60 = arith.constant 0 : index
    %60 = vector.load %arg2[%c0_59, %c0_60] : memref<2x128xf32, #tpu.memory_space<vmem>>, vector<2x128xf32>
    tpu.vector_store %arg2[%c0_59, %c0_60], %59 {strides = array<i32>} : memref<2x128xf32, #tpu.memory_space<vmem>>, vector<2x128xf32>,
    return
  }
}

</mosaic_0001>

<bundles_post_ra>
// kernel: base_head_merge.1
= control target key start
LH: loop header
LB: loop body
LE: loop exit
PB: predicated region body
PF: predicated region fallthrough
CT: control target
= control target key end

     0   :  { %vm335_vm0 = vcmask 1043456   ;;  %vm142_vm1 = vcmask 31744   ;;  %s8898_s0 = inlined_call_operand.vmem [shape: f32[2,18,18,4], index: 0, kind: input, shape index: {}]   ;;  %s8899_s1 = inlined_call_operand.vmem [shape: f32[56,128], index: 1, kind: input, shape index: {}]   ;;  %s8900_s2 = inlined_call_operand.hbm [shape: f32[2,128], index: 2, kind: output, shape index: {}]  }
   0x1   :  { %v141_v0 = vld [vmem:[%s8899_s1 + $0x4] sm:$0xf]  ;;  %v6028_v1 = vld [vmem:[%s8898_s0 + $0xc9] sm:$0xff]  ;;  %v6063_v8 = vld [vmem:[%s8898_s0 + $0xd9] sm:$0xff] }
   0x2   :  { %v107_v2 = vld [vmem:[%s8898_s0 + $0x169] sm:$0xff]  ;;  %5972 = vmatpush.msk.msra.mxu1 %vm335_vm0, %v141_v0  ;;  %5973 = vmatpush.msk.msra.mxu2 %vm335_vm0, %v141_v0  ;;  %v124_v4 = vld [vmem:[%s8898_s0 + $0x261] sm:$0xff]  ;;  %v108_v9 = vld [vmem:[%s8898_s0 + $0x171] sm:$0xff] }
   0x3   :  { %v1016_v3 = vld [vmem:[%s8899_s1 + $0x8] sm:$0xf]  ;;  %5020 = vmatmul.msk.f32.vlgmr.msra.gmra.mxu1 %vm142_vm1, %v6028_v1  ;;  %5033 = vmatmul.msk.f32.vlgmr.msra.gmra.mxu2 %vm142_vm1, %v107_v2  ;;  %v1550_v5 = vld [vmem:[%s8899_s1 + $0xc] sm:$0xf]  ;;  %v2083_v7 = vld [vmem:[%s8899_s1 + $0x10] sm:$0xf] }
   0x4   :  { %v77_v6 = vld [vmem:[%s8898_s0 + $0x1] sm:$0xff]  ;;  %5132 = vmatpush.msk.msrb.mxu2 %vm335_vm0, %v1016_v3  ;;  %5974 = vmatpush.msk.msra.mxu3 %vm335_vm0, %v141_v0  ;;  %v125_v11 = vld [vmem:[%s8898_s0 + $0x271] sm:$0xff] }
   0x5   :  { %5050 = vmatmul.msk.f32.vlgmr.msra.gmra.mxu3 %vm142_vm1, %v124_v4  ;;  %5002 = vmatpush.msk.msra.mxu0 %vm335_vm0, %v141_v0  ;;  %v76_v10 = vld [vmem:[%s8899_s1] sm:$0xf] }
   0x6   :  { %5261 = vmatpush.msk.msrb.mxu3 %vm335_vm0, %v1550_v5  ;;  %5003 = vmatmul.msk.f32.vlgmr.msra.gmra.mxu0 %vm142_vm1, %v77_v6 }
   0x7   :  { %5390 = vmatpush.msk.msrb.mxu0 %vm335_vm0, %v2083_v7  ;;  %5067 = vmatpush.msk.msrb.mxu1 %vm335_vm0, %v76_v10 }
   0x8   :  { %7 = vsyncpa [#allocation3], 0  ;;  %v78_v12 = vld [vmem:[%s8898_s0 + $0x9] sm:$0xff]  ;;  %v6086_v13 = vld [vmem:[%s8898_s0 + $0xe1] sm:$0xff]  ;;  %vm4815_vm2 = vcmask 64512   ;;  %vm4961_vm3 = vcmask 1041409  }
   0x9   :  { %v109_v14 = vld [vmem:[%s8898_s0 + $0x1b1] sm:$0xff]  ;;  %v126_v15 = vld [vmem:[%s8898_s0 + $0x279] sm:$0xff]  ;;  %v127_v19 = vld [vmem:[%s8898_s0 + $0x289] sm:$0xff]  ;;  %s6006_s24 = smov [#allocation2]   ;;  %s4993_s28 = sshll.u32 %s8900_s2, 4  ;;  %s4994_s28 = int_to_ptr.hbm [resolvable:$true] %s4993_s28 }
   0xa   :  { %v6100_v16 = vld [vmem:[%s8898_s0 + $0x19] sm:$0xff]  ;;  %v6108_v17 = vld [vmem:[%s8898_s0 + $0xf1] sm:$0xff]  ;;  %v6122_v20 = vld [vmem:[%s8898_s0 + $0x21] sm:$0xff]  ;;  %s4991_s25 = sshll.u32 %s6006_s24, 4  ;;  %s4992_s25 = int_to_ptr.vmem [resolvable:$true] %s4991_s25 }
   0xb   :  { %5021 = vmatmul.msk.f32.gmra.mxu1 %vm142_vm1, %v6063_v8  ;;  %5034 = vmatmul.msk.f32.gmra.mxu2 %vm142_vm1, %v108_v9  ;;  %v110_v18 = vld [vmem:[%s8898_s0 + $0x1b9] sm:$0xff]  ;;  %v111_v22 = vld [vmem:[%s8898_s0 + $0x1c9] sm:$0xff]  ;;  %v128_v23 = vld [vmem:[%s8898_s0 + $0x291] sm:$0xff] }
   0xc   :  { %v6130_v21 = vld [vmem:[%s8898_s0 + $0xf9] sm:$0xff]  ;;  %v6144_v24 = vld [vmem:[%s8898_s0 + $0x31] sm:$0xff]  ;;  %v6152_v25 = vld [vmem:[%s8898_s0 + $0x109] sm:$0xff] }
   0xd   :  { %5051 = vmatmul.msk.f32.gmra.mxu3 %vm142_vm1, %v125_v11  ;;  %v112_v26 = vld [vmem:[%s8898_s0 + $0x1d1] sm:$0xff]  ;;  %v129_v27 = vld [vmem:[%s8898_s0 + $0x2a1] sm:$0xff]  ;;  %v6166_v28 = vld [vmem:[%s8898_s0 + $0x39] sm:$0xff] }
   0xe   :  { %5004 = vmatmul.msk.f32.gmra.mxu0 %vm142_vm1, %v78_v12  ;;  %v6174_v29 = vld [vmem:[%s8898_s0 + $0x111] sm:$0xff]  ;;  %v113_v30 = vld [vmem:[%s8898_s0 + $0x1e1] sm:$0xff]  ;;  %v130_v31 = vld [vmem:[%s8898_s0 + $0x2a9] sm:$0xff] }
   0xf   :  { %v6188_v32 = vld [vmem:[%s8898_s0 + $0x49] sm:$0xff]  ;;  %v6196_v33 = vld [vmem:[%s8898_s0 + $0x121] sm:$0xff]  ;;  %v131_v35 = vld [vmem:[%s8898_s0 + $0x2b9] sm:$0xff] }
  0x10   :  { %v114_v34 = vld [vmem:[%s8898_s0 + $0x1e9] sm:$0xff]  ;;  %v6210_v36 = vld [vmem:[%s8898_s0 + $0x51] sm:$0xff]  ;;  %v115_v38 = vld [vmem:[%s8898_s0 + $0x1f9] sm:$0xff] }
  0x11   :  { %v6218_v37 = vld [vmem:[%s8898_s0 + $0x129] sm:$0xff]  ;;  %v132_v39 = vld [vmem:[%s8898_s0 + $0x2c1] sm:$0xff]  ;;  %v6240_v41 = vld [vmem:[%s8898_s0 + $0x139] sm:$0xff] }
  0x12   :  { %v6232_v40 = vld [vmem:[%s8898_s0 + $0x61] sm:$0xff]  ;;  %v133_v43 = vld [vmem:[%s8898_s0 + $0x2d1] sm:$0xff]  ;;  %v6254_v44 = vld [vmem:[%s8898_s0 + $0x69] sm:$0xff] }
  0x13   :  { %5022 = vmatmul.msk.f32.gmra.mxu1 %vm142_vm1, %v6086_v13  ;;  %5035 = vmatmul.msk.f32.gmra.mxu2 %vm142_vm1, %v109_v14  ;;  %v116_v42 = vld [vmem:[%s8898_s0 + $0x201] sm:$0xff]  ;;  %v117_v46 = vld [vmem:[%s8898_s0 + $0x211] sm:$0xff]  ;;  %v134_v47 = vld [vmem:[%s8898_s0 + $0x2d9] sm:$0xff] }
  0x14   :  { %v6262_v45 = vld [vmem:[%s8898_s0 + $0x141] sm:$0xff]  ;;  %v6276_v48 = vld [vmem:[%s8898_s0 + $0x79] sm:$0xff]  ;;  %v6284_v49 = vld [vmem:[%s8898_s0 + $0x151] sm:$0xff] }
  0x15   :  { %5052 = vmatmul.msk.f32.gmra.mxu3 %vm142_vm1, %v126_v15  ;;  %v118_v50 = vld [vmem:[%s8898_s0 + $0x219] sm:$0xff]  ;;  %v135_v51 = vld [vmem:[%s8898_s0 + $0x2e9] sm:$0xff]  ;;  %v6298_v52 = vld [vmem:[%s8898_s0 + $0x81] sm:$0xff] }
  0x16   :  { %5005 = vmatmul.msk.f32.gmra.mxu0 %vm142_vm1, %v6100_v16  ;;  %v6306_v53 = vld [vmem:[%s8898_s0 + $0x159] sm:$0xff]  ;;  %v119_v54 = vld [vmem:[%s8898_s0 + $0x229] sm:$0xff]  ;;  %v136_v55 = vld [vmem:[%s8898_s0 + $0x2f1] sm:$0xff] }
  0x17   :  { %v6320_v56 = vld [vmem:[%s8898_s0 + $0x91] sm:$0xff]  ;;  %v12_v58 = vld [vmem:[%s8898_s0] sm:$0xff]  ;;  %v3683_v62 = vld [vmem:[%s8899_s1 + $0x1c] sm:$0xf] }
  0x18   :  { %v120_v57 = vld [vmem:[%s8898_s0 + $0x231] sm:$0xff]  ;;  %v137_v59 = vld [vmem:[%s8898_s0 + $0x301] sm:$0xff]  ;;  %v6339_v60 = vld [vmem:[%s8898_s0 + $0x99] sm:$0xff]  ;;  %5777 = vmatpush.msk.msra.mxu3 %vm335_vm0, %v3683_v62 }
  0x19   :  { %v3150_v61 = vld [vmem:[%s8899_s1 + $0x18] sm:$0xf]  ;;  %v2616_v63 = vld [vmem:[%s8899_s1 + $0x14] sm:$0xf]  ;;  %v121_v0 = vld [vmem:[%s8898_s0 + $0x241] sm:$0xff] }
  0x1a   :  { %5648 = vmatpush.msk.msra.mxu2 %vm335_vm0, %v3150_v61  ;;  %5519 = vmatpush.msk.msra.mxu1 %vm335_vm0, %v2616_v63  ;;  %v13_v2 = vld [vmem:[%s8898_s0 + $0x8] sm:$0xff]  ;;  %v4216_v5 = vld [vmem:[%s8899_s1 + $0x20] sm:$0xf]  ;;  %v14_v7 = vld [vmem:[%s8898_s0 + $0x18] sm:$0xff] }
  0x1b   :  { %5023 = vmatmul.msk.f32.gmra.mxu1 %vm142_vm1, %v6108_v17  ;;  %5036 = vmatmul.msk.f32.gmra.mxu2 %vm142_vm1, %v110_v18  ;;  %v138_v3 = vld [vmem:[%s8898_s0 + $0x309] sm:$0xff]  ;;  %v139_v9 = vld [vmem:[%s8898_s0 + $0x319] sm:$0xff]  ;;  %v6393_v10 = vld [vmem:[%s8898_s0 + $0xb1] sm:$0xff] }
  0x1c   :  { %v6370_v4 = vld [vmem:[%s8898_s0 + $0xa9] sm:$0xff]  ;;  %5906 = vmatpush.msk.msra.mxu0 %vm335_vm0, %v4216_v5  ;;  %v123_v12 = vld [vmem:[%s8898_s0 + $0x259] sm:$0xff]  ;;  %v140_v15 = vld [vmem:[%s8898_s0 + $0x321] sm:$0xff] }
  0x1d   :  { %5053 = vmatmul.msk.f32.gmra.mxu3 %vm142_vm1, %v127_v19  ;;  %v122_v6 = vld [vmem:[%s8898_s0 + $0x249] sm:$0xff]  ;;  %v15_v14 = vld [vmem:[%s8898_s0 + $0x20] sm:$0xff] }
  0x1e   :  { %5006 = vmatmul.msk.f32.gmra.mxu0 %vm142_vm1, %v6122_v20  ;;  %v6416_v19 = vld [vmem:[%s8898_s0 + $0xc1] sm:$0xff] }
  0x23   :  { %5024 = vmatmul.msk.f32.gmra.mxu1 %vm142_vm1, %v6130_v21  ;;  %5037 = vmatmul.msk.f32.gmra.mxu2 %vm142_vm1, %v111_v22 }
  0x25   :  { %5054 = vmatmul.msk.f32.gmra.mxu3 %vm142_vm1, %v128_v23 }
  0x26   :  { %5007 = vmatmul.msk.f32.gmra.mxu0 %vm142_vm1, %v6144_v24 }
  0x2b   :  { %5025 = vmatmul.msk.f32.gmra.mxu1 %vm142_vm1, %v6152_v25  ;;  %5038 = vmatmul.msk.f32.gmra.mxu2 %vm142_vm1, %v112_v26 }
  0x2d   :  { %5055 = vmatmul.msk.f32.gmra.mxu3 %vm142_vm1, %v129_v27  ;;  %v16_v27 = vld [vmem:[%s8898_s0 + $0x30] sm:$0xff] }
  0x2e   :  { %5008 = vmatmul.msk.f32.gmra.mxu0 %vm142_vm1, %v6166_v28 }
  0x33   :  { %5026 = vmatmul.msk.f32.gmra.mxu1 %vm142_vm1, %v6174_v29  ;;  %5039 = vmatmul.msk.f32.gmra.mxu2 %vm142_vm1, %v113_v30  ;;  %v952_v30 = vld [vmem:[%s8898_s0 + $0x2] sm:$0xff] }
  0x35   :  { %5056 = vmatmul.msk.f32.gmra.mxu3 %vm142_vm1, %v130_v31 }
  0x36   :  { %5009 = vmatmul.msk.f32.gmra.mxu0 %vm142_vm1, %v6188_v32 }
  0x3b   :  { %5027 = vmatmul.msk.f32.gmra.mxu1 %vm142_vm1, %v6196_v33  ;;  %5040 = vmatmul.msk.f32.gmra.mxu2 %vm142_vm1, %v114_v34 }
  0x3d   :  { %5057 = vmatmul.msk.f32.gmra.mxu3 %vm142_vm1, %v131_v35 }
  0x3e   :  { %5010 = vmatmul.msk.f32.gmra.mxu0 %vm142_vm1, %v6210_v36 }
  0x43   :  { %5028 = vmatmul.msk.f32.gmra.mxu1 %vm142_vm1, %v6218_v37  ;;  %5041 = vmatmul.msk.f32.gmra.mxu2 %vm142_vm1, %v115_v38 }
  0x45   :  { %5058 = vmatmul.msk.f32.gmra.mxu3 %vm142_vm1, %v132_v39  ;;  %v17_v39 = vld [vmem:[%s8898_s0 + $0x38] sm:$0xff] }
  0x46   :  { %5011 = vmatmul.msk.f32.gmra.mxu0 %vm142_vm1, %v6232_v40 }
  0x4b   :  { %5029 = vmatmul.msk.f32.gmra.mxu1 %vm142_vm1, %v6240_v41  ;;  %5042 = vmatmul.msk.f32.gmra.mxu2 %vm142_vm1, %v116_v42  ;;  %v953_v42 = vld [vmem:[%s8898_s0 + $0xa] sm:$0xff] }
  0x4d   :  { %5059 = vmatmul.msk.f32.gmra.mxu3 %vm142_vm1, %v133_v43 }
  0x4e   :  { %5012 = vmatmul.msk.f32.gmra.mxu0 %vm142_vm1, %v6254_v44 }
  0x53   :  { %5030 = vmatmul.msk.f32.gmra.mxu1 %vm142_vm1, %v6262_v45  ;;  %5043 = vmatmul.msk.f32.gmra.mxu2 %vm142_vm1, %v117_v46 }
  0x55   :  { %5060 = vmatmul.msk.f32.gmra.mxu3 %vm142_vm1, %v134_v47 }
  0x56   :  { %5013 = vmatmul.msk.f32.gmra.mxu0 %vm142_vm1, %v6276_v48 }
  0x5b   :  { %5031 = vmatmul.msk.f32.gmra.mxu1 %vm142_vm1, %v6284_v49  ;;  %5044 = vmatmul.msk.f32.gmra.mxu2 %vm142_vm1, %v118_v50  ;;  %v18_v50 = vld [vmem:[%s8898_s0 + $0x48] sm:$0xff] }
  0x5d   :  { %5061 = vmatmul.msk.f32.gmra.mxu3 %vm142_vm1, %v135_v51  ;;  %v954_v51 = vld [vmem:[%s8898_s0 + $0x1a] sm:$0xff] }
  0x5e   :  { %5014 = vmatmul.msk.f32.gmra.mxu0 %vm142_vm1, %v6298_v52 }
  0x63   :  { %5032 = vmatmul.msk.f32.gmra.mxu1 %vm142_vm1, %v6306_v53  ;;  %5045 = vmatmul.msk.f32.gmra.mxu2 %vm142_vm1, %v119_v54 }
  0x65   :  { %5062 = vmatmul.msk.f32.gmra.mxu3 %vm142_vm1, %v136_v55 }
  0x66   :  { %5015 = vmatmul.msk.f32.gmra.mxu0 %vm142_vm1, %v6320_v56 }
  0x6b   :  { %5046 = vmatmul.msk.f32.gmra.mxu2 %vm142_vm1, %v120_v57  ;;  %5068 = vmatmul.msk.f32.vlgmr.msrb.gmra.mxu1 %vm142_vm1, %v12_v58  ;;  %v19_v58 = vld [vmem:[%s8898_s0 + $0x50] sm:$0xff] }
  0x6d   :  { %5063 = vmatmul.msk.f32.gmra.mxu3 %vm142_vm1, %v137_v59  ;;  %v955_v59 = vld [vmem:[%s8898_s0 + $0x22] sm:$0xff] }
  0x6e   :  { %5016 = vmatmul.msk.f32.gmra.mxu0 %vm142_vm1, %v6339_v60 }
  0x73   :  { %5047 = vmatmul.msk.f32.gmra.mxu2 %vm142_vm1, %v121_v0  ;;  %5069 = vmatmul.msk.f32.gmra.mxu1 %vm142_vm1, %v13_v2  ;;  %v20_v0 = vld [vmem:[%s8898_s0 + $0x60] sm:$0xff]  ;;  %v956_v2 = vld [vmem:[%s8898_s0 + $0x32] sm:$0xff] }
  0x75   :  { %5064 = vmatmul.msk.f32.gmra.mxu3 %vm142_vm1, %v138_v3 }
  0x76   :  { %5017 = vmatmul.msk.f32.gmra.mxu0 %vm142_vm1, %v6370_v4 }
  0x7b   :  { %5048 = vmatmul.msk.f32.gmra.mxu2 %vm142_vm1, %v122_v6  ;;  %5070 = vmatmul.msk.f32.gmra.mxu1 %vm142_vm1, %v14_v7 }
  0x7d   :  { %5065 = vmatmul.msk.f32.gmra.mxu3 %vm142_vm1, %v139_v9  ;;  %v957_v9 = vld [vmem:[%s8898_s0 + $0x3a] sm:$0xff] }
  0x7e   :  { %5018 = vmatmul.msk.f32.gmra.mxu0 %vm142_vm1, %v6393_v10 }
  0x80   :  { %v6398_v11 = vpop.f32.mrf.mxu1 }
  0x83   :  { %5049 = vmatmul.msk.f32.gmra.mxu2 %vm142_vm1, %v123_v12  ;;  %5071 = vmatmul.msk.f32.gmra.mxu1 %vm142_vm1, %v15_v14  ;;  %v6411_v18 = vpop.f32.mrf.mxu0 }
  0x85   :  { %5066 = vmatmul.msk.f32.gmra.mxu3 %vm142_vm1, %v140_v15 }
  0x86   :  { %v6419_v22 = vpop.f32.mrf.mxu2  ;;  %5019 = vmatmul.msk.f32.gmra.mxu0 %vm142_vm1, %v6416_v19 }
  0x88   :  { %v6423_v23 = vpop.f32.mrf.mxu1  ;;  %v6425_v26 = vpop.f32.mrf.mxu3 }
  0x89   :  { %8901 = vst [vmem:[#allocation5_spill] sm:$0xff] %v6425_v26 }
  0x8b   :  { %5072 = vmatmul.msk.f32.gmra.mxu1 %vm142_vm1, %v16_v27  ;;  %5133 = vmatmul.msk.f32.vlgmr.msrb.gmra.mxu2 %vm142_vm1, %v952_v30  ;;  %v6435_v31 = vpop.f32.mrf.mxu0  ;;  %v958_v30 = vld [vmem:[%s8898_s0 + $0x4a] sm:$0xff] }
  0x8d   :  { %5262 = vmatmul.msk.f32.vlgmr.msrb.gmra.mxu3 %vm142_vm1, %v14_v7  ;;  %v21_v7 = vld [vmem:[%s8898_s0 + $0x68] sm:$0xff] }
  0x8e   :  { %v6438_v34 = vpop.f32.mrf.mxu2  ;;  %5391 = vmatmul.msk.f32.vlgmr.msrb.gmra.mxu0 %vm142_vm1, %v6100_v16 }
  0x90   :  { %v6442_v35 = vpop.f32.mrf.mxu1  ;;  %v6444_v38 = vpop.f32.mrf.mxu3 }
  0x91   :  { %8902 = vst [vmem:[#allocation6_spill] sm:$0xff] %v6444_v38  ;;  %v28_v38 = vld [vmem:[%s8898_s0 + $0xc0] sm:$0xff] }
  0x93   :  { %5073 = vmatmul.msk.f32.gmra.mxu1 %vm142_vm1, %v17_v39  ;;  %5134 = vmatmul.msk.f32.gmra.mxu2 %vm142_vm1, %v953_v42  ;;  %v6454_v43 = vpop.f32.mrf.mxu0 }
  0x95   :  { %5263 = vmatmul.msk.f32.gmra.mxu3 %vm142_vm1, %v15_v14 }
  0x96   :  { %v6457_v16 = vpop.f32.mrf.mxu2  ;;  %5392 = vmatmul.msk.f32.gmra.mxu0 %vm142_vm1, %v6122_v20 }
  0x98   :  { %v6461_v46 = vpop.f32.mrf.mxu1  ;;  %v6463_v47 = vpop.f32.mrf.mxu3 }
  0x99   :  { %8903 = vst [vmem:[#allocation7_spill] sm:$0xff] %v6463_v47 }
  0x9b   :  { %5074 = vmatmul.msk.f32.gmra.mxu1 %vm142_vm1, %v18_v50  ;;  %5135 = vmatmul.msk.f32.gmra.mxu2 %vm142_vm1, %v954_v51  ;;  %v6473_v54 = vpop.f32.mrf.mxu0  ;;  %v23_v51 = vld [vmem:[%s8898_s0 + $0x80] sm:$0xff] }
  0x9d   :  { %5264 = vmatmul.msk.f32.gmra.mxu3 %vm142_vm1, %v16_v27  ;;  %v22_v27 = vld [vmem:[%s8898_s0 + $0x78] sm:$0xff] }
  0x9e   :  { %v6476_v20 = vpop.f32.mrf.mxu2  ;;  %5393 = vmatmul.msk.f32.gmra.mxu0 %vm142_vm1, %v6144_v24 }
  0xa0   :  { %v6480_v55 = vpop.f32.mrf.mxu1  ;;  %v6482_v57 = vpop.f32.mrf.mxu3 }
  0xa1   :  { %8904 = vst [vmem:[#allocation8_spill] sm:$0xff] %v6482_v57  ;;  %v27_v57 = vld [vmem:[%s8898_s0 + $0xb0] sm:$0xff] }
  0xa3   :  { %5075 = vmatmul.msk.f32.gmra.mxu1 %vm142_vm1, %v19_v58  ;;  %5136 = vmatmul.msk.f32.gmra.mxu2 %vm142_vm1, %v955_v59  ;;  %v6492_v61 = vpop.f32.mrf.mxu0 }
  0xa5   :  { %5265 = vmatmul.msk.f32.gmra.mxu3 %vm142_vm1, %v17_v39 }
  0xa6   :  { %v6495_v24 = vpop.f32.mrf.mxu2  ;;  %5394 = vmatmul.msk.f32.gmra.mxu0 %vm142_vm1, %v6166_v28 }
  0xa7   :  { %8905 = vst [vmem:[#allocation9_spill] sm:$0xff] %v6495_v24 }
  0xa8   :  { %v6499_v62 = vpop.f32.mrf.mxu1  ;;  %v6501_v63 = vpop.f32.mrf.mxu3 }
  0xa9   :  { %8906 = vst [vmem:[#allocation10_spill] sm:$0xff] %v6501_v63 }
  0xab   :  { %5076 = vmatmul.msk.f32.gmra.mxu1 %vm142_vm1, %v20_v0  ;;  %5137 = vmatmul.msk.f32.gmra.mxu2 %vm142_vm1, %v956_v2  ;;  %v6511_v3 = vpop.f32.mrf.mxu0 }
  0xad   :  { %5266 = vmatmul.msk.f32.gmra.mxu3 %vm142_vm1, %v18_v50 }
  0xae   :  { %v6514_v28 = vpop.f32.mrf.mxu2  ;;  %5395 = vmatmul.msk.f32.gmra.mxu0 %vm142_vm1, %v6188_v32 }
  0xaf   :  { %8907 = vst [vmem:[#allocation11_spill] sm:$0xff] %v6514_v28 }
  0xb0   :  { %v6518_v5 = vpop.f32.mrf.mxu1  ;;  %v6520_v6 = vpop.f32.mrf.mxu3 }
  0xb1   :  { %8908 = vst [vmem:[#allocation12_spill] sm:$0xff] %v6520_v6  ;;  %v26_v6 = vld [vmem:[%s8898_s0 + $0xa8] sm:$0xff] }
  0xb3   :  { %5077 = vmatmul.msk.f32.gmra.mxu1 %vm142_vm1, %v21_v7  ;;  %5138 = vmatmul.msk.f32.gmra.mxu2 %vm142_vm1, %v957_v9  ;;  %v6530_v12 = vpop.f32.mrf.mxu0  ;;  %v24_v9 = vld [vmem:[%s8898_s0 + $0x90] sm:$0xff] }
  0xb5   :  { %5267 = vmatmul.msk.f32.gmra.mxu3 %vm142_vm1, %v19_v58  ;;  %v959_v58 = vld [vmem:[%s8898_s0 + $0x52] sm:$0xff] }
  0xb6   :  { %v6533_v32 = vpop.f32.mrf.mxu2  ;;  %5396 = vmatmul.msk.f32.gmra.mxu0 %vm142_vm1, %v6210_v36 }
  0xb7   :  { %8909 = vst [vmem:[#allocation13_spill] sm:$0xff] %v6533_v32  ;;  %v33_v32 = vld [vmem:[%s8898_s0 + $0xf8] sm:$0xff] }
  0xb8   :  { %v6537_v14 = vpop.f32.mrf.mxu1  ;;  %v6539_v15 = vpop.f32.mrf.mxu3 }
  0xb9   :  { %8910 = vst [vmem:[#allocation14_spill] sm:$0xff] %v6539_v15 }
  0xbb   :  { %5078 = vmatmul.msk.f32.gmra.mxu1 %vm142_vm1, %v22_v27  ;;  %5139 = vmatmul.msk.f32.gmra.mxu2 %vm142_vm1, %v958_v30  ;;  %v6549_v39 = vpop.f32.mrf.mxu0  ;;  %v960_v30 = vld [vmem:[%s8898_s0 + $0x62] sm:$0xff] }
  0xbd   :  { %5268 = vmatmul.msk.f32.gmra.mxu3 %vm142_vm1, %v20_v0 }
  0xbe   :  { %v6552_v36 = vpop.f32.mrf.mxu2  ;;  %5397 = vmatmul.msk.f32.gmra.mxu0 %vm142_vm1, %v6232_v40 }
  0xbf   :  { %8911 = vst [vmem:[#allocation15_spill] sm:$0xff] %v6552_v36 }
  0xc0   :  { %v6556_v42 = vpop.f32.mrf.mxu1  ;;  %v6558_v50 = vpop.f32.mrf.mxu3 }
  0xc1   :  { %8912 = vst [vmem:[#allocation16_spill] sm:$0xff] %v6558_v50  ;;  %v25_v50 = vld [vmem:[%s8898_s0 + $0x98] sm:$0xff] }
  0xc3   :  { %5079 = vmatmul.msk.f32.gmra.mxu1 %vm142_vm1, %v23_v51  ;;  %5140 = vmatmul.msk.f32.gmra.mxu2 %vm142_vm1, %v959_v58  ;;  %v6568_v59 = vpop.f32.mrf.mxu0 }
  0xc5   :  { %5269 = vmatmul.msk.f32.gmra.mxu3 %vm142_vm1, %v21_v7 }
  0xc6   :  { %v6571_v40 = vpop.f32.mrf.mxu2  ;;  %5398 = vmatmul.msk.f32.gmra.mxu0 %vm142_vm1, %v6254_v44 }
  0xc7   :  { %8913 = vst [vmem:[#allocation17_spill] sm:$0xff] %v6571_v40 }
  0xc8   :  { %v6575_v0 = vpop.f32.mrf.mxu1  ;;  %v6577_v2 = vpop.f32.mrf.mxu3 }
  0xc9   :  { %8914 = vst [vmem:[#allocation18_spill] sm:$0xff] %v6577_v2 }
  0xcb   :  { %5080 = vmatmul.msk.f32.gmra.mxu1 %vm142_vm1, %v24_v9  ;;  %5141 = vmatmul.msk.f32.gmra.mxu2 %vm142_vm1, %v960_v30  ;;  %v6587_v7 = vpop.f32.mrf.mxu0  ;;  %v961_v30 = vld [vmem:[%s8898_s0 + $0x6a] sm:$0xff] }
  0xcd   :  { %5270 = vmatmul.msk.f32.gmra.mxu3 %vm142_vm1, %v22_v27 }
  0xce   :  { %v6590_v44 = vpop.f32.mrf.mxu2  ;;  %5399 = vmatmul.msk.f32.gmra.mxu0 %vm142_vm1, %v6276_v48 }
  0xcf   :  { %8915 = vst [vmem:[#allocation19_spill] sm:$0xff] %v6590_v44  ;;  %v32_v44 = vld [vmem:[%s8898_s0 + $0xf0] sm:$0xff] }
  0xd0   :  { %v6594_v58 = vpop.f32.mrf.mxu1  ;;  %v6596_v2 = vpop.f32.mrf.mxu3 }
  0xd1   :  { %8916 = vst [vmem:[#allocation20_spill] sm:$0xff] %v6596_v2 }
  0xd3   :  { %5081 = vmatmul.msk.f32.gmra.mxu1 %vm142_vm1, %v25_v50  ;;  %5142 = vmatmul.msk.f32.gmra.mxu2 %vm142_vm1, %v961_v30  ;;  %v6606_v27 = vpop.f32.mrf.mxu0  ;;  %v962_v30 = vld [vmem:[%s8898_s0 + $0x7a] sm:$0xff] }
  0xd5   :  { %5271 = vmatmul.msk.f32.gmra.mxu3 %vm142_vm1, %v23_v51 }
  0xd6   :  { %v6609_v48 = vpop.f32.mrf.mxu2  ;;  %5400 = vmatmul.msk.f32.gmra.mxu0 %vm142_vm1, %v6298_v52 }
  0xd7   :  { %8917 = vst [vmem:[#allocation21_spill] sm:$0xff] %v6609_v48  ;;  %v31_v48 = vld [vmem:[%s8898_s0 + $0xe0] sm:$0xff] }
  0xd8   :  { %v6613_v2 = vpop.f32.mrf.mxu1  ;;  %v6615_v15 = vpop.f32.mrf.mxu3 }
  0xd9   :  { %8918 = vst [vmem:[#allocation22_spill] sm:$0xff] %v6615_v15 }
  0xdb   :  { %5082 = vmatmul.msk.f32.gmra.mxu1 %vm142_vm1, %v26_v6  ;;  %5143 = vmatmul.msk.f32.gmra.mxu2 %vm142_vm1, %v962_v30  ;;  %v6625_v51 = vpop.f32.mrf.mxu0  ;;  %v963_v30 = vld [vmem:[%s8898_s0 + $0x82] sm:$0xff] }
  0xdd   :  { %5272 = vmatmul.msk.f32.gmra.mxu3 %vm142_vm1, %v24_v9 }
  0xde   :  { %v6628_v52 = vpop.f32.mrf.mxu2  ;;  %5401 = vmatmul.msk.f32.gmra.mxu0 %vm142_vm1, %v6320_v56 }
  0xdf   :  { %8919 = vst [vmem:[#allocation23_spill] sm:$0xff] %v6628_v52  ;;  %v30_v52 = vld [vmem:[%s8898_s0 + $0xd8] sm:$0xff] }
  0xe0   :  { %v6632_v15 = vpop.f32.mrf.mxu1  ;;  %v6634_v63 = vpop.f32.mrf.mxu3 }
  0xe1   :  { %8920 = vst [vmem:[#allocation24_spill] sm:$0xff] %v6634_v63 }
  0xe3   :  { %5083 = vmatmul.msk.f32.gmra.mxu1 %vm142_vm1, %v27_v57  ;;  %5144 = vmatmul.msk.f32.gmra.mxu2 %vm142_vm1, %v963_v30  ;;  %v6644_v9 = vpop.f32.mrf.mxu0  ;;  %v964_v30 = vld [vmem:[%s8898_s0 + $0x92] sm:$0xff] }
  0xe5   :  { %5273 = vmatmul.msk.f32.gmra.mxu3 %vm142_vm1, %v25_v50 }
  0xe6   :  { %v6647_v56 = vpop.f32.mrf.mxu2  ;;  %5402 = vmatmul.msk.f32.gmra.mxu0 %vm142_vm1, %v6339_v60 }
  0xe7   :  { %8921 = vst [vmem:[#allocation25_spill] sm:$0xff] %v6647_v56  ;;  %v29_v56 = vld [vmem:[%s8898_s0 + $0xc8] sm:$0xff] }
  0xe8   :  { %v6651_v63 = vpop.f32.mrf.mxu3  ;;  %v760_v47 = vpop.f32.mrf.mxu1 }
  0xe9   :  { %8922 = vst [vmem:[#allocation26_spill] sm:$0xff] %v6651_v63 }
  0xeb   :  { %5084 = vmatmul.msk.f32.gmra.mxu1 %vm142_vm1, %v28_v38  ;;  %5145 = vmatmul.msk.f32.gmra.mxu2 %vm142_vm1, %v964_v30  ;;  %v6661_v50 = vpop.f32.mrf.mxu0  ;;  %v965_v30 = vld [vmem:[%s8898_s0 + $0x9a] sm:$0xff] }
  0xed   :  { %5274 = vmatmul.msk.f32.gmra.mxu3 %vm142_vm1, %v26_v6 }
  0xee   :  { %v6664_v60 = vpop.f32.mrf.mxu2  ;;  %5403 = vmatmul.msk.f32.gmra.mxu0 %vm142_vm1, %v6370_v4 }
  0xef   :  { %8923 = vst [vmem:[#allocation27_spill] sm:$0xff] %v6664_v60 }
  0xf0   :  { %v6668_v63 = vpop.f32.mrf.mxu3  ;;  %v763_v26 = vpop.f32.mrf.mxu1 }
  0xf1   :  { %8924 = vst [vmem:[#allocation28_spill] sm:$0xff] %v6668_v63 }
  0xf3   :  { %5085 = vmatmul.msk.f32.gmra.mxu1 %vm142_vm1, %v29_v56  ;;  %5146 = vmatmul.msk.f32.gmra.mxu2 %vm142_vm1, %v965_v30  ;;  %v6678_v6 = vpop.f32.mrf.mxu0  ;;  %v966_v30 = vld [vmem:[%s8898_s0 + $0xaa] sm:$0xff] }
  0xf5   :  { %5275 = vmatmul.msk.f32.gmra.mxu3 %vm142_vm1, %v27_v57 }
  0xf6   :  { %v6681_v4 = vpop.f32.mrf.mxu2  ;;  %5404 = vmatmul.msk.f32.gmra.mxu0 %vm142_vm1, %v6393_v10 }
  0xf7   :  { %8925 = vst [vmem:[#allocation29_spill] sm:$0xff] %v6681_v4 }
  0xf8   :  { %v6685_v63 = vpop.f32.mrf.mxu3  ;;  %v766_v60 = vpop.f32.mrf.mxu1 }
  0xf9   :  { %8926 = vst [vmem:[#allocation30_spill] sm:$0xff] %v6685_v63 }
  0xfb   :  { %5086 = vmatmul.msk.f32.gmra.mxu1 %vm142_vm1, %v30_v52  ;;  %5147 = vmatmul.msk.f32.gmra.mxu2 %vm142_vm1, %v966_v30  ;;  %v6695_v57 = vpop.f32.mrf.mxu0  ;;  %v967_v30 = vld [vmem:[%s8898_s0 + $0xb2] sm:$0xff] }
  0xfd   :  { %5276 = vmatmul.msk.f32.gmra.mxu3 %vm142_vm1, %v28_v38 }
  0xfe   :  { %v6698_v10 = vpop.f32.mrf.mxu2  ;;  %5405 = vmatmul.msk.f32.gmra.mxu0 %vm142_vm1, %v6416_v19 }
  0xff   :  { %8927 = vst [vmem:[#allocation31_spill] sm:$0xff] %v6698_v10 }
 0x100   :  { %v6702_v63 = vpop.f32.mrf.mxu3  ;;  %v769_v4 = vpop.f32.mrf.mxu1 }
 0x101   :  { %8928 = vst [vmem:[#allocation32_spill] sm:$0xff] %v6702_v63 }
 0x103   :  { %5087 = vmatmul.msk.f32.gmra.mxu1 %vm142_vm1, %v31_v48  ;;  %5148 = vmatmul.msk.f32.gmra.mxu2 %vm142_vm1, %v967_v30  ;;  %v6712_v38 = vpop.f32.mrf.mxu0  ;;  %v968_v30 = vld [vmem:[%s8898_s0 + $0xc2] sm:$0xff] }
 0x105   :  { %5277 = vmatmul.msk.f32.gmra.mxu3 %vm142_vm1, %v29_v56 }
 0x106   :  { %v6715_v19 = vpop.f32.mrf.mxu2  ;;  %5406 = vmatmul.msk.f32.gmra.mxu0 %vm142_vm1, %v6028_v1 }
 0x107   :  { %8929 = vst [vmem:[#allocation33_spill] sm:$0xff] %v6715_v19  ;;  %v761_v19 = vadd.f32 %v760_v47, %v6411_v18  ;;  %v764_v47 = vadd.f32 %v763_v26, %v6435_v31  ;;  %v767_v31 = vadd.f32 %v766_v60, %v6454_v43 }
 0x108   :  { %v6719_v63 = vpop.f32.mrf.mxu3  ;;  %v772_v10 = vpop.f32.mrf.mxu1 }
 0x109   :  { %8930 = vst [vmem:[#allocation34_spill] sm:$0xff] %v6719_v63 }
 0x10b   :  { %5088 = vmatmul.msk.f32.gmra.mxu1 %vm142_vm1, %v32_v44  ;;  %5149 = vmatmul.msk.f32.gmra.mxu2 %vm142_vm1, %v968_v30  ;;  %v2296_v56 = vpop.f32.mrf.mxu0  ;;  %v969_v30 = vld [vmem:[%s8898_s0 + $0xca] sm:$0xff] }
 0x10d   :  { %5278 = vmatmul.msk.f32.gmra.mxu3 %vm142_vm1, %v30_v52 }
 0x10e   :  { %v1229_v1 = vpop.f32.mrf.mxu2  ;;  %5407 = vmatmul.msk.f32.gmra.mxu0 %vm142_vm1, %v6063_v8 }
 0x10f   :  { %v1421_v63 = vadd.f32 %v1229_v1, %v761_v19 }
 0x110   :  { %v6733_v40 = vpop.f32.mrf.mxu1  ;;  %v1763_v36 = vpop.f32.mrf.mxu3 }
 0x111   :  { %v1955_v28 = vadd.f32 %v1763_v36, %v1421_v63  ;;  %v34_v63 = vld [vmem:[%s8898_s0 + $0x108] sm:$0xff] }
 0x113   :  { %v6741_v18 = vadd.f32 %v2296_v56, %v1955_v28  ;;  %5089 = vmatmul.msk.f32.gmra.mxu1 %vm142_vm1, %v33_v32  ;;  %5150 = vmatmul.msk.f32.gmra.mxu2 %vm142_vm1, %v969_v30  ;;  %v2299_v8 = vpop.f32.mrf.mxu0  ;;  %v970_v28 = vld [vmem:[%s8898_s0 + $0xda] sm:$0xff] }
 0x115   :  { %5279 = vmatmul.msk.f32.gmra.mxu3 %vm142_vm1, %v31_v48 }
 0x116   :  { %v1232_v52 = vpop.f32.mrf.mxu2  ;;  %5408 = vmatmul.msk.f32.gmra.mxu0 %vm142_vm1, %v6086_v13 }
 0x117   :  { %v1422_v19 = vadd.f32 %v1232_v52, %v764_v47 }
 0x118   :  { %v6749_v1 = vpop.f32.mrf.mxu1  ;;  %v1766_v24 = vpop.f32.mrf.mxu3 }
 0x119   :  { %v1956_v36 = vadd.f32 %v1766_v24, %v1422_v19  ;;  %v35_v24 = vld [vmem:[%s8898_s0 + $0x110] sm:$0xff] }
 0x11b   :  { %v6757_v26 = vadd.f32 %v2299_v8, %v1956_v36  ;;  %5090 = vmatmul.msk.f32.gmra.mxu1 %vm142_vm1, %v34_v63  ;;  %5151 = vmatmul.msk.f32.gmra.mxu2 %vm142_vm1, %v970_v28  ;;  %v2302_v13 = vpop.f32.mrf.mxu0  ;;  %v971_v8 = vld [vmem:[%s8898_s0 + $0xe2] sm:$0xff] }
 0x11d   :  { %5280 = vmatmul.msk.f32.gmra.mxu3 %vm142_vm1, %v32_v44  ;;  %v770_v44 = vadd.f32 %v769_v4, %v6473_v54 }
 0x11e   :  { %v1235_v48 = vpop.f32.mrf.mxu2  ;;  %5409 = vmatmul.msk.f32.gmra.mxu0 %vm142_vm1, %v6108_v17 }
 0x11f   :  { %v1423_v56 = vadd.f32 %v1235_v48, %v767_v31  ;;  %v972_v31 = vld [vmem:[%s8898_s0 + $0xf2] sm:$0xff] }
 0x120   :  { %v6765_v30 = vpop.f32.mrf.mxu1  ;;  %v1769_v47 = vpop.f32.mrf.mxu3 }
 0x121   :  { %v1957_v52 = vadd.f32 %v1769_v47, %v1423_v56 }
 0x123   :  { %v6773_v43 = vadd.f32 %v2302_v13, %v1957_v52  ;;  %5091 = vmatmul.msk.f32.gmra.mxu1 %vm142_vm1, %v35_v24  ;;  %5152 = vmatmul.msk.f32.gmra.mxu2 %vm142_vm1, %v971_v8  ;;  %v2305_v17 = vpop.f32.mrf.mxu0  ;;  %v36_v13 = vld [vmem:[%s8898_s0 + $0x120] sm:$0xff]  ;;  %v37_v52 = vld [vmem:[%s8898_s0 + $0x128] sm:$0xff] }
 0x125   :  { %5281 = vmatmul.msk.f32.gmra.mxu3 %vm142_vm1, %v33_v32  ;;  %v773_v32 = vadd.f32 %v772_v10, %v6492_v61  ;;  %v776_v10 = vadd.f32 %v6733_v40, %v6511_v3  ;;  %v779_v40 = vadd.f32 %v6749_v1, %v6530_v12  ;;  %v782_v1 = vadd.f32 %v6765_v30, %v6549_v39 }
 0x126   :  { %v1238_v60 = vpop.f32.mrf.mxu2  ;;  %5410 = vmatmul.msk.f32.gmra.mxu0 %vm142_vm1, %v6130_v21 }
 0x127   :  { %v1424_v19 = vadd.f32 %v1238_v60, %v770_v44 }
 0x128   :  { %v6781_v28 = vpop.f32.mrf.mxu1  ;;  %v1772_v36 = vpop.f32.mrf.mxu3 }
 0x129   :  { %v1958_v48 = vadd.f32 %v1772_v36, %v1424_v19  ;;  %v785_v30 = vadd.f32 %v6781_v28, %v6568_v59 }
 0x12b   :  { %v6789_v54 = vadd.f32 %v2305_v17, %v1958_v48  ;;  %5092 = vmatmul.msk.f32.gmra.mxu1 %vm142_vm1, %v36_v13  ;;  %5153 = vmatmul.msk.f32.gmra.mxu2 %vm142_vm1, %v972_v31  ;;  %v2308_v21 = vpop.f32.mrf.mxu0  ;;  %v973_v17 = vld [vmem:[%s8898_s0 + $0xfa] sm:$0xff]  ;;  %v974_v48 = vld [vmem:[%s8898_s0 + $0x10a] sm:$0xff] }
 0x12c   :  { %v38_v31 = vld [vmem:[%s8898_s0 + $0x138] sm:$0xff] }
 0x12d   :  { %5282 = vmatmul.msk.f32.gmra.mxu3 %vm142_vm1, %v34_v63 }
 0x12e   :  { %v1241_v4 = vpop.f32.mrf.mxu2  ;;  %5411 = vmatmul.msk.f32.gmra.mxu0 %vm142_vm1, %v6152_v25 }
 0x12f   :  { %v1425_v56 = vadd.f32 %v1241_v4, %v773_v32 }
 0x130   :  { %v6797_v47 = vpop.f32.mrf.mxu1  ;;  %v1775_v8 = vpop.f32.mrf.mxu3 }
 0x131   :  { %v1959_v44 = vadd.f32 %v1775_v8, %v1425_v56  ;;  %v39_v8 = vld [vmem:[%s8898_s0 + $0x140] sm:$0xff]  ;;  %v788_v28 = vadd.f32 %v6797_v47, %v6587_v7 }
 0x133   :  { %v6805_v61 = vadd.f32 %v2308_v21, %v1959_v44  ;;  %5093 = vmatmul.msk.f32.gmra.mxu1 %vm142_vm1, %v37_v52  ;;  %5154 = vmatmul.msk.f32.gmra.mxu2 %vm142_vm1, %v973_v17  ;;  %v2311_v25 = vpop.f32.mrf.mxu0  ;;  %v975_v17 = vld [vmem:[%s8898_s0 + $0x112] sm:$0xff] }
 0x135   :  { %5283 = vmatmul.msk.f32.gmra.mxu3 %vm142_vm1, %v35_v24 }
 0x136   :  { %v1244_v63 = vpop.f32.mrf.mxu2  ;;  %5412 = vmatmul.msk.f32.gmra.mxu0 %vm142_vm1, %v6174_v29 }
 0x137   :  { %v1426_v60 = vadd.f32 %v1244_v63, %v776_v10 }
 0x138   :  { %v6814_v19 = vpop.f32.mrf.mxu1  ;;  %v1778_v36 = vpop.f32.mrf.mxu3 }
 0x139   :  { %v1960_v21 = vadd.f32 %v1778_v36, %v1426_v60  ;;  %v40_v60 = vld [vmem:[%s8898_s0 + $0x150] sm:$0xff]  ;;  %v976_v36 = vld [vmem:[%s8898_s0 + $0x122] sm:$0xff]  ;;  %v791_v47 = vadd.f32 %v6814_v19, %v6606_v27 }
 0x13b   :  { %v6822_v3 = vadd.f32 %v2311_v25, %v1960_v21  ;;  %5094 = vmatmul.msk.f32.gmra.mxu1 %vm142_vm1, %v38_v31  ;;  %5155 = vmatmul.msk.f32.gmra.mxu2 %vm142_vm1, %v974_v48  ;;  %v2314_v29 = vpop.f32.mrf.mxu0 }
 0x13d   :  { %5284 = vmatmul.msk.f32.gmra.mxu3 %vm142_vm1, %v36_v13 }
 0x13e   :  { %v1247_v24 = vpop.f32.mrf.mxu2  ;;  %5413 = vmatmul.msk.f32.gmra.mxu0 %vm142_vm1, %v6196_v33 }
 0x13f   :  { %v1427_v32 = vadd.f32 %v1247_v24, %v779_v40  ;;  %v41_v24 = vld [vmem:[%s8898_s0 + $0x158] sm:$0xff] }
 0x140   :  { %v6831_v4 = vpop.f32.mrf.mxu1  ;;  %v1781_v56 = vpop.f32.mrf.mxu3 }
 0x141   :  { %v1961_v44 = vadd.f32 %v1781_v56, %v1427_v32  ;;  %v977_v32 = vld [vmem:[%s8898_s0 + $0x12a] sm:$0xff]  ;;  %v794_v19 = vadd.f32 %v6831_v4, %v6625_v51 }
 0x142   :  { %v5354_v4 = vld [vmem:[%s8898_s0 + $0x169] sm:$0xff] }
 0x143   :  { %v6839_v12 = vadd.f32 %v2314_v29, %v1961_v44  ;;  %5095 = vmatmul.msk.f32.gmra.mxu1 %vm142_vm1, %v39_v8  ;;  %5156 = vmatmul.msk.f32.gmra.mxu2 %vm142_vm1, %v975_v17  ;;  %v2317_v33 = vpop.f32.mrf.mxu0 }
 0x145   :  { %5285 = vmatmul.msk.f32.gmra.mxu3 %vm142_vm1, %v37_v52 }
 0x146   :  { %v1250_v13 = vpop.f32.mrf.mxu2  ;;  %5414 = vmatmul.msk.f32.gmra.mxu0 %vm142_vm1, %v6218_v37 }
 0x147   :  { %v1428_v25 = vadd.f32 %v1250_v13, %v782_v1  ;;  %v42_v1 = vld [vmem:[%s8898_s0 + $0x168] sm:$0xff]  ;;  %v978_v13 = vld [vmem:[%s8898_s0 + $0x13a] sm:$0xff] }
 0x148   :  { %v6848_v10 = vpop.f32.mrf.mxu1  ;;  %v1784_v63 = vpop.f32.mrf.mxu3 }
 0x149   :  { %v1962_v48 = vadd.f32 %v1784_v63, %v1428_v25 }
 0x14b   :  { %v6856_v39 = vadd.f32 %v2317_v33, %v1962_v48  ;;  %5096 = vmatmul.msk.f32.gmra.mxu1 %vm142_vm1, %v40_v60  ;;  %5157 = vmatmul.msk.f32.gmra.mxu2 %vm142_vm1, %v976_v36  ;;  %v2320_v37 = vpop.f32.mrf.mxu0 }
 0x14d   :  { %5286 = vmatmul.msk.f32.gmra.mxu3 %vm142_vm1, %v38_v31 }
 0x14e   :  { %v1253_v52 = vpop.f32.mrf.mxu2  ;;  %5415 = vmatmul.msk.f32.gmra.mxu0 %vm142_vm1, %v6240_v41 }
 0x14f   :  { %v1429_v21 = vadd.f32 %v1253_v52, %v785_v30  ;;  %v979_v30 = vld [vmem:[%s8898_s0 + $0x142] sm:$0xff] }
 0x150   :  { %v6865_v29 = vpop.f32.mrf.mxu1  ;;  %v1787_v40 = vpop.f32.mrf.mxu3 }
 0x151   :  { %v1963_v56 = vadd.f32 %v1787_v40, %v1429_v21 }
 0x153   :  { %v6873_v59 = vadd.f32 %v2320_v37, %v1963_v56  ;;  %5097 = vmatmul.msk.f32.gmra.mxu1 %vm142_vm1, %v41_v24  ;;  %5158 = vmatmul.msk.f32.gmra.mxu2 %vm142_vm1, %v977_v32  ;;  %v2323_v41 = vpop.f32.mrf.mxu0  ;;  %v43_v37 = vld [vmem:[%s8898_s0 + $0x170] sm:$0xff] }
 0x154   :  { %v44_v56 = vld [vmem:[%s8898_s0 + $0x1b0] sm:$0xff] }
 0x155   :  { %5287 = vmatmul.msk.f32.gmra.mxu3 %vm142_vm1, %v39_v8 }
 0x156   :  { %v1256_v31 = vpop.f32.mrf.mxu2  ;;  %5416 = vmatmul.msk.f32.gmra.mxu0 %vm142_vm1, %v6262_v45 }
 0x157   :  { %v1430_v17 = vadd.f32 %v1256_v31, %v788_v28 }
 0x158   :  { %v6882_v44 = vpop.f32.mrf.mxu1  ;;  %v1790_v33 = vpop.f32.mrf.mxu3 }
 0x159   :  { %v1964_v25 = vadd.f32 %v1790_v33, %v1430_v17 }
 0x15b   :  { %v6890_v7 = vadd.f32 %v2323_v41, %v1964_v25  ;;  %5098 = vmatmul.msk.f32.gmra.mxu1 %vm142_vm1, %v42_v1  ;;  %5159 = vmatmul.msk.f32.gmra.mxu2 %vm142_vm1, %v978_v13  ;;  %v2326_v45 = vpop.f32.mrf.mxu0  ;;  %v980_v41 = vld [vmem:[%s8898_s0 + $0x152] sm:$0xff] }
 0x15c   :  { %v45_v25 = vld [vmem:[%s8898_s0 + $0x1b8] sm:$0xff] }
 0x15d   :  { %5288 = vmatmul.msk.f32.gmra.mxu3 %vm142_vm1, %v40_v60 }
 0x15e   :  { %v1259_v8 = vpop.f32.mrf.mxu2  ;;  %5417 = vmatmul.msk.f32.gmra.mxu0 %vm142_vm1, %v6284_v49 }
 0x15f   :  { %v1431_v63 = vadd.f32 %v1259_v8, %v791_v47 }
 0x160   :  { %v6899_v36 = vpop.f32.mrf.mxu1  ;;  %v1793_v48 = vpop.f32.mrf.mxu3 }
 0x161   :  { %v1965_v52 = vadd.f32 %v1793_v48, %v1431_v63 }
 0x163   :  { %v6907_v27 = vadd.f32 %v2326_v45, %v1965_v52  ;;  %5099 = vmatmul.msk.f32.gmra.mxu1 %vm142_vm1, %v43_v37  ;;  %5160 = vmatmul.msk.f32.gmra.mxu2 %vm142_vm1, %v979_v30  ;;  %v2329_v49 = vpop.f32.mrf.mxu0  ;;  %v981_v45 = vld [vmem:[%s8898_s0 + $0x15a] sm:$0xff] }
 0x165   :  { %5289 = vmatmul.msk.f32.gmra.mxu3 %vm142_vm1, %v41_v24  ;;  %v797_v24 = vadd.f32 %v6848_v10, %v6644_v9  ;;  %v5355_v10 = vld [vmem:[%s8898_s0 + $0x171] sm:$0xff] }
 0x166   :  { %v1262_v60 = vpop.f32.mrf.mxu2  ;;  %5418 = vmatmul.msk.f32.gmra.mxu0 %vm142_vm1, %v6306_v53 }
 0x167   :  { %v1432_v21 = vadd.f32 %v1262_v60, %v794_v19  ;;  %v982_v19 = vld [vmem:[%s8898_s0 + $0x16a] sm:$0xff] }
 0x168   :  { %v6916_v40 = vpop.f32.mrf.mxu1  ;;  %v1796_v32 = vpop.f32.mrf.mxu3 }
 0x169   :  { %v1966_v28 = vadd.f32 %v1796_v32, %v1432_v21  ;;  %v5356_v21 = vld [vmem:[%s8898_s0 + $0x181] sm:$0xff]  ;;  %v803_v32 = vadd.f32 %v6882_v44, %v6678_v6 }
 0x16a   :  { %v5228_v6 = vld [vmem:[%s8898_s0 + $0x188] sm:$0xff] }
 0x16b   :  { %v6924_v51 = vadd.f32 %v2329_v49, %v1966_v28  ;;  %5100 = vmatmul.msk.f32.gmra.mxu1 %vm142_vm1, %v44_v56  ;;  %5161 = vmatmul.msk.f32.gmra.mxu2 %vm142_vm1, %v980_v41  ;;  %v2332_v53 = vpop.f32.mrf.mxu0  ;;  %v46_v49 = vld [vmem:[%s8898_s0 + $0x1c8] sm:$0xff] }
 0x16d   :  { %5290 = vmatmul.msk.f32.gmra.mxu3 %vm142_vm1, %v42_v1  ;;  %v800_v1 = vadd.f32 %v6865_v29, %v6661_v50  ;;  %v5227_v50 = vld [vmem:[%s8898_s0 + $0x180] sm:$0xff] }
 0x16e   :  { %v1265_v31 = vpop.f32.mrf.mxu2  ;;  %5419 = vmatmul.msk.f32.gmra.mxu0 %vm142_vm1, %v5354_v4  ;;  %v47_v4 = vld [vmem:[%s8898_s0 + $0x1d0] sm:$0xff] }
 0x16f   :  { %v1433_v17 = vadd.f32 %v1265_v31, %v797_v24  ;;  %v983_v24 = vld [vmem:[%s8898_s0 + $0x172] sm:$0xff] }
 0x170   :  { %v6935_v33 = vpop.f32.mrf.mxu1  ;;  %v1799_v13 = vpop.f32.mrf.mxu3 }
 0x171   :  { %v1967_v47 = vadd.f32 %v1799_v13, %v1433_v17  ;;  %v5357_v13 = vld [vmem:[%s8898_s0 + $0x189] sm:$0xff] }
 0x173   :  { %v6943_v8 = vadd.f32 %v2332_v53, %v1967_v47  ;;  %5101 = vmatmul.msk.f32.gmra.mxu1 %vm142_vm1, %v45_v25  ;;  %5162 = vmatmul.msk.f32.gmra.mxu2 %vm142_vm1, %v981_v45  ;;  %v2335_v9 = vpop.f32.mrf.mxu0  ;;  %v806_v25 = vadd.f32 %v6899_v36, %v6695_v57  ;;  %v5358_v36 = vld [vmem:[%s8898_s0 + $0x1c9] sm:$0xff] }
 0x175   :  { %5291 = vmatmul.msk.f32.gmra.mxu3 %vm142_vm1, %v43_v37 }
 0x176   :  { %v1268_v63 = vpop.f32.mrf.mxu2  ;;  %5420 = vmatmul.msk.f32.gmra.mxu0 %vm142_vm1, %v5355_v10 }
 0x177   :  { %v1434_v48 = vadd.f32 %v1268_v63, %v800_v1  ;;  %v48_v1 = vld [vmem:[%s8898_s0 + $0x1e0] sm:$0xff]  ;;  %v984_v63 = vld [vmem:[%s8898_s0 + $0x1b2] sm:$0xff] }
 0x178   :  { %v6954_v30 = vpop.f32.mrf.mxu1  ;;  %v1802_v52 = vpop.f32.mrf.mxu3 }
 0x179   :  { %v1968_v60 = vadd.f32 %v1802_v52, %v1434_v48 }
 0x17b   :  { %v6965_v29 = vadd.f32 %v2335_v9, %v1968_v60  ;;  %5102 = vmatmul.msk.f32.gmra.mxu1 %vm142_vm1, %v46_v49  ;;  %5163 = vmatmul.msk.f32.gmra.mxu2 %vm142_vm1, %v982_v19  ;;  %v2338_v37 = vpop.f32.mrf.mxu0  ;;  %v809_v19 = vadd.f32 %v6916_v40, %v6712_v38  ;;  %v5359_v40 = vld [vmem:[%s8898_s0 + $0x1d1] sm:$0xff] }
 0x17d   :  { %5292 = vmatmul.msk.f32.gmra.mxu3 %vm142_vm1, %v5227_v50 }
 0x17e   :  { %v1271_v56 = vpop.f32.mrf.mxu2  ;;  %5421 = vmatmul.msk.f32.gmra.mxu0 %vm142_vm1, %v5356_v21 }
 0x17f   :  { %v1435_v41 = vadd.f32 %v1271_v56, %v803_v32  ;;  %v49_v32 = vld [vmem:[%s8898_s0 + $0x1e8] sm:$0xff]  ;;  %v985_v56 = vld [vmem:[%s8898_s0 + $0x1ba] sm:$0xff] }
 0x180   :  { %v6976_v28 = vpop.f32.mrf.mxu1  ;;  %v1805_v53 = vpop.f32.mrf.mxu3 }
 0x181   :  { %v1969_v31 = vadd.f32 %v1805_v53, %v1435_v41 }
 0x183   :  { %v6987_v44 = vadd.f32 %v2338_v37, %v1969_v31  ;;  %5103 = vmatmul.msk.f32.gmra.mxu1 %vm142_vm1, %v47_v4  ;;  %5164 = vmatmul.msk.f32.gmra.mxu2 %vm142_vm1, %v983_v24  ;;  %v2341_v17 = vpop.f32.mrf.mxu0 }
 0x185   :  { %5293 = vmatmul.msk.f32.gmra.mxu3 %vm142_vm1, %v5228_v6 }
 0x186   :  { %v1274_v45 = vpop.f32.mrf.mxu2  ;;  %5422 = vmatmul.msk.f32.gmra.mxu0 %vm142_vm1, %v5357_v13  ;;  %v50_v13 = vld [vmem:[%s8898_s0 + $0x1f8] sm:$0xff] }
 0x187   :  { %v1436_v47 = vadd.f32 %v1274_v45, %v806_v25  ;;  %v986_v25 = vld [vmem:[%s8898_s0 + $0x1ca] sm:$0xff] }
 0x188   :  { %v6998_v9 = vpop.f32.mrf.mxu1  ;;  %v1808_v10 = vpop.f32.mrf.mxu3 }
 0x189   :  { %v1970_v48 = vadd.f32 %v1808_v10, %v1436_v47 }
 0x18b   :  { %v7006_v52 = vadd.f32 %v2341_v17, %v1970_v48  ;;  %5104 = vmatmul.msk.f32.gmra.mxu1 %vm142_vm1, %v48_v1  ;;  %5165 = vmatmul.msk.f32.gmra.mxu2 %vm142_vm1, %v984_v63  ;;  %v2344_v57 = vpop.f32.mrf.mxu0 }
 0x18d   :  { %5294 = vmatmul.msk.f32.gmra.mxu3 %vm142_vm1, %v46_v49  ;;  %v812_v49 = vadd.f32 %v6935_v33, %v6398_v11  ;;  %v5360_v33 = vld [vmem:[%s8898_s0 + $0x1e1] sm:$0xff] }
 0x18e   :  { %v1277_v60 = vpop.f32.mrf.mxu2  ;;  %5423 = vmatmul.msk.f32.gmra.mxu0 %vm142_vm1, %v5358_v36  ;;  %v51_v36 = vld [vmem:[%s8898_s0 + $0x200] sm:$0xff] }
 0x18f   :  { %v1437_v50 = vadd.f32 %v1277_v60, %v809_v19  ;;  %v987_v19 = vld [vmem:[%s8898_s0 + $0x1d2] sm:$0xff] }
 0x190   :  { %v7017_v37 = vpop.f32.mrf.mxu1  ;;  %v1811_v21 = vpop.f32.mrf.mxu3 }
 0x191   :  { %v1971_v41 = vadd.f32 %v1811_v21, %v1437_v50 }
 0x193   :  { %v7025_v53 = vadd.f32 %v2344_v57, %v1971_v41  ;;  %5105 = vmatmul.msk.f32.gmra.mxu1 %vm142_vm1, %v49_v32  ;;  %5166 = vmatmul.msk.f32.gmra.mxu2 %vm142_vm1, %v985_v56  ;;  %v2347_v38 = vpop.f32.mrf.mxu0 }
 0x195   :  { %5295 = vmatmul.msk.f32.gmra.mxu3 %vm142_vm1, %v47_v4  ;;  %v815_v4 = vadd.f32 %v6954_v30, %v6423_v23  ;;  %v5361_v30 = vld [vmem:[%s8898_s0 + $0x1e9] sm:$0xff] }
 0x196   :  { %v1280_v24 = vpop.f32.mrf.mxu2  ;;  %5424 = vmatmul.msk.f32.gmra.mxu0 %vm142_vm1, %v5359_v40  ;;  %v52_v40 = vld [vmem:[%s8898_s0 + $0x210] sm:$0xff] }
 0x197   :  { %v1438_v31 = vadd.f32 %v1280_v24, %v812_v49  ;;  %v988_v49 = vld [vmem:[%s8898_s0 + $0x1e2] sm:$0xff] }
 0x198   :  { %v7036_v6 = vpop.f32.mrf.mxu1  ;;  %v1814_v17 = vpop.f32.mrf.mxu3 }
 0x199   :  { %v1972_v45 = vadd.f32 %v1814_v17, %v1438_v31 }
 0x19b   :  { %v7044_v47 = vadd.f32 %v2347_v38, %v1972_v45  ;;  %5106 = vmatmul.msk.f32.gmra.mxu1 %vm142_vm1, %v50_v13  ;;  %5167 = vmatmul.msk.f32.gmra.mxu2 %vm142_vm1, %v986_v25  ;;  %v2350_v11 = vpop.f32.mrf.mxu0 }
 0x19d   :  { %5296 = vmatmul.msk.f32.gmra.mxu3 %vm142_vm1, %v48_v1  ;;  %v818_v1 = vadd.f32 %v6976_v28, %v6442_v35  ;;  %v5362_v28 = vld [vmem:[%s8898_s0 + $0x1f9] sm:$0xff] }
 0x19e   :  { %v1283_v10 = vpop.f32.mrf.mxu2  ;;  %5425 = vmatmul.msk.f32.gmra.mxu0 %vm142_vm1, %v5360_v33  ;;  %v53_v33 = vld [vmem:[%s8898_s0 + $0x218] sm:$0xff] }
 0x19f   :  { %v1439_v63 = vadd.f32 %v1283_v10, %v815_v4  ;;  %v989_v4 = vld [vmem:[%s8898_s0 + $0x1ea] sm:$0xff] }
 0x1a0   :  { %v7055_v48 = vpop.f32.mrf.mxu1  ;;  %v1817_v57 = vpop.f32.mrf.mxu3 }
 0x1a1   :  { %v1973_v60 = vadd.f32 %v1817_v57, %v1439_v63 }
 0x1a3   :  { %v7063_v50 = vadd.f32 %v2350_v11, %v1973_v60  ;;  %5107 = vmatmul.msk.f32.gmra.mxu1 %vm142_vm1, %v51_v36  ;;  %5168 = vmatmul.msk.f32.gmra.mxu2 %vm142_vm1, %v987_v19  ;;  %v2353_v23 = vpop.f32.mrf.mxu0 }
 0x1a5   :  { %5297 = vmatmul.msk.f32.gmra.mxu3 %vm142_vm1, %v49_v32  ;;  %v821_v32 = vadd.f32 %v6998_v9, %v6461_v46  ;;  %v5363_v9 = vld [vmem:[%s8898_s0 + $0x201] sm:$0xff] }
 0x1a6   :  { %v1286_v21 = vpop.f32.mrf.mxu2  ;;  %5426 = vmatmul.msk.f32.gmra.mxu0 %vm142_vm1, %v5361_v30  ;;  %v54_v30 = vld [vmem:[%s8898_s0 + $0x228] sm:$0xff] }
 0x1a7   :  { %v1440_v56 = vadd.f32 %v1286_v21, %v818_v1  ;;  %v990_v1 = vld [vmem:[%s8898_s0 + $0x1fa] sm:$0xff] }
 0x1a8   :  { %v7074_v41 = vpop.f32.mrf.mxu1  ;;  %v1820_v38 = vpop.f32.mrf.mxu3 }
 0x1a9   :  { %v1974_v24 = vadd.f32 %v1820_v38, %v1440_v56 }
 0x1ab   :  { %v7082_v31 = vadd.f32 %v2353_v23, %v1974_v24  ;;  %5108 = vmatmul.msk.f32.gmra.mxu1 %vm142_vm1, %v52_v40  ;;  %5169 = vmatmul.msk.f32.gmra.mxu2 %vm142_vm1, %v988_v49  ;;  %v2356_v35 = vpop.f32.mrf.mxu0 }
 0x1ad   :  { %5298 = vmatmul.msk.f32.gmra.mxu3 %vm142_vm1, %v50_v13  ;;  %v824_v13 = vadd.f32 %v7017_v37, %v6480_v55  ;;  %v5364_v37 = vld [vmem:[%s8898_s0 + $0x211] sm:$0xff] }
 0x1ae   :  { %v1289_v17 = vpop.f32.mrf.mxu2  ;;  %5427 = vmatmul.msk.f32.gmra.mxu0 %vm142_vm1, %v5362_v28  ;;  %v55_v28 = vld [vmem:[%s8898_s0 + $0x230] sm:$0xff] }
 0x1af   :  { %v1441_v25 = vadd.f32 %v1289_v17, %v821_v32  ;;  %v991_v32 = vld [vmem:[%s8898_s0 + $0x202] sm:$0xff] }
 0x1b0   :  { %v7093_v45 = vpop.f32.mrf.mxu1  ;;  %v1823_v11 = vpop.f32.mrf.mxu3 }
 0x1b1   :  { %v1975_v10 = vadd.f32 %v1823_v11, %v1441_v25 }
 0x1b3   :  { %v7101_v63 = vadd.f32 %v2356_v35, %v1975_v10  ;;  %5109 = vmatmul.msk.f32.gmra.mxu1 %vm142_vm1, %v53_v33  ;;  %5170 = vmatmul.msk.f32.gmra.mxu2 %vm142_vm1, %v989_v4  ;;  %v2359_v46 = vpop.f32.mrf.mxu0 }
 0x1b5   :  { %5299 = vmatmul.msk.f32.gmra.mxu3 %vm142_vm1, %v51_v36  ;;  %v827_v36 = vadd.f32 %v7036_v6, %v6499_v62  ;;  %v5365_v6 = vld [vmem:[%s8898_s0 + $0x219] sm:$0xff] }
 0x1b6   :  { %v1292_v57 = vpop.f32.mrf.mxu2  ;;  %5428 = vmatmul.msk.f32.gmra.mxu0 %vm142_vm1, %v5363_v9  ;;  %v56_v9 = vld [vmem:[%s8898_s0 + $0x240] sm:$0xff] }
 0x1b7   :  { %v1442_v19 = vadd.f32 %v1292_v57, %v824_v13  ;;  %v992_v13 = vld [vmem:[%s8898_s0 + $0x212] sm:$0xff] }
 0x1b8   :  { %v7112_v60 = vpop.f32.mrf.mxu1  ;;  %v1826_v23 = vpop.f32.mrf.mxu3 }
 0x1b9   :  { %v1976_v21 = vadd.f32 %v1826_v23, %v1442_v19 }
 0x1bb   :  { %v7120_v56 = vadd.f32 %v2359_v46, %v1976_v21  ;;  %5110 = vmatmul.msk.f32.gmra.mxu1 %vm142_vm1, %v54_v30  ;;  %5171 = vmatmul.msk.f32.gmra.mxu2 %vm142_vm1, %v990_v1  ;;  %v2362_v55 = vpop.f32.mrf.mxu0 }
 0x1bd   :  { %5300 = vmatmul.msk.f32.gmra.mxu3 %vm142_vm1, %v52_v40  ;;  %v830_v40 = vadd.f32 %v7055_v48, %v6518_v5  ;;  %v5366_v48 = vld [vmem:[%s8898_s0 + $0x229] sm:$0xff] }
 0x1be   :  { %v1295_v38 = vpop.f32.mrf.mxu2  ;;  %5429 = vmatmul.msk.f32.gmra.mxu0 %vm142_vm1, %v5364_v37  ;;  %v57_v37 = vld [vmem:[%s8898_s0 + $0x248] sm:$0xff] }
 0x1bf   :  { %v1443_v49 = vadd.f32 %v1295_v38, %v827_v36  ;;  %v993_v36 = vld [vmem:[%s8898_s0 + $0x21a] sm:$0xff] }
 0x1c0   :  { %v7131_v24 = vpop.f32.mrf.mxu1  ;;  %v1829_v35 = vpop.f32.mrf.mxu3 }
 0x1c1   :  { %v1977_v17 = vadd.f32 %v1829_v35, %v1443_v49 }
 0x1c3   :  { %v7139_v25 = vadd.f32 %v2362_v55, %v1977_v17  ;;  %5111 = vmatmul.msk.f32.gmra.mxu1 %vm142_vm1, %v55_v28  ;;  %5172 = vmatmul.msk.f32.gmra.mxu2 %vm142_vm1, %v991_v32  ;;  %v2365_v62 = vpop.f32.mrf.mxu0 }
 0x1c5   :  { %5301 = vmatmul.msk.f32.gmra.mxu3 %vm142_vm1, %v53_v33  ;;  %v833_v33 = vadd.f32 %v7074_v41, %v6537_v14  ;;  %v5367_v41 = vld [vmem:[%s8898_s0 + $0x231] sm:$0xff] }
 0x1c6   :  { %v1298_v11 = vpop.f32.mrf.mxu2  ;;  %5430 = vmatmul.msk.f32.gmra.mxu0 %vm142_vm1, %v5365_v6  ;;  %v58_v6 = vld [vmem:[%s8898_s0 + $0x258] sm:$0xff] }
 0x1c7   :  { %v1444_v4 = vadd.f32 %v1298_v11, %v830_v40  ;;  %v994_v40 = vld [vmem:[%s8898_s0 + $0x22a] sm:$0xff] }
 0x1c8   :  { %v7150_v10 = vpop.f32.mrf.mxu1  ;;  %v1832_v46 = vpop.f32.mrf.mxu3 }
 0x1c9   :  { %v1978_v57 = vadd.f32 %v1832_v46, %v1444_v4 }
 0x1cb   :  { %v7158_v19 = vadd.f32 %v2365_v62, %v1978_v57  ;;  %5112 = vmatmul.msk.f32.gmra.mxu1 %vm142_vm1, %v56_v9  ;;  %5173 = vmatmul.msk.f32.gmra.mxu2 %vm142_vm1, %v992_v13  ;;  %v2368_v5 = vpop.f32.mrf.mxu0 }
 0x1cd   :  { %5302 = vmatmul.msk.f32.gmra.mxu3 %vm142_vm1, %v54_v30  ;;  %v836_v30 = vadd.f32 %v7093_v45, %v6556_v42  ;;  %v5368_v45 = vld [vmem:[%s8898_s0 + $0x241] sm:$0xff] }
 0x1ce   :  { %v1301_v23 = vpop.f32.mrf.mxu2  ;;  %5431 = vmatmul.msk.f32.gmra.mxu0 %vm142_vm1, %v5366_v48  ;;  %v59_v48 = vld [vmem:[%s8898_s0 + $0x260] sm:$0xff] }
 0x1cf   :  { %v1445_v1 = vadd.f32 %v1301_v23, %v833_v33  ;;  %v995_v33 = vld [vmem:[%s8898_s0 + $0x232] sm:$0xff] }
 0x1d0   :  { %v7169_v21 = vpop.f32.mrf.mxu1  ;;  %v1835_v55 = vpop.f32.mrf.mxu3 }
 0x1d1   :  { %v1979_v38 = vadd.f32 %v1835_v55, %v1445_v1 }
 0x1d3   :  { %v7177_v49 = vadd.f32 %v2368_v5, %v1979_v38  ;;  %5113 = vmatmul.msk.f32.gmra.mxu1 %vm142_vm1, %v57_v37  ;;  %5174 = vmatmul.msk.f32.gmra.mxu2 %vm142_vm1, %v993_v36  ;;  %v2371_v14 = vpop.f32.mrf.mxu0 }
 0x1d5   :  { %5303 = vmatmul.msk.f32.gmra.mxu3 %vm142_vm1, %v55_v28  ;;  %v839_v28 = vadd.f32 %v7112_v60, %v6575_v0  ;;  %v5369_v60 = vld [vmem:[%s8898_s0 + $0x249] sm:$0xff] }
 0x1d6   :  { %v1304_v35 = vpop.f32.mrf.mxu2  ;;  %5432 = vmatmul.msk.f32.gmra.mxu0 %vm142_vm1, %v5367_v41  ;;  %v60_v41 = vld [vmem:[%s8898_s0 + $0x270] sm:$0xff] }
 0x1d7   :  { %v1446_v32 = vadd.f32 %v1304_v35, %v836_v30  ;;  %v996_v30 = vld [vmem:[%s8898_s0 + $0x242] sm:$0xff] }
 0x1d8   :  { %v7188_v17 = vpop.f32.mrf.mxu1  ;;  %v1838_v62 = vpop.f32.mrf.mxu3 }
 0x1d9   :  { %v1980_v11 = vadd.f32 %v1838_v62, %v1446_v32 }
 0x1db   :  { %v7196_v4 = vadd.f32 %v2371_v14, %v1980_v11  ;;  %5114 = vmatmul.msk.f32.gmra.mxu1 %vm142_vm1, %v58_v6  ;;  %5175 = vmatmul.msk.f32.gmra.mxu2 %vm142_vm1, %v994_v40  ;;  %v2374_v42 = vpop.f32.mrf.mxu0 }
 0x1dd   :  { %5304 = vmatmul.msk.f32.gmra.mxu3 %vm142_vm1, %v56_v9  ;;  %v842_v9 = vadd.f32 %v7131_v24, %v6594_v58  ;;  %v5370_v24 = vld [vmem:[%s8898_s0 + $0x259] sm:$0xff] }
 0x1de   :  { %v1307_v46 = vpop.f32.mrf.mxu2  ;;  %5433 = vmatmul.msk.f32.gmra.mxu0 %vm142_vm1, %v5368_v45  ;;  %v61_v45 = vld [vmem:[%s8898_s0 + $0x278] sm:$0xff] }
 0x1df   :  { %v1447_v13 = vadd.f32 %v1307_v46, %v839_v28  ;;  %v997_v28 = vld [vmem:[%s8898_s0 + $0x24a] sm:$0xff] }
 0x1e0   :  { %v7207_v57 = vpop.f32.mrf.mxu1  ;;  %v1841_v5 = vpop.f32.mrf.mxu3 }
 0x1e1   :  { %v1981_v23 = vadd.f32 %v1841_v5, %v1447_v13 }
 0x1e3   :  { %v7215_v1 = vadd.f32 %v2374_v42, %v1981_v23  ;;  %5115 = vmatmul.msk.f32.gmra.mxu1 %vm142_vm1, %v59_v48  ;;  %5176 = vmatmul.msk.f32.gmra.mxu2 %vm142_vm1, %v995_v33  ;;  %v2377_v0 = vpop.f32.mrf.mxu0 }
 0x1e5   :  { %5305 = vmatmul.msk.f32.gmra.mxu3 %vm142_vm1, %v57_v37  ;;  %v845_v37 = vadd.f32 %v7150_v10, %v6613_v2  ;;  %v5371_v10 = vld [vmem:[%s8898_s0 + $0x261] sm:$0xff] }
 0x1e6   :  { %v1310_v55 = vpop.f32.mrf.mxu2  ;;  %5434 = vmatmul.msk.f32.gmra.mxu0 %vm142_vm1, %v5369_v60  ;;  %v62_v60 = vld [vmem:[%s8898_s0 + $0x288] sm:$0xff] }
 0x1e7   :  { %v1448_v36 = vadd.f32 %v1310_v55, %v842_v9  ;;  %v998_v9 = vld [vmem:[%s8898_s0 + $0x25a] sm:$0xff] }
 0x1e8   :  { %v7226_v38 = vpop.f32.mrf.mxu1  ;;  %v1844_v14 = vpop.f32.mrf.mxu3 }
 0x1e9   :  { %v1982_v35 = vadd.f32 %v1844_v14, %v1448_v36 }
 0x1eb   :  { %v7234_v32 = vadd.f32 %v2377_v0, %v1982_v35  ;;  %5116 = vmatmul.msk.f32.gmra.mxu1 %vm142_vm1, %v60_v41  ;;  %5177 = vmatmul.msk.f32.gmra.mxu2 %vm142_vm1, %v996_v30  ;;  %v2380_v58 = vpop.f32.mrf.mxu0 }
 0x1ed   :  { %5306 = vmatmul.msk.f32.gmra.mxu3 %vm142_vm1, %v58_v6  ;;  %v848_v6 = vadd.f32 %v7169_v21, %v6632_v15  ;;  %v5372_v21 = vld [vmem:[%s8898_s0 + $0x271] sm:$0xff] }
 0x1ee   :  { %v1313_v62 = vpop.f32.mrf.mxu2  ;;  %5435 = vmatmul.msk.f32.gmra.mxu0 %vm142_vm1, %v5370_v24  ;;  %v63_v24 = vld [vmem:[%s8898_s0 + $0x290] sm:$0xff] }
 0x1ef   :  { %v1449_v40 = vadd.f32 %v1313_v62, %v845_v37  ;;  %v999_v37 = vld [vmem:[%s8898_s0 + $0x262] sm:$0xff] }
 0x1f0   :  { %v7245_v11 = vpop.f32.mrf.mxu1  ;;  %v1847_v42 = vpop.f32.mrf.mxu3 }
 0x1f1   :  { %v1983_v46 = vadd.f32 %v1847_v42, %v1449_v40 }
 0x1f3   :  { %v7253_v13 = vadd.f32 %v2380_v58, %v1983_v46  ;;  %5117 = vmatmul.msk.f32.gmra.mxu1 %vm142_vm1, %v61_v45  ;;  %5178 = vmatmul.msk.f32.gmra.mxu2 %vm142_vm1, %v997_v28  ;;  %v2383_v2 = vpop.f32.mrf.mxu0 }
 0x1f5   :  { %5307 = vmatmul.msk.f32.gmra.mxu3 %vm142_vm1, %v59_v48  ;;  %v851_v48 = vadd.f32 %v7188_v17, %v6419_v22  ;;  %v5373_v17 = vld [vmem:[%s8898_s0 + $0x279] sm:$0xff] }
 0x1f6   :  { %v1316_v5 = vpop.f32.mrf.mxu2  ;;  %5436 = vmatmul.msk.f32.gmra.mxu0 %vm142_vm1, %v5371_v10  ;;  %v64_v10 = vld [vmem:[%s8898_s0 + $0x2a0] sm:$0xff] }
 0x1f7   :  { %v1450_v33 = vadd.f32 %v1316_v5, %v848_v6  ;;  %v1000_v6 = vld [vmem:[%s8898_s0 + $0x272] sm:$0xff] }
 0x1f8   :  { %v7264_v23 = vpop.f32.mrf.mxu1  ;;  %v1850_v0 = vpop.f32.mrf.mxu3 }
 0x1f9   :  { %v1984_v55 = vadd.f32 %v1850_v0, %v1450_v33 }
 0x1fb   :  { %v7272_v36 = vadd.f32 %v2383_v2, %v1984_v55  ;;  %5118 = vmatmul.msk.f32.gmra.mxu1 %vm142_vm1, %v62_v60  ;;  %5179 = vmatmul.msk.f32.gmra.mxu2 %vm142_vm1, %v998_v9  ;;  %v2386_v15 = vpop.f32.mrf.mxu0 }
 0x1fd   :  { %5308 = vmatmul.msk.f32.gmra.mxu3 %vm142_vm1, %v60_v41  ;;  %v854_v41 = vadd.f32 %v7207_v57, %v6438_v34  ;;  %v5374_v57 = vld [vmem:[%s8898_s0 + $0x289] sm:$0xff] }
 0x1fe   :  { %v1319_v14 = vpop.f32.mrf.mxu2  ;;  %5437 = vmatmul.msk.f32.gmra.mxu0 %vm142_vm1, %v5372_v21  ;;  %v65_v21 = vld [vmem:[%s8898_s0 + $0x2a8] sm:$0xff] }
 0x1ff   :  { %v1451_v30 = vadd.f32 %v1319_v14, %v851_v48  ;;  %v1001_v48 = vld [vmem:[%s8898_s0 + $0x27a] sm:$0xff] }
 0x200   :  { %v7283_v35 = vpop.f32.mrf.mxu1  ;;  %v1853_v58 = vpop.f32.mrf.mxu3 }
 0x201   :  { %v1985_v62 = vadd.f32 %v1853_v58, %v1451_v30 }
 0x203   :  { %v7291_v40 = vadd.f32 %v2386_v15, %v1985_v62  ;;  %5119 = vmatmul.msk.f32.gmra.mxu1 %vm142_vm1, %v63_v24  ;;  %5180 = vmatmul.msk.f32.gmra.mxu2 %vm142_vm1, %v999_v37  ;;  %v2389_v22 = vpop.f32.mrf.mxu0 }
 0x205   :  { %5309 = vmatmul.msk.f32.gmra.mxu3 %vm142_vm1, %v61_v45  ;;  %v857_v45 = vadd.f32 %v7226_v38, %v6457_v16  ;;  %v5375_v38 = vld [vmem:[%s8898_s0 + $0x291] sm:$0xff] }
 0x206   :  { %v1322_v42 = vpop.f32.mrf.mxu2  ;;  %5438 = vmatmul.msk.f32.gmra.mxu0 %vm142_vm1, %v5373_v17  ;;  %v66_v17 = vld [vmem:[%s8898_s0 + $0x2b8] sm:$0xff] }
 0x207   :  { %v1452_v28 = vadd.f32 %v1322_v42, %v854_v41  ;;  %v1002_v41 = vld [vmem:[%s8898_s0 + $0x28a] sm:$0xff] }
 0x208   :  { %v7302_v46 = vpop.f32.mrf.mxu1  ;;  %v1856_v2 = vpop.f32.mrf.mxu3 }
 0x209   :  { %v1986_v5 = vadd.f32 %v1856_v2, %v1452_v28 }
 0x20b   :  { %v7310_v33 = vadd.f32 %v2389_v22, %v1986_v5  ;;  %5120 = vmatmul.msk.f32.gmra.mxu1 %vm142_vm1, %v64_v10  ;;  %5181 = vmatmul.msk.f32.gmra.mxu2 %vm142_vm1, %v1000_v6  ;;  %v2392_v34 = vpop.f32.mrf.mxu0 }
 0x20d   :  { %5310 = vmatmul.msk.f32.gmra.mxu3 %vm142_vm1, %v62_v60  ;;  %v860_v60 = vadd.f32 %v7245_v11, %v6476_v20  ;;  %v5376_v11 = vld [vmem:[%s8898_s0 + $0x2a1] sm:$0xff] }
 0x20e   :  { %v1325_v0 = vpop.f32.mrf.mxu2  ;;  %5439 = vmatmul.msk.f32.gmra.mxu0 %vm142_vm1, %v5374_v57 }
 0x20f   :  { %v1453_v9 = vadd.f32 %v1325_v0, %v857_v45  ;;  %v67_v45 = vld [vmem:[%s8898_s0 + $0x2c0] sm:$0xff]  ;;  %v1003_v0 = vld [vmem:[%s8898_s0 + $0x292] sm:$0xff] }
 0x210   :  { %v7321_v55 = vpop.f32.mrf.mxu1  ;;  %v1859_v15 = vpop.f32.mrf.mxu3 }
 0x211   :  { %v1987_v14 = vadd.f32 %v1859_v15, %v1453_v9 }
 0x213   :  { %v7329_v30 = vadd.f32 %v2392_v34, %v1987_v14  ;;  %5121 = vmatmul.msk.f32.gmra.mxu1 %vm142_vm1, %v65_v21  ;;  %5182 = vmatmul.msk.f32.gmra.mxu2 %vm142_vm1, %v1001_v48  ;;  %v2395_v16 = vpop.f32.mrf.mxu0  ;;  %v8932_v48 = vld [vmem:[#allocation11_spill] sm:$0xff] }
 0x214   :  { %v866_v14 = vadd.f32 %v7283_v35, %v8932_v48 }
 0x215   :  { %5311 = vmatmul.msk.f32.gmra.mxu3 %vm142_vm1, %v63_v24  ;;  %v8931_v24 = vld [vmem:[#allocation9_spill] sm:$0xff] }
 0x216   :  { %v1328_v58 = vpop.f32.mrf.mxu2  ;;  %5440 = vmatmul.msk.f32.gmra.mxu0 %vm142_vm1, %v5375_v38  ;;  %v863_v2 = vadd.f32 %v7264_v23, %v8931_v24 }
 0x217   :  { %v1454_v37 = vadd.f32 %v1328_v58, %v860_v60 }
 0x218   :  { %v7340_v62 = vpop.f32.mrf.mxu1  ;;  %v1862_v22 = vpop.f32.mrf.mxu3 }
 0x219   :  { %v1988_v42 = vadd.f32 %v1862_v22, %v1454_v37  ;;  %v68_v37 = vld [vmem:[%s8898_s0 + $0x2d0] sm:$0xff]  ;;  %v1004_v22 = vld [vmem:[%s8898_s0 + $0x2a2] sm:$0xff] }
 0x21b   :  { %v7348_v28 = vadd.f32 %v2395_v16, %v1988_v42  ;;  %5122 = vmatmul.msk.f32.gmra.mxu1 %vm142_vm1, %v66_v17  ;;  %5183 = vmatmul.msk.f32.gmra.mxu2 %vm142_vm1, %v1002_v41  ;;  %v2398_v20 = vpop.f32.mrf.mxu0 }
 0x21d   :  { %5312 = vmatmul.msk.f32.gmra.mxu3 %vm142_vm1, %v64_v10  ;;  %v5377_v10 = vld [vmem:[%s8898_s0 + $0x2a9] sm:$0xff] }
 0x21e   :  { %v1331_v6 = vpop.f32.mrf.mxu2  ;;  %5441 = vmatmul.msk.f32.gmra.mxu0 %vm142_vm1, %v5376_v11 }
 0x21f   :  { %v1455_v5 = vadd.f32 %v1331_v6, %v863_v2 }
 0x220   :  { %v7359_v34 = vpop.f32.mrf.mxu1  ;;  %v1865_v57 = vpop.f32.mrf.mxu3 }
 0x221   :  { %v1989_v9 = vadd.f32 %v1865_v57, %v1455_v5  ;;  %v69_v57 = vld [vmem:[%s8898_s0 + $0x2d8] sm:$0xff] }
 0x223   :  { %v7367_v15 = vadd.f32 %v2398_v20, %v1989_v9  ;;  %5123 = vmatmul.msk.f32.gmra.mxu1 %vm142_vm1, %v67_v45  ;;  %5184 = vmatmul.msk.f32.gmra.mxu2 %vm142_vm1, %v1003_v0  ;;  %v2401_v23 = vpop.f32.mrf.mxu0  ;;  %v8933_v20 = vld [vmem:[#allocation13_spill] sm:$0xff]  ;;  %v1005_v0 = vld [vmem:[%s8898_s0 + $0x2aa] sm:$0xff] }
 0x224   :  { %v869_v11 = vadd.f32 %v7302_v46, %v8933_v20  ;;  %v8935_v20 = vld [vmem:[#allocation17_spill] sm:$0xff] }
 0x225   :  { %5313 = vmatmul.msk.f32.gmra.mxu3 %vm142_vm1, %v65_v21  ;;  %v5378_v21 = vld [vmem:[%s8898_s0 + $0x2b9] sm:$0xff] }
 0x226   :  { %v1334_v16 = vpop.f32.mrf.mxu2  ;;  %5442 = vmatmul.msk.f32.gmra.mxu0 %vm142_vm1, %v5377_v10  ;;  %v8934_v10 = vld [vmem:[#allocation15_spill] sm:$0xff] }
 0x227   :  { %v1456_v38 = vadd.f32 %v1334_v16, %v866_v14  ;;  %v872_v48 = vadd.f32 %v7321_v55, %v8934_v10 }
 0x228   :  { %v7378_v60 = vpop.f32.mrf.mxu1  ;;  %v1868_v58 = vpop.f32.mrf.mxu3 }
 0x229   :  { %v1990_v41 = vadd.f32 %v1868_v58, %v1456_v38 }
 0x22b   :  { %v7386_v42 = vadd.f32 %v2401_v23, %v1990_v41  ;;  %5124 = vmatmul.msk.f32.gmra.mxu1 %vm142_vm1, %v68_v37  ;;  %5185 = vmatmul.msk.f32.gmra.mxu2 %vm142_vm1, %v1004_v22  ;;  %v2404_v35 = vpop.f32.mrf.mxu0  ;;  %v70_v22 = vld [vmem:[%s8898_s0 + $0x2e8] sm:$0xff]  ;;  %v1006_v41 = vld [vmem:[%s8898_s0 + $0x2ba] sm:$0xff] }
 0x22d   :  { %5314 = vmatmul.msk.f32.gmra.mxu3 %vm142_vm1, %v66_v17  ;;  %v5379_v17 = vld [vmem:[%s8898_s0 + $0x2c1] sm:$0xff] }
 0x22e   :  { %v1337_v24 = vpop.f32.mrf.mxu2  ;;  %5443 = vmatmul.msk.f32.gmra.mxu0 %vm142_vm1, %v5378_v21 }
 0x22f   :  { %v1457_v2 = vadd.f32 %v1337_v24, %v869_v11  ;;  %v875_v11 = vadd.f32 %v7340_v62, %v8935_v20 }
 0x230   :  { %v7397_v6 = vpop.f32.mrf.mxu1  ;;  %v1871_v5 = vpop.f32.mrf.mxu3 }
 0x231   :  { %v1991_v9 = vadd.f32 %v1871_v5, %v1457_v2 }
 0x233   :  { %v7405_v23 = vadd.f32 %v2404_v35, %v1991_v9  ;;  %5125 = vmatmul.msk.f32.gmra.mxu1 %vm142_vm1, %v69_v57  ;;  %5186 = vmatmul.msk.f32.gmra.mxu2 %vm142_vm1, %v1005_v0  ;;  %v2407_v46 = vpop.f32.mrf.mxu0  ;;  %v71_v9 = vld [vmem:[%s8898_s0 + $0x2f0] sm:$0xff] }
 0x235   :  { %5315 = vmatmul.msk.f32.gmra.mxu3 %vm142_vm1, %v67_v45  ;;  %v5380_v45 = vld [vmem:[%s8898_s0 + $0x2d1] sm:$0xff] }
 0x236   :  { %v1340_v14 = vpop.f32.mrf.mxu2  ;;  %5444 = vmatmul.msk.f32.gmra.mxu0 %vm142_vm1, %v5379_v17 }
 0x237   :  { %v1458_v16 = vadd.f32 %v1340_v14, %v872_v48  ;;  %v8936_v48 = vld [vmem:[#allocation19_spill] sm:$0xff] }
 0x238   :  { %v7416_v38 = vpop.f32.mrf.mxu1  ;;  %v1874_v58 = vpop.f32.mrf.mxu3  ;;  %v878_v14 = vadd.f32 %v7359_v34, %v8936_v48  ;;  %v1009_v48 = vld [vmem:[%s8898_s0 + $0x2da] sm:$0xff] }
 0x239   :  { %v1992_v35 = vadd.f32 %v1874_v58, %v1458_v16 }
 0x23b   :  { %v7424_v21 = vadd.f32 %v2407_v46, %v1992_v35  ;;  %5126 = vmatmul.msk.f32.gmra.mxu1 %vm142_vm1, %v70_v22  ;;  %5187 = vmatmul.msk.f32.gmra.mxu2 %vm142_vm1, %v1006_v41  ;;  %v2410_v55 = vpop.f32.mrf.mxu0  ;;  %v1007_v46 = vld [vmem:[%s8898_s0 + $0x2c2] sm:$0xff] }
 0x23d   :  { %5316 = vmatmul.msk.f32.gmra.mxu3 %vm142_vm1, %v68_v37  ;;  %v5381_v37 = vld [vmem:[%s8898_s0 + $0x2d9] sm:$0xff] }
 0x23e   :  { %v1343_v24 = vpop.f32.mrf.mxu2  ;;  %5445 = vmatmul.msk.f32.gmra.mxu0 %vm142_vm1, %v5380_v45  ;;  %v1008_v45 = vld [vmem:[%s8898_s0 + $0x2d2] sm:$0xff] }
 0x23f   :  { %v1459_v2 = vadd.f32 %v1343_v24, %v875_v11  ;;  %v8937_v24 = vld [vmem:[#allocation21_spill] sm:$0xff] }
 0x240   :  { %v7435_v5 = vpop.f32.mrf.mxu1  ;;  %v1877_v0 = vpop.f32.mrf.mxu3 }
 0x241   :  { %v1993_v17 = vadd.f32 %v1877_v0, %v1459_v2  ;;  %v881_v2 = vadd.f32 %v7378_v60, %v8937_v24  ;;  %v74_v24 = vld [vmem:[%s8898_s0 + $0x318] sm:$0xff] }
 0x243   :  { %v7443_v10 = vadd.f32 %v2410_v55, %v1993_v17  ;;  %5127 = vmatmul.msk.f32.gmra.mxu1 %vm142_vm1, %v71_v9  ;;  %5188 = vmatmul.msk.f32.gmra.mxu2 %vm142_vm1, %v1007_v46  ;;  %v2413_v62 = vpop.f32.mrf.mxu0  ;;  %v72_v55 = vld [vmem:[%s8898_s0 + $0x300] sm:$0xff] }
 0x245   :  { %5317 = vmatmul.msk.f32.gmra.mxu3 %vm142_vm1, %v69_v57  ;;  %v5382_v57 = vld [vmem:[%s8898_s0 + $0x2e9] sm:$0xff] }
 0x246   :  { %v1346_v16 = vpop.f32.mrf.mxu2  ;;  %5446 = vmatmul.msk.f32.gmra.mxu0 %vm142_vm1, %v5381_v37  ;;  %v73_v37 = vld [vmem:[%s8898_s0 + $0x308] sm:$0xff] }
 0x247   :  { %v1460_v58 = vadd.f32 %v1346_v16, %v878_v14 }
 0x248   :  { %v7454_v41 = vpop.f32.mrf.mxu1  ;;  %v1880_v35 = vpop.f32.mrf.mxu3 }
 0x249   :  { %v1994_v20 = vadd.f32 %v1880_v35, %v1460_v58  ;;  %v8939_v58 = vld [vmem:[#allocation23_spill] sm:$0xff] }
 0x24a   :  { %v884_v35 = vadd.f32 %v7397_v6, %v8939_v58 }
 0x24b   :  { %v7462_v11 = vadd.f32 %v2413_v62, %v1994_v20  ;;  %5128 = vmatmul.msk.f32.gmra.mxu1 %vm142_vm1, %v72_v55  ;;  %5189 = vmatmul.msk.f32.gmra.mxu2 %vm142_vm1, %v1008_v45  ;;  %v2416_v34 = vpop.f32.mrf.mxu0 }
 0x24d   :  { %5318 = vmatmul.msk.f32.gmra.mxu3 %vm142_vm1, %v70_v22  ;;  %v5383_v22 = vld [vmem:[%s8898_s0 + $0x2f1] sm:$0xff] }
 0x24e   :  { %v1349_v0 = vpop.f32.mrf.mxu2  ;;  %5447 = vmatmul.msk.f32.gmra.mxu0 %vm142_vm1, %v5382_v57 }
 0x24f   :  { %v1461_v46 = vadd.f32 %v1349_v0, %v881_v2  ;;  %v1010_v2 = vld [vmem:[%s8898_s0 + $0x2ea] sm:$0xff] }
 0x250   :  { %v7473_v17 = vpop.f32.mrf.mxu1  ;;  %v1883_v62 = vpop.f32.mrf.mxu3 }
 0x251   :  { %v1995_v14 = vadd.f32 %v1883_v62, %v1461_v46  ;;  %v8940_v62 = vld [vmem:[#allocation25_spill] sm:$0xff] }
 0x253   :  { %v7481_v16 = vadd.f32 %v2416_v34, %v1995_v14  ;;  %5129 = vmatmul.msk.f32.gmra.mxu1 %vm142_vm1, %v73_v37  ;;  %5190 = vmatmul.msk.f32.gmra.mxu2 %vm142_vm1, %v1009_v48  ;;  %v2419_v60 = vpop.f32.mrf.mxu0  ;;  %v887_v48 = vadd.f32 %v7416_v38, %v8940_v62 }
 0x255   :  { %8938 = vst [vmem:[#allocation9_spill] sm:$0xff] %v7481_v16  ;;  %5319 = vmatmul.msk.f32.gmra.mxu3 %vm142_vm1, %v71_v9  ;;  %v5384_v9 = vld [vmem:[%s8898_s0 + $0x301] sm:$0xff] }
 0x256   :  { %v1352_v45 = vpop.f32.mrf.mxu2  ;;  %5448 = vmatmul.msk.f32.gmra.mxu0 %vm142_vm1, %v5383_v22 }
 0x257   :  { %v1462_v20 = vadd.f32 %v1352_v45, %v884_v35  ;;  %v75_v35 = vld [vmem:[%s8898_s0 + $0x320] sm:$0xff]  ;;  %v1011_v45 = vld [vmem:[%s8898_s0 + $0x2f2] sm:$0xff] }
 0x258   :  { %v7492_v34 = vpop.f32.mrf.mxu1  ;;  %v1886_v57 = vpop.f32.mrf.mxu3 }
 0x259   :  { %v1996_v0 = vadd.f32 %v1886_v57, %v1462_v20 }
 0x25b   :  { %v7500_v46 = vadd.f32 %v2419_v60, %v1996_v0  ;;  %5130 = vmatmul.msk.f32.gmra.mxu1 %vm142_vm1, %v74_v24  ;;  %5191 = vmatmul.msk.f32.gmra.mxu2 %vm142_vm1, %v1010_v2  ;;  %v2422_v6 = vpop.f32.mrf.mxu0  ;;  %v8941_v2 = vld [vmem:[#allocation27_spill] sm:$0xff] }
 0x25c   :  { %v890_v0 = vadd.f32 %v7435_v5, %v8941_v2 }
 0x25d   :  { %5320 = vmatmul.msk.f32.gmra.mxu3 %vm142_vm1, %v72_v55  ;;  %v5385_v55 = vld [vmem:[%s8898_s0 + $0x309] sm:$0xff] }
 0x25e   :  { %v1355_v14 = vpop.f32.mrf.mxu2  ;;  %5449 = vmatmul.msk.f32.gmra.mxu0 %vm142_vm1, %v5384_v9 }
 0x25f   :  { %v1463_v22 = vadd.f32 %v1355_v14, %v887_v48  ;;  %v1012_v14 = vld [vmem:[%s8898_s0 + $0x302] sm:$0xff] }
 0x260   :  { %v7511_v60 = vpop.f32.mrf.mxu1  ;;  %v1889_v58 = vpop.f32.mrf.mxu3 }
 0x261   :  { %v1997_v20 = vadd.f32 %v1889_v58, %v1463_v22  ;;  %v5455_v22 = vld [vmem:[%s8898_s0 + $0x1a] sm:$0xff] }
 0x263   :  { %v7519_v57 = vadd.f32 %v2422_v6, %v1997_v20  ;;  %5131 = vmatmul.msk.f32.gmra.mxu1 %vm142_vm1, %v75_v35  ;;  %5192 = vmatmul.msk.f32.gmra.mxu2 %vm142_vm1, %v1011_v45  ;;  %v2425_v38 = vpop.f32.mrf.mxu0  ;;  %v8942_v20 = vld [vmem:[#allocation29_spill] sm:$0xff] }
 0x265   :  { %5321 = vmatmul.msk.f32.gmra.mxu3 %vm142_vm1, %v73_v37  ;;  %v5386_v37 = vld [vmem:[%s8898_s0 + $0x319] sm:$0xff] }
 0x266   :  { %v1358_v9 = vpop.f32.mrf.mxu2  ;;  %5450 = vmatmul.msk.f32.gmra.mxu0 %vm142_vm1, %v5385_v55  ;;  %v893_v55 = vadd.f32 %v7454_v41, %v8942_v20 }
 0x267   :  { %v1464_v62 = vadd.f32 %v1358_v9, %v890_v0 }
 0x268   :  { %v7530_v6 = vpop.f32.mrf.mxu1  ;;  %v1892_v48 = vpop.f32.mrf.mxu3 }
 0x269   :  { %v1998_v58 = vadd.f32 %v1892_v48, %v1464_v62  ;;  %v1013_v62 = vld [vmem:[%s8898_s0 + $0x30a] sm:$0xff]  ;;  %v5456_v48 = vld [vmem:[%s8898_s0 + $0x22] sm:$0xff] }
 0x26b   :  { %v7538_v45 = vadd.f32 %v2425_v38, %v1998_v58  ;;  %5193 = vmatmul.msk.f32.gmra.mxu2 %vm142_vm1, %v1012_v14  ;;  %5520 = vmatmul.msk.f32.vlgmr.msra.gmra.mxu1 %vm142_vm1, %v5455_v22  ;;  %v2428_v5 = vpop.f32.mrf.mxu0  ;;  %v8944_v58 = vld [vmem:[#allocation31_spill] sm:$0xff] }
 0x26d   :  { %5322 = vmatmul.msk.f32.gmra.mxu3 %vm142_vm1, %v74_v24  ;;  %v5387_v24 = vld [vmem:[%s8898_s0 + $0x321] sm:$0xff] }
 0x26e   :  { %v1361_v2 = vpop.f32.mrf.mxu2  ;;  %5451 = vmatmul.msk.f32.gmra.mxu0 %vm142_vm1, %v5386_v37  ;;  %v896_v37 = vadd.f32 %v7473_v17, %v8944_v58  ;;  %v5259_v17 = vld [vmem:[%s8898_s0 + $0x330] sm:$0xff] }
 0x26f   :  { %v1465_v0 = vadd.f32 %v1361_v2, %v893_v55 }
 0x270   :  { %v7549_v38 = vpop.f32.mrf.mxu1  ;;  %v1895_v9 = vpop.f32.mrf.mxu3 }
 0x271   :  { %v1999_v14 = vadd.f32 %v1895_v9, %v1465_v0  ;;  %v1014_v0 = vld [vmem:[%s8898_s0 + $0x31a] sm:$0xff]  ;;  %v5457_v9 = vld [vmem:[%s8898_s0 + $0x32] sm:$0xff] }
 0x273   :  { %v7557_v22 = vadd.f32 %v2428_v5, %v1999_v14  ;;  %5194 = vmatmul.msk.f32.gmra.mxu2 %vm142_vm1, %v1013_v62  ;;  %5521 = vmatmul.msk.f32.gmra.mxu1 %vm142_vm1, %v5456_v48  ;;  %v2431_v41 = vpop.f32.mrf.mxu0  ;;  %v5388_v14 = vld [vmem:[%s8898_s0 + $0x331] sm:$0xff] }
 0x275   :  { %8943 = vst [vmem:[#allocation11_spill] sm:$0xff] %v7557_v22  ;;  %5323 = vmatmul.msk.f32.gmra.mxu3 %vm142_vm1, %v75_v35 }
 0x276   :  { %v1364_v20 = vpop.f32.mrf.mxu2  ;;  %5452 = vmatmul.msk.f32.gmra.mxu0 %vm142_vm1, %v5387_v24  ;;  %v8946_v24 = vld [vmem:[#allocation33_spill] sm:$0xff] }
 0x277   :  { %v1466_v55 = vadd.f32 %v1364_v20, %v896_v37  ;;  %v899_v58 = vadd.f32 %v7492_v34, %v8946_v24  ;;  %v5260_v34 = vld [vmem:[%s8898_s0 + $0x338] sm:$0xff] }
 0x278   :  { %v7568_v5 = vpop.f32.mrf.mxu1  ;;  %v1898_v2 = vpop.f32.mrf.mxu3  ;;  %v5389_v24 = vld [vmem:[%s8898_s0 + $0x339] sm:$0xff] }
 0x279   :  { %v2000_v62 = vadd.f32 %v1898_v2, %v1466_v55  ;;  %v1015_v2 = vld [vmem:[%s8898_s0 + $0x322] sm:$0xff] }
 0x27b   :  { %v7579_v35 = vadd.f32 %v2431_v41, %v2000_v62  ;;  %5195 = vmatmul.msk.f32.gmra.mxu2 %vm142_vm1, %v1014_v0  ;;  %5522 = vmatmul.msk.f32.gmra.mxu1 %vm142_vm1, %v5457_v9  ;;  %v2434_v48 = vpop.f32.mrf.mxu0  ;;  %v5458_v0 = vld [vmem:[%s8898_s0 + $0x3a] sm:$0xff] }
 0x27d   :  { %8945 = vst [vmem:[#allocation13_spill] sm:$0xff] %v7579_v35  ;;  %5324 = vmatmul.msk.f32.gmra.mxu3 %vm142_vm1, %v5259_v17 }
 0x27e   :  { %v1367_v37 = vpop.f32.mrf.mxu2  ;;  %5453 = vmatmul.msk.f32.gmra.mxu0 %vm142_vm1, %v5388_v14 }
 0x27f   :  { %v1467_v20 = vadd.f32 %v1367_v37, %v899_v58  ;;  %v8948_v58 = vld [vmem:[#allocation5_spill] sm:$0xff] }
 0x280   :  { %v7590_v41 = vpop.f32.mrf.mxu1  ;;  %v1901_v55 = vpop.f32.mrf.mxu3  ;;  %v902_v37 = vadd.f32 %v7511_v60, %v8948_v58  ;;  %v5713_v60 = vld [vmem:[%s8898_s0 + $0x31] sm:$0xff] }
 0x281   :  { %v2001_v62 = vadd.f32 %v1901_v55, %v1467_v20  ;;  %v8950_v58 = vld [vmem:[#allocation6_spill] sm:$0xff] }
 0x283   :  { %v7601_v17 = vadd.f32 %v2434_v48, %v2001_v62  ;;  %5196 = vmatmul.msk.f32.gmra.mxu2 %vm142_vm1, %v1015_v2  ;;  %5523 = vmatmul.msk.f32.gmra.mxu1 %vm142_vm1, %v5458_v0  ;;  %v2437_v14 = vpop.f32.mrf.mxu0  ;;  %v5459_v2 = vld [vmem:[%s8898_s0 + $0x4a] sm:$0xff] }
 0x285   :  { %8947 = vst [vmem:[#allocation15_spill] sm:$0xff] %v7601_v17  ;;  %5325 = vmatmul.msk.f32.gmra.mxu3 %vm142_vm1, %v5260_v34  ;;  %v5584_v17 = vld [vmem:[%s8898_s0 + $0x30] sm:$0xff] }
 0x286   :  { %v1370_v20 = vpop.f32.mrf.mxu2  ;;  %5454 = vmatmul.msk.f32.gmra.mxu0 %vm142_vm1, %v5389_v24 }
 0x287   :  { %v1468_v55 = vadd.f32 %v1370_v20, %v902_v37  ;;  %v905_v37 = vadd.f32 %v7530_v6, %v8950_v58  ;;  %v5714_v6 = vld [vmem:[%s8898_s0 + $0x39] sm:$0xff] }
 0x288   :  { %v7612_v48 = vpop.f32.mrf.mxu1  ;;  %v1904_v62 = vpop.f32.mrf.mxu3  ;;  %v8952_v58 = vld [vmem:[#allocation7_spill] sm:$0xff] }
 0x289   :  { %v2002_v35 = vadd.f32 %v1904_v62, %v1468_v55 }
 0x28b   :  { %v7623_v34 = vadd.f32 %v2437_v14, %v2002_v35  ;;  %5524 = vmatmul.msk.f32.gmra.mxu1 %vm142_vm1, %v5459_v2  ;;  %5649 = vmatmul.msk.f32.vlgmr.msra.gmra.mxu2 %vm142_vm1, %v5584_v17  ;;  %v2440_v24 = vpop.f32.mrf.mxu0  ;;  %v5460_v35 = vld [vmem:[%s8898_s0 + $0x52] sm:$0xff] }
 0x28c   :  { %v5585_v17 = vld [vmem:[%s8898_s0 + $0x38] sm:$0xff] }
 0x28d   :  { %8949 = vst [vmem:[#allocation17_spill] sm:$0xff] %v7623_v34  ;;  %5778 = vmatmul.msk.f32.vlgmr.msra.gmra.mxu3 %vm142_vm1, %v5713_v60 }
 0x28e   :  { %v1373_v20 = vpop.f32.mrf.mxu2  ;;  %5907 = vmatmul.msk.f32.vlgmr.msra.gmra.mxu0 %vm142_vm1, %v5457_v9 }
 0x28f   :  { %v1469_v55 = vadd.f32 %v1373_v20, %v905_v37  ;;  %v908_v37 = vadd.f32 %v7549_v38, %v8952_v58  ;;  %v5715_v38 = vld [vmem:[%s8898_s0 + $0x49] sm:$0xff]  ;;  %v8954_v58 = vld [vmem:[#allocation8_spill] sm:$0xff] }
 0x290   :  { %v7631_v62 = vpop.f32.mrf.mxu1  ;;  %v1907_v16 = vpop.f32.mrf.mxu3 }
 0x291   :  { %v2003_v14 = vadd.f32 %v1907_v16, %v1469_v55 }
 0x293   :  { %v7642_v60 = vadd.f32 %v2440_v24, %v2003_v14  ;;  %5525 = vmatmul.msk.f32.gmra.mxu1 %vm142_vm1, %v5460_v35  ;;  %5650 = vmatmul.msk.f32.gmra.mxu2 %vm142_vm1, %v5585_v17  ;;  %v2443_v9 = vpop.f32.mrf.mxu0  ;;  %v5461_v24 = vld [vmem:[%s8898_s0 + $0x62] sm:$0xff] }
 0x294   :  { %v5586_v17 = vld [vmem:[%s8898_s0 + $0x48] sm:$0xff] }
 0x295   :  { %8951 = vst [vmem:[#allocation19_spill] sm:$0xff] %v7642_v60  ;;  %5779 = vmatmul.msk.f32.gmra.mxu3 %vm142_vm1, %v5714_v6 }
 0x296   :  { %v1376_v20 = vpop.f32.mrf.mxu2  ;;  %5908 = vmatmul.msk.f32.gmra.mxu0 %vm142_vm1, %v5458_v0 }
 0x297   :  { %v1470_v16 = vadd.f32 %v1376_v20, %v908_v37  ;;  %v911_v37 = vadd.f32 %v7568_v5, %v8954_v58  ;;  %v5716_v5 = vld [vmem:[%s8898_s0 + $0x51] sm:$0xff] }
 0x298   :  { %v7650_v55 = vpop.f32.mrf.mxu1  ;;  %v1910_v34 = vpop.f32.mrf.mxu3  ;;  %v8956_v58 = vld [vmem:[#allocation10_spill] sm:$0xff] }
 0x299   :  { %v2004_v14 = vadd.f32 %v1910_v34, %v1470_v16 }
 0x29b   :  { %v7661_v6 = vadd.f32 %v2443_v9, %v2004_v14  ;;  %5526 = vmatmul.msk.f32.gmra.mxu1 %vm142_vm1, %v5461_v24  ;;  %5651 = vmatmul.msk.f32.gmra.mxu2 %vm142_vm1, %v5586_v17  ;;  %v2446_v0 = vpop.f32.mrf.mxu0  ;;  %v5462_v9 = vld [vmem:[%s8898_s0 + $0x6a] sm:$0xff] }
 0x29c   :  { %v5587_v17 = vld [vmem:[%s8898_s0 + $0x50] sm:$0xff] }
 0x29d   :  { %8953 = vst [vmem:[#allocation21_spill] sm:$0xff] %v7661_v6  ;;  %5780 = vmatmul.msk.f32.gmra.mxu3 %vm142_vm1, %v5715_v38 }
 0x29e   :  { %v1379_v20 = vpop.f32.mrf.mxu2  ;;  %5909 = vmatmul.msk.f32.gmra.mxu0 %vm142_vm1, %v5459_v2 }
 0x29f   :  { %v1471_v34 = vadd.f32 %v1379_v20, %v911_v37  ;;  %v914_v37 = vadd.f32 %v7590_v41, %v8956_v58  ;;  %v5717_v41 = vld [vmem:[%s8898_s0 + $0x61] sm:$0xff] }
 0x2a0   :  { %v7669_v16 = vpop.f32.mrf.mxu1  ;;  %v1913_v60 = vpop.f32.mrf.mxu3  ;;  %v8958_v58 = vld [vmem:[#allocation12_spill] sm:$0xff] }
 0x2a1   :  { %v2005_v14 = vadd.f32 %v1913_v60, %v1471_v34 }
 0x2a3   :  { %v7680_v38 = vadd.f32 %v2446_v0, %v2005_v14  ;;  %5527 = vmatmul.msk.f32.gmra.mxu1 %vm142_vm1, %v5462_v9  ;;  %5652 = vmatmul.msk.f32.gmra.mxu2 %vm142_vm1, %v5587_v17  ;;  %v2449_v2 = vpop.f32.mrf.mxu0  ;;  %v5463_v0 = vld [vmem:[%s8898_s0 + $0x7a] sm:$0xff] }
 0x2a4   :  { %v5588_v17 = vld [vmem:[%s8898_s0 + $0x60] sm:$0xff] }
 0x2a5   :  { %8955 = vst [vmem:[#allocation23_spill] sm:$0xff] %v7680_v38  ;;  %5781 = vmatmul.msk.f32.gmra.mxu3 %vm142_vm1, %v5716_v5 }
 0x2a6   :  { %v1382_v20 = vpop.f32.mrf.mxu2  ;;  %5910 = vmatmul.msk.f32.gmra.mxu0 %vm142_vm1, %v5460_v35 }
 0x2a7   :  { %v1472_v60 = vadd.f32 %v1382_v20, %v914_v37  ;;  %v917_v37 = vadd.f32 %v7612_v48, %v8958_v58  ;;  %v5718_v48 = vld [vmem:[%s8898_s0 + $0x69] sm:$0xff] }
 0x2a8   :  { %v7688_v34 = vpop.f32.mrf.mxu1  ;;  %v1916_v6 = vpop.f32.mrf.mxu3  ;;  %v8960_v58 = vld [vmem:[#allocation14_spill] sm:$0xff] }
 0x2a9   :  { %v2006_v14 = vadd.f32 %v1916_v6, %v1472_v60 }
 0x2ab   :  { %v7699_v5 = vadd.f32 %v2449_v2, %v2006_v14  ;;  %5528 = vmatmul.msk.f32.gmra.mxu1 %vm142_vm1, %v5463_v0  ;;  %5653 = vmatmul.msk.f32.gmra.mxu2 %vm142_vm1, %v5588_v17  ;;  %v2452_v35 = vpop.f32.mrf.mxu0  ;;  %v5464_v2 = vld [vmem:[%s8898_s0 + $0x82] sm:$0xff] }
 0x2ac   :  { %v5589_v17 = vld [vmem:[%s8898_s0 + $0x68] sm:$0xff] }
 0x2ad   :  { %8957 = vst [vmem:[#allocation25_spill] sm:$0xff] %v7699_v5  ;;  %5782 = vmatmul.msk.f32.gmra.mxu3 %vm142_vm1, %v5717_v41 }
 0x2ae   :  { %v1385_v20 = vpop.f32.mrf.mxu2  ;;  %5911 = vmatmul.msk.f32.gmra.mxu0 %vm142_vm1, %v5461_v24 }
 0x2af   :  { %v1473_v6 = vadd.f32 %v1385_v20, %v917_v37  ;;  %v920_v37 = vadd.f32 %v7631_v62, %v8960_v58  ;;  %v5719_v62 = vld [vmem:[%s8898_s0 + $0x79] sm:$0xff] }
 0x2b0   :  { %v7707_v60 = vpop.f32.mrf.mxu1  ;;  %v1919_v38 = vpop.f32.mrf.mxu3  ;;  %v8962_v58 = vld [vmem:[#allocation16_spill] sm:$0xff] }
 0x2b1   :  { %v2007_v14 = vadd.f32 %v1919_v38, %v1473_v6 }
 0x2b3   :  { %v7718_v41 = vadd.f32 %v2452_v35, %v2007_v14  ;;  %5529 = vmatmul.msk.f32.gmra.mxu1 %vm142_vm1, %v5464_v2  ;;  %5654 = vmatmul.msk.f32.gmra.mxu2 %vm142_vm1, %v5589_v17  ;;  %v2455_v24 = vpop.f32.mrf.mxu0  ;;  %v5465_v35 = vld [vmem:[%s8898_s0 + $0x92] sm:$0xff] }
 0x2b4   :  { %v5590_v17 = vld [vmem:[%s8898_s0 + $0x78] sm:$0xff] }
 0x2b5   :  { %8959 = vst [vmem:[#allocation27_spill] sm:$0xff] %v7718_v41  ;;  %5783 = vmatmul.msk.f32.gmra.mxu3 %vm142_vm1, %v5718_v48 }
 0x2b6   :  { %v1388_v20 = vpop.f32.mrf.mxu2  ;;  %5912 = vmatmul.msk.f32.gmra.mxu0 %vm142_vm1, %v5462_v9 }
 0x2b7   :  { %v1474_v38 = vadd.f32 %v1388_v20, %v920_v37  ;;  %v923_v37 = vadd.f32 %v7650_v55, %v8962_v58  ;;  %v5720_v55 = vld [vmem:[%s8898_s0 + $0x81] sm:$0xff]  ;;  %v8964_v58 = vld [vmem:[#allocation18_spill] sm:$0xff] }
 0x2b8   :  { %v7726_v6 = vpop.f32.mrf.mxu1  ;;  %v1922_v5 = vpop.f32.mrf.mxu3 }
 0x2b9   :  { %v2008_v14 = vadd.f32 %v1922_v5, %v1474_v38 }
 0x2bb   :  { %v7737_v48 = vadd.f32 %v2455_v24, %v2008_v14  ;;  %5530 = vmatmul.msk.f32.gmra.mxu1 %vm142_vm1, %v5465_v35  ;;  %5655 = vmatmul.msk.f32.gmra.mxu2 %vm142_vm1, %v5590_v17  ;;  %v2458_v9 = vpop.f32.mrf.mxu0  ;;  %v5466_v24 = vld [vmem:[%s8898_s0 + $0x9a] sm:$0xff] }
 0x2bc   :  { %v5591_v17 = vld [vmem:[%s8898_s0 + $0x80] sm:$0xff] }
 0x2bd   :  { %8961 = vst [vmem:[#allocation29_spill] sm:$0xff] %v7737_v48  ;;  %5784 = vmatmul.msk.f32.gmra.mxu3 %vm142_vm1, %v5719_v62 }
 0x2be   :  { %v1391_v20 = vpop.f32.mrf.mxu2  ;;  %5913 = vmatmul.msk.f32.gmra.mxu0 %vm142_vm1, %v5463_v0 }
 0x2bf   :  { %v1475_v5 = vadd.f32 %v1391_v20, %v923_v37  ;;  %v926_v37 = vadd.f32 %v7669_v16, %v8964_v58  ;;  %v5721_v16 = vld [vmem:[%s8898_s0 + $0x91] sm:$0xff]  ;;  %v8966_v58 = vld [vmem:[#allocation20_spill] sm:$0xff] }
 0x2c0   :  { %v7745_v38 = vpop.f32.mrf.mxu1  ;;  %v1925_v41 = vpop.f32.mrf.mxu3 }
 0x2c1   :  { %v2009_v14 = vadd.f32 %v1925_v41, %v1475_v5 }
 0x2c3   :  { %v7756_v62 = vadd.f32 %v2458_v9, %v2009_v14  ;;  %5531 = vmatmul.msk.f32.gmra.mxu1 %vm142_vm1, %v5466_v24  ;;  %5656 = vmatmul.msk.f32.gmra.mxu2 %vm142_vm1, %v5591_v17  ;;  %v2461_v0 = vpop.f32.mrf.mxu0  ;;  %v5467_v9 = vld [vmem:[%s8898_s0 + $0xaa] sm:$0xff] }
 0x2c4   :  { %v5592_v17 = vld [vmem:[%s8898_s0 + $0x90] sm:$0xff] }
 0x2c5   :  { %8963 = vst [vmem:[#allocation31_spill] sm:$0xff] %v7756_v62  ;;  %5785 = vmatmul.msk.f32.gmra.mxu3 %vm142_vm1, %v5720_v55 }
 0x2c6   :  { %v1394_v20 = vpop.f32.mrf.mxu2  ;;  %5914 = vmatmul.msk.f32.gmra.mxu0 %vm142_vm1, %v5464_v2 }
 0x2c7   :  { %v1476_v41 = vadd.f32 %v1394_v20, %v926_v37  ;;  %v929_v37 = vadd.f32 %v7688_v34, %v8966_v58  ;;  %v5722_v34 = vld [vmem:[%s8898_s0 + $0x99] sm:$0xff]  ;;  %v8968_v58 = vld [vmem:[#allocation22_spill] sm:$0xff] }
 0x2c8   :  { %v7764_v5 = vpop.f32.mrf.mxu1  ;;  %v1928_v48 = vpop.f32.mrf.mxu3 }
 0x2c9   :  { %v2010_v14 = vadd.f32 %v1928_v48, %v1476_v41 }
 0x2cb   :  { %v7775_v55 = vadd.f32 %v2461_v0, %v2010_v14  ;;  %5532 = vmatmul.msk.f32.gmra.mxu1 %vm142_vm1, %v5467_v9  ;;  %5657 = vmatmul.msk.f32.gmra.mxu2 %vm142_vm1, %v5592_v17  ;;  %v2464_v2 = vpop.f32.mrf.mxu0  ;;  %v5468_v0 = vld [vmem:[%s8898_s0 + $0xb2] sm:$0xff] }
 0x2cc   :  { %v5593_v17 = vld [vmem:[%s8898_s0 + $0x98] sm:$0xff] }
 0x2cd   :  { %8965 = vst [vmem:[#allocation33_spill] sm:$0xff] %v7775_v55  ;;  %5786 = vmatmul.msk.f32.gmra.mxu3 %vm142_vm1, %v5721_v16 }
 0x2ce   :  { %v1397_v20 = vpop.f32.mrf.mxu2  ;;  %5915 = vmatmul.msk.f32.gmra.mxu0 %vm142_vm1, %v5465_v35 }
 0x2cf   :  { %v1477_v48 = vadd.f32 %v1397_v20, %v929_v37  ;;  %v932_v37 = vadd.f32 %v7707_v60, %v8968_v58  ;;  %v5723_v60 = vld [vmem:[%s8898_s0 + $0xa9] sm:$0xff]  ;;  %v8970_v58 = vld [vmem:[#allocation24_spill] sm:$0xff] }
 0x2d0   :  { %v7783_v41 = vpop.f32.mrf.mxu1  ;;  %v1931_v62 = vpop.f32.mrf.mxu3 }
 0x2d1   :  { %v2011_v14 = vadd.f32 %v1931_v62, %v1477_v48 }
 0x2d3   :  { %v7794_v16 = vadd.f32 %v2464_v2, %v2011_v14  ;;  %5533 = vmatmul.msk.f32.gmra.mxu1 %vm142_vm1, %v5468_v0  ;;  %5658 = vmatmul.msk.f32.gmra.mxu2 %vm142_vm1, %v5593_v17  ;;  %v2467_v35 = vpop.f32.mrf.mxu0  ;;  %v5469_v2 = vld [vmem:[%s8898_s0 + $0xc2] sm:$0xff] }
 0x2d4   :  { %v5594_v17 = vld [vmem:[%s8898_s0 + $0xa8] sm:$0xff] }
 0x2d5   :  { %8967 = vst [vmem:[#allocation5_spill] sm:$0xff] %v7794_v16  ;;  %5787 = vmatmul.msk.f32.gmra.mxu3 %vm142_vm1, %v5722_v34 }
 0x2d6   :  { %v1400_v20 = vpop.f32.mrf.mxu2  ;;  %5916 = vmatmul.msk.f32.gmra.mxu0 %vm142_vm1, %v5466_v24 }
 0x2d7   :  { %v1478_v62 = vadd.f32 %v1400_v20, %v932_v37  ;;  %v935_v37 = vadd.f32 %v7726_v6, %v8970_v58  ;;  %v5724_v6 = vld [vmem:[%s8898_s0 + $0xb1] sm:$0xff] }
 0x2d8   :  { %v7802_v48 = vpop.f32.mrf.mxu1  ;;  %v1934_v55 = vpop.f32.mrf.mxu3  ;;  %v8972_v58 = vld [vmem:[#allocation26_spill] sm:$0xff] }
 0x2d9   :  { %v2012_v14 = vadd.f32 %v1934_v55, %v1478_v62 }
 0x2db   :  { %v7813_v34 = vadd.f32 %v2467_v35, %v2012_v14  ;;  %5534 = vmatmul.msk.f32.gmra.mxu1 %vm142_vm1, %v5469_v2  ;;  %5659 = vmatmul.msk.f32.gmra.mxu2 %vm142_vm1, %v5594_v17  ;;  %v2470_v24 = vpop.f32.mrf.mxu0  ;;  %v5470_v35 = vld [vmem:[%s8898_s0 + $0xca] sm:$0xff] }
 0x2dc   :  { %v5595_v17 = vld [vmem:[%s8898_s0 + $0xb0] sm:$0xff] }
 0x2dd   :  { %8969 = vst [vmem:[#allocation6_spill] sm:$0xff] %v7813_v34  ;;  %5788 = vmatmul.msk.f32.gmra.mxu3 %vm142_vm1, %v5723_v60 }
 0x2de   :  { %v1403_v20 = vpop.f32.mrf.mxu2  ;;  %5917 = vmatmul.msk.f32.gmra.mxu0 %vm142_vm1, %v5467_v9 }
 0x2df   :  { %v1479_v55 = vadd.f32 %v1403_v20, %v935_v37  ;;  %v938_v37 = vadd.f32 %v7745_v38, %v8972_v58  ;;  %v5725_v38 = vld [vmem:[%s8898_s0 + $0xc1] sm:$0xff] }
 0x2e0   :  { %v7821_v62 = vpop.f32.mrf.mxu1  ;;  %v1937_v16 = vpop.f32.mrf.mxu3  ;;  %v8974_v58 = vld [vmem:[#allocation28_spill] sm:$0xff] }
 0x2e1   :  { %v2013_v14 = vadd.f32 %v1937_v16, %v1479_v55 }
 0x2e3   :  { %v7832_v60 = vadd.f32 %v2470_v24, %v2013_v14  ;;  %5535 = vmatmul.msk.f32.gmra.mxu1 %vm142_vm1, %v5470_v35  ;;  %5660 = vmatmul.msk.f32.gmra.mxu2 %vm142_vm1, %v5595_v17  ;;  %v2473_v9 = vpop.f32.mrf.mxu0  ;;  %v5471_v24 = vld [vmem:[%s8898_s0 + $0xda] sm:$0xff] }
 0x2e4   :  { %v5596_v17 = vld [vmem:[%s8898_s0 + $0xc0] sm:$0xff] }
 0x2e5   :  { %8971 = vst [vmem:[#allocation7_spill] sm:$0xff] %v7832_v60  ;;  %5789 = vmatmul.msk.f32.gmra.mxu3 %vm142_vm1, %v5724_v6 }
 0x2e6   :  { %v1406_v20 = vpop.f32.mrf.mxu2  ;;  %5918 = vmatmul.msk.f32.gmra.mxu0 %vm142_vm1, %v5468_v0 }
 0x2e7   :  { %v1480_v16 = vadd.f32 %v1406_v20, %v938_v37  ;;  %v941_v37 = vadd.f32 %v7764_v5, %v8974_v58  ;;  %v5726_v5 = vld [vmem:[%s8898_s0 + $0xc9] sm:$0xff] }
 0x2e8   :  { %v1940_v55 = vpop.f32.mrf.mxu3  ;;  %v7840_v34 = vpop.f32.mrf.mxu1  ;;  %v8976_v58 = vld [vmem:[#allocation30_spill] sm:$0xff] }
 0x2e9   :  { %v2014_v14 = vadd.f32 %v1940_v55, %v1480_v16 }
 0x2eb   :  { %v7851_v6 = vadd.f32 %v2473_v9, %v2014_v14  ;;  %5536 = vmatmul.msk.f32.gmra.mxu1 %vm142_vm1, %v5471_v24  ;;  %5661 = vmatmul.msk.f32.gmra.mxu2 %vm142_vm1, %v5596_v17  ;;  %v2476_v0 = vpop.f32.mrf.mxu0  ;;  %v5472_v9 = vld [vmem:[%s8898_s0 + $0xe2] sm:$0xff] }
 0x2ec   :  { %v5597_v17 = vld [vmem:[%s8898_s0 + $0xc8] sm:$0xff] }
 0x2ed   :  { %8973 = vst [vmem:[#allocation8_spill] sm:$0xff] %v7851_v6  ;;  %5790 = vmatmul.msk.f32.gmra.mxu3 %vm142_vm1, %v5725_v38 }
 0x2ee   :  { %v1409_v20 = vpop.f32.mrf.mxu2  ;;  %5919 = vmatmul.msk.f32.gmra.mxu0 %vm142_vm1, %v5469_v2 }
 0x2ef   :  { %v1481_v16 = vadd.f32 %v1409_v20, %v941_v37  ;;  %v944_v37 = vadd.f32 %v7783_v41, %v8976_v58  ;;  %v5727_v41 = vld [vmem:[%s8898_s0 + $0xd9] sm:$0xff] }
 0x2f0   :  { %v1943_v55 = vpop.f32.mrf.mxu3  ;;  %v7859_v60 = vpop.f32.mrf.mxu1  ;;  %v8978_v58 = vld [vmem:[#allocation32_spill] sm:$0xff] }
 0x2f1   :  { %v2015_v14 = vadd.f32 %v1943_v55, %v1481_v16 }
 0x2f3   :  { %v7870_v38 = vadd.f32 %v2476_v0, %v2015_v14  ;;  %5537 = vmatmul.msk.f32.gmra.mxu1 %vm142_vm1, %v5472_v9  ;;  %5662 = vmatmul.msk.f32.gmra.mxu2 %vm142_vm1, %v5597_v17  ;;  %v2479_v2 = vpop.f32.mrf.mxu0  ;;  %v5473_v0 = vld [vmem:[%s8898_s0 + $0xf2] sm:$0xff] }
 0x2f4   :  { %v5598_v17 = vld [vmem:[%s8898_s0 + $0xd8] sm:$0xff] }
 0x2f5   :  { %8975 = vst [vmem:[#allocation10_spill] sm:$0xff] %v7870_v38  ;;  %5791 = vmatmul.msk.f32.gmra.mxu3 %vm142_vm1, %v5726_v5 }
 0x2f6   :  { %v1412_v20 = vpop.f32.mrf.mxu2  ;;  %5920 = vmatmul.msk.f32.gmra.mxu0 %vm142_vm1, %v5470_v35 }
 0x2f7   :  { %v1482_v16 = vadd.f32 %v1412_v20, %v944_v37  ;;  %v947_v37 = vadd.f32 %v7802_v48, %v8978_v58  ;;  %v5728_v48 = vld [vmem:[%s8898_s0 + $0xe1] sm:$0xff]  ;;  %v8980_v58 = vld [vmem:[#allocation34_spill] sm:$0xff] }
 0x2f8   :  { %v1946_v55 = vpop.f32.mrf.mxu3  ;;  %v7878_v6 = vpop.f32.mrf.mxu1 }
 0x2f9   :  { %v2016_v14 = vadd.f32 %v1946_v55, %v1482_v16 }
 0x2fb   :  { %v7889_v5 = vadd.f32 %v2479_v2, %v2016_v14  ;;  %5538 = vmatmul.msk.f32.gmra.mxu1 %vm142_vm1, %v5473_v0  ;;  %5663 = vmatmul.msk.f32.gmra.mxu2 %vm142_vm1, %v5598_v17  ;;  %v2482_v35 = vpop.f32.mrf.mxu0  ;;  %v5474_v2 = vld [vmem:[%s8898_s0 + $0xfa] sm:$0xff] }
 0x2fc   :  { %v5599_v17 = vld [vmem:[%s8898_s0 + $0xe0] sm:$0xff] }
 0x2fd   :  { %8977 = vst [vmem:[#allocation12_spill] sm:$0xff] %v7889_v5  ;;  %5792 = vmatmul.msk.f32.gmra.mxu3 %vm142_vm1, %v5727_v41 }
 0x2fe   :  { %v1415_v20 = vpop.f32.mrf.mxu2  ;;  %5921 = vmatmul.msk.f32.gmra.mxu0 %vm142_vm1, %v5471_v24 }
 0x2ff   :  { %v1483_v16 = vadd.f32 %v1415_v20, %v947_v37  ;;  %v950_v37 = vadd.f32 %v7821_v62, %v8980_v58  ;;  %v5729_v62 = vld [vmem:[%s8898_s0 + $0xf1] sm:$0xff] }
 0x300   :  { %v1949_v55 = vpop.f32.mrf.mxu3  ;;  %v7897_v38 = vpop.f32.mrf.mxu1 }
 0x301   :  { %v2017_v14 = vadd.f32 %v1949_v55, %v1483_v16 }
 0x303   :  { %v7908_v41 = vadd.f32 %v2482_v35, %v2017_v14  ;;  %5539 = vmatmul.msk.f32.gmra.mxu1 %vm142_vm1, %v5474_v2  ;;  %5664 = vmatmul.msk.f32.gmra.mxu2 %vm142_vm1, %v5599_v17  ;;  %v2485_v24 = vpop.f32.mrf.mxu0  ;;  %v5475_v35 = vld [vmem:[%s8898_s0 + $0x10a] sm:$0xff] }
 0x304   :  { %v5600_v17 = vld [vmem:[%s8898_s0 + $0xf0] sm:$0xff] }
 0x305   :  { %8979 = vst [vmem:[#allocation14_spill] sm:$0xff] %v7908_v41  ;;  %5793 = vmatmul.msk.f32.gmra.mxu3 %vm142_vm1, %v5728_v48 }
 0x306   :  { %v1418_v20 = vpop.f32.mrf.mxu2  ;;  %5922 = vmatmul.msk.f32.gmra.mxu0 %vm142_vm1, %v5472_v9  ;;  %v4956_v9 = vld [vmem:[%s8899_s1 + $0x28] sm:$0xff] }
 0x307   :  { %v1484_v16 = vadd.f32 %v1418_v20, %v950_v37  ;;  %4980 = vmatpush.msrb.mxu1 %v4956_v9  ;;  %v3021_v37 = vadd.f32 %v7840_v34, %v6741_v18  ;;  %v5730_v18 = vld [vmem:[%s8898_s0 + $0xf9] sm:$0xff]  ;;  %v7956_v9 = vld [vmem:[%s8899_s1 + $0x24] ss:$0 sm:$0xff] }
 0x308   :  { %v1952_v55 = vpop.f32.mrf.mxu3  ;;  %v7916_v5 = vpop.f32.mrf.mxu1 }
 0x309   :  { %v2018_v14 = vadd.f32 %v1952_v55, %v1484_v16 }
 0x30b   :  { %v7930_v48 = vadd.f32 %v2485_v24, %v2018_v14  ;;  %5540 = vmatmul.msk.f32.gmra.mxu1 %vm142_vm1, %v5475_v35  ;;  %5665 = vmatmul.msk.f32.gmra.mxu2 %vm142_vm1, %v5600_v17  ;;  %v4429_v58 = vpop.f32.mrf.mxu0  ;;  %v5476_v24 = vld [vmem:[%s8898_s0 + $0x112] sm:$0xff] }
 0x30c   :  { %v5601_v17 = vld [vmem:[%s8898_s0 + $0xf8] sm:$0xff] }
 0x30d   :  { %8981 = vst [vmem:[#allocation16_spill] sm:$0xff] %v7930_v48  ;;  %5794 = vmatmul.msk.f32.gmra.mxu3 %vm142_vm1, %v5729_v62  ;;  %v3022_v62 = vadd.f32 %v7859_v60, %v6757_v26  ;;  %v5602_v26 = vld [vmem:[%s8898_s0 + $0x108] sm:$0xff] }
 0x30e   :  { %v3363_v20 = vpop.f32.mrf.mxu2  ;;  %5923 = vmatmul.msk.f32.gmra.mxu0 %vm142_vm1, %v5473_v0 }
 0x30f   :  { %v3555_v16 = vadd.f32 %v3363_v20, %v3021_v37 }
 0x310   :  { %v7938_v55 = vpop.f32.mrf.mxu1  ;;  %v3896_v41 = vpop.f32.mrf.mxu3 }
 0x311   :  { %v4088_v14 = vadd.f32 %v3896_v41, %v3555_v16  ;;  %v5477_v16 = vld [vmem:[%s8898_s0 + $0x122] sm:$0xff] }
 0x313   :  { %v4621_v34 = vadd.f32 %v4429_v58, %v4088_v14  ;;  %5541 = vmatmul.msk.f32.gmra.mxu1 %vm142_vm1, %v5476_v24  ;;  %5666 = vmatmul.msk.f32.gmra.mxu2 %vm142_vm1, %v5601_v17  ;;  %v4432_v0 = vpop.f32.mrf.mxu0  ;;  %v5731_v14 = vld [vmem:[%s8898_s0 + $0x109] sm:$0xff] }
 0x315   :  { %5795 = vmatmul.msk.f32.gmra.mxu3 %vm142_vm1, %v5730_v18  ;;  %v4687_v60 = vadd.f32 %v7956_v9, %v4621_v34 }
 0x316   :  { %v3366_v41 = vpop.f32.mrf.mxu2  ;;  %5924 = vmatmul.msk.f32.gmra.mxu0 %vm142_vm1, %v5474_v2 }
 0x317   :  { %v3556_v37 = vadd.f32 %v3366_v41, %v3022_v62  ;;  %v3023_v62 = vadd.f32 %v7878_v6, %v6773_v43  ;;  %v4751_v41 = vmax.f32 %v4687_v60, 0.0  ;;  %v5603_v43 = vld [vmem:[%s8898_s0 + $0x110] sm:$0xff] }
 0x318   :  { %v7960_v58 = vpop.f32.mrf.mxu1  ;;  %v3899_v20 = vpop.f32.mrf.mxu3 }
 0x319   :  { %v4089_v17 = vadd.f32 %v3899_v20, %v3556_v37  ;;  %v4816_v6 = vsel %vm4815_vm2, %v4751_v41, 0.0 }
 0x31b   :  { %v4622_v2 = vadd.f32 %v4432_v0, %v4089_v17  ;;  %5542 = vmatmul.msk.f32.gmra.mxu1 %vm142_vm1, %v5477_v16  ;;  %5667 = vmatmul.msk.f32.gmra.mxu2 %vm142_vm1, %v5602_v26  ;;  %v4435_v18 = vpop.f32.mrf.mxu0  ;;  %v5478_v26 = vld [vmem:[%s8898_s0 + $0x12a] sm:$0xff] }
 0x31d   :  { %v4688_v48 = vadd.f32 %v7956_v9, %v4622_v2  ;;  %5796 = vmatmul.msk.f32.gmra.mxu3 %vm142_vm1, %v5731_v14 }
 0x31e   :  { %v3369_v34 = vpop.f32.mrf.mxu2  ;;  %5925 = vmatmul.msk.f32.gmra.mxu0 %vm142_vm1, %v5475_v35  ;;  %v5732_v35 = vld [vmem:[%s8898_s0 + $0x111] sm:$0xff] }
 0x31f   :  { %v4752_v37 = vmax.f32 %v4688_v48, 0.0  ;;  %v3557_v20 = vadd.f32 %v3369_v34, %v3023_v62  ;;  %v3024_v34 = vadd.f32 %v7897_v38, %v6789_v54  ;;  %v5604_v54 = vld [vmem:[%s8898_s0 + $0x120] sm:$0xff] }
 0x320   :  { %v7979_v0 = vpop.f32.mrf.mxu1  ;;  %v3902_v17 = vpop.f32.mrf.mxu3 }
 0x321   :  { %v4817_v60 = vsel %vm4815_vm2, %v4752_v37, 0.0  ;;  %v4090_v14 = vadd.f32 %v3902_v17, %v3557_v20 }
 0x322   :  { %v4818_v2 = vadd.f32 %v4817_v60, %v4816_v6 }
 0x323   :  { %v4623_v48 = vadd.f32 %v4435_v18, %v4090_v14  ;;  %5543 = vmatmul.msk.f32.gmra.mxu1 %vm142_vm1, %v5478_v26  ;;  %5668 = vmatmul.msk.f32.gmra.mxu2 %vm142_vm1, %v5603_v43  ;;  %v4438_v62 = vpop.f32.mrf.mxu0  ;;  %v5479_v43 = vld [vmem:[%s8898_s0 + $0x13a] sm:$0xff] }
 0x325   :  { %v4689_v22 = vadd.f32 %v7956_v9, %v4623_v48  ;;  %5797 = vmatmul.msk.f32.gmra.mxu3 %vm142_vm1, %v5732_v35  ;;  %v3025_v35 = vadd.f32 %v7916_v5, %v6805_v61  ;;  %v5605_v61 = vld [vmem:[%s8898_s0 + $0x128] sm:$0xff] }
 0x326   :  { %v3372_v41 = vpop.f32.mrf.mxu2  ;;  %5926 = vmatmul.msk.f32.gmra.mxu0 %vm142_vm1, %v5476_v24 }
 0x327   :  { %v4753_v37 = vmax.f32 %v4689_v22, 0.0  ;;  %v3558_v20 = vadd.f32 %v3372_v41, %v3024_v34  ;;  %v5733_v22 = vld [vmem:[%s8898_s0 + $0x121] sm:$0xff] }
 0x328   :  { %v7999_v17 = vpop.f32.mrf.mxu1  ;;  %v3905_v18 = vpop.f32.mrf.mxu3 }
 0x329   :  { %v4819_v38 = vsel %vm4815_vm2, %v4753_v37, 0.0  ;;  %v4091_v6 = vadd.f32 %v3905_v18, %v3558_v20  ;;  %v5480_v20 = vld [vmem:[%s8898_s0 + $0x142] sm:$0xff] }
 0x32a   :  { %v4820_v60 = vadd.f32 %v4819_v38, %v4818_v2 }
 0x32b   :  { %v4624_v24 = vadd.f32 %v4438_v62, %v4091_v6  ;;  %5544 = vmatmul.msk.f32.gmra.mxu1 %vm142_vm1, %v5479_v43  ;;  %5669 = vmatmul.msk.f32.gmra.mxu2 %vm142_vm1, %v5604_v54  ;;  %v4441_v14 = vpop.f32.mrf.mxu0 }
 0x32d   :  { %v4690_v48 = vadd.f32 %v7956_v9, %v4624_v24  ;;  %5798 = vmatmul.msk.f32.gmra.mxu3 %vm142_vm1, %v5733_v22  ;;  %v3026_v22 = vadd.f32 %v7938_v55, %v6822_v3  ;;  %v5606_v3 = vld [vmem:[%s8898_s0 + $0x138] sm:$0xff] }
 0x32e   :  { %v3375_v34 = vpop.f32.mrf.mxu2  ;;  %5927 = vmatmul.msk.f32.gmra.mxu0 %vm142_vm1, %v5477_v16  ;;  %v5734_v16 = vld [vmem:[%s8898_s0 + $0x129] sm:$0xff] }
 0x32f   :  { %v4754_v2 = vmax.f32 %v4690_v48, 0.0  ;;  %v3559_v41 = vadd.f32 %v3375_v34, %v3025_v35 }
 0x330   :  { %v8018_v37 = vpop.f32.mrf.mxu1  ;;  %v3908_v62 = vpop.f32.mrf.mxu3 }
 0x331   :  { %v4821_v5 = vsel %vm4815_vm2, %v4754_v2, 0.0  ;;  %v4092_v18 = vadd.f32 %v3908_v62, %v3559_v41  ;;  %v5481_v2 = vld [vmem:[%s8898_s0 + $0x152] sm:$0xff] }
 0x332   :  { %v4822_v54 = vadd.f32 %v4821_v5, %v4820_v60 }
 0x333   :  { %v4625_v38 = vadd.f32 %v4441_v14, %v4092_v18  ;;  %5545 = vmatmul.msk.f32.gmra.mxu1 %vm142_vm1, %v5480_v20  ;;  %5670 = vmatmul.msk.f32.gmra.mxu2 %vm142_vm1, %v5605_v61  ;;  %v4444_v6 = vpop.f32.mrf.mxu0  ;;  %v3027_v18 = vadd.f32 %v7960_v58, %v6839_v12  ;;  %v5607_v12 = vld [vmem:[%s8898_s0 + $0x140] sm:$0xff] }
 0x335   :  { %v4691_v24 = vadd.f32 %v7956_v9, %v4625_v38  ;;  %5799 = vmatmul.msk.f32.gmra.mxu3 %vm142_vm1, %v5734_v16 }
 0x336   :  { %v3378_v35 = vpop.f32.mrf.mxu2  ;;  %5928 = vmatmul.msk.f32.gmra.mxu0 %vm142_vm1, %v5478_v26  ;;  %v5735_v26 = vld [vmem:[%s8898_s0 + $0x139] sm:$0xff] }
 0x337   :  { %v4755_v60 = vmax.f32 %v4691_v24, 0.0  ;;  %v3560_v48 = vadd.f32 %v3378_v35, %v3026_v22  ;;  %v5482_v35 = vld [vmem:[%s8898_s0 + $0x15a] sm:$0xff] }
 0x338   :  { %v8037_v34 = vpop.f32.mrf.mxu1  ;;  %v3911_v14 = vpop.f32.mrf.mxu3 }
 0x339   :  { %v4823_v55 = vsel %vm4815_vm2, %v4755_v60, 0.0  ;;  %v4093_v41 = vadd.f32 %v3911_v14, %v3560_v48 }
 0x33a   :  { %v4824_v62 = vadd.f32 %v4823_v55, %v4822_v54  ;;  %v3028_v55 = vadd.f32 %v7979_v0, %v6856_v39  ;;  %v5608_v39 = vld [vmem:[%s8898_s0 + $0x150] sm:$0xff] }
 0x33b   :  { %v4626_v61 = vadd.f32 %v4444_v6, %v4093_v41  ;;  %5546 = vmatmul.msk.f32.gmra.mxu1 %vm142_vm1, %v5481_v2  ;;  %5671 = vmatmul.msk.f32.gmra.mxu2 %vm142_vm1, %v5606_v3  ;;  %v4447_v5 = vpop.f32.mrf.mxu0 }
 0x33d   :  { %v4692_v16 = vadd.f32 %v7956_v9, %v4626_v61  ;;  %5800 = vmatmul.msk.f32.gmra.mxu3 %vm142_vm1, %v5735_v26 }
 0x33e   :  { %v3381_v38 = vpop.f32.mrf.mxu2  ;;  %5929 = vmatmul.msk.f32.gmra.mxu0 %vm142_vm1, %v5479_v43  ;;  %v5736_v43 = vld [vmem:[%s8898_s0 + $0x141] sm:$0xff] }
 0x33f   :  { %v4756_v54 = vmax.f32 %v4692_v16, 0.0  ;;  %v3561_v22 = vadd.f32 %v3381_v38, %v3027_v18  ;;  %v5483_v16 = vld [vmem:[%s8898_s0 + $0x16a] sm:$0xff] }
 0x340   :  { %v8056_v24 = vpop.f32.mrf.mxu1  ;;  %v3914_v6 = vpop.f32.mrf.mxu3 }
 0x341   :  { %v4825_v58 = vsel %vm4815_vm2, %v4756_v54, 0.0  ;;  %v4094_v60 = vadd.f32 %v3914_v6, %v3561_v22 }
 0x342   :  { %v4826_v48 = vadd.f32 %v4825_v58, %v4824_v62 }
 0x343   :  { %v4627_v14 = vadd.f32 %v4447_v5, %v4094_v60  ;;  %5547 = vmatmul.msk.f32.gmra.mxu1 %vm142_vm1, %v5482_v35  ;;  %5672 = vmatmul.msk.f32.gmra.mxu2 %vm142_vm1, %v5607_v12  ;;  %v4450_v3 = vpop.f32.mrf.mxu0  ;;  %v3029_v12 = vadd.f32 %v7999_v17, %v6873_v59  ;;  %v5609_v59 = vld [vmem:[%s8898_s0 + $0x158] sm:$0xff] }
 0x345   :  { %v4693_v41 = vadd.f32 %v7956_v9, %v4627_v14  ;;  %5801 = vmatmul.msk.f32.gmra.mxu3 %vm142_vm1, %v5736_v43 }
 0x346   :  { %v3384_v26 = vpop.f32.mrf.mxu2  ;;  %5930 = vmatmul.msk.f32.gmra.mxu0 %vm142_vm1, %v5480_v20  ;;  %v5737_v20 = vld [vmem:[%s8898_s0 + $0x151] sm:$0xff] }
 0x347   :  { %v4757_v62 = vmax.f32 %v4693_v41, 0.0  ;;  %v3562_v61 = vadd.f32 %v3384_v26, %v3028_v55  ;;  %v5484_v55 = vld [vmem:[%s8898_s0 + $0x172] sm:$0xff] }
 0x348   :  { %v8075_v18 = vpop.f32.mrf.mxu1  ;;  %v3917_v5 = vpop.f32.mrf.mxu3 }
 0x349   :  { %v4827_v0 = vsel %vm4815_vm2, %v4757_v62, 0.0  ;;  %v4095_v38 = vadd.f32 %v3917_v5, %v3562_v61  ;;  %v3030_v5 = vadd.f32 %v8018_v37, %v6890_v7  ;;  %v5610_v7 = vld [vmem:[%s8898_s0 + $0x168] sm:$0xff] }
 0x34a   :  { %v4828_v54 = vadd.f32 %v4827_v0, %v4826_v48 }
 0x34b   :  { %v4628_v22 = vadd.f32 %v4450_v3, %v4095_v38  ;;  %5548 = vmatmul.msk.f32.gmra.mxu1 %vm142_vm1, %v5483_v16  ;;  %5673 = vmatmul.msk.f32.gmra.mxu2 %vm142_vm1, %v5608_v39  ;;  %v4453_v6 = vpop.f32.mrf.mxu0 }
 0x34d   :  { %v4694_v58 = vadd.f32 %v7956_v9, %v4628_v22  ;;  %5802 = vmatmul.msk.f32.gmra.mxu3 %vm142_vm1, %v5737_v20 }
 0x34e   :  { %v3387_v60 = vpop.f32.mrf.mxu2  ;;  %5931 = vmatmul.msk.f32.gmra.mxu0 %vm142_vm1, %v5481_v2  ;;  %v5738_v2 = vld [vmem:[%s8898_s0 + $0x159] sm:$0xff] }
 0x34f   :  { %v4758_v48 = vmax.f32 %v4694_v58, 0.0  ;;  %v3563_v43 = vadd.f32 %v3387_v60, %v3029_v12 }
 0x350   :  { %v8094_v14 = vpop.f32.mrf.mxu1  ;;  %v3920_v3 = vpop.f32.mrf.mxu3 }
 0x351   :  { %v4829_v17 = vsel %vm4815_vm2, %v4758_v48, 0.0  ;;  %v4096_v41 = vadd.f32 %v3920_v3, %v3563_v43  ;;  %v3031_v43 = vadd.f32 %v8037_v34, %v6907_v27  ;;  %v5611_v27 = vld [vmem:[%s8898_s0 + $0x170] sm:$0xff] }
 0x352   :  { %v4830_v26 = vadd.f32 %v4829_v17, %v4828_v54 }
 0x353   :  { %v4629_v62 = vadd.f32 %v4453_v6, %v4096_v41  ;;  %5549 = vmatmul.msk.f32.gmra.mxu1 %vm142_vm1, %v5484_v55  ;;  %5674 = vmatmul.msk.f32.gmra.mxu2 %vm142_vm1, %v5609_v59  ;;  %v4456_v61 = vpop.f32.mrf.mxu0  ;;  %v5485_v6 = vld [vmem:[%s8898_s0 + $0x182] sm:$0xff] }
 0x355   :  { %v4695_v39 = vadd.f32 %v7956_v9, %v4629_v62  ;;  %5803 = vmatmul.msk.f32.gmra.mxu3 %vm142_vm1, %v5738_v2  ;;  %v5486_v62 = vld [vmem:[%s8898_s0 + $0x18a] sm:$0xff] }
 0x356   :  { %v3390_v0 = vpop.f32.mrf.mxu2  ;;  %5932 = vmatmul.msk.f32.gmra.mxu0 %vm142_vm1, %v5482_v35  ;;  %v5739_v35 = vld [vmem:[%s8898_s0 + $0x169] sm:$0xff] }
 0x357   :  { %v4759_v38 = vmax.f32 %v4695_v39, 0.0  ;;  %v3564_v54 = vadd.f32 %v3390_v0, %v3030_v5 }
 0x358   :  { %v8113_v20 = vpop.f32.mrf.mxu1  ;;  %v3923_v22 = vpop.f32.mrf.mxu3 }
 0x359   :  { %v4831_v37 = vsel %vm4815_vm2, %v4759_v38, 0.0  ;;  %v4097_v12 = vadd.f32 %v3923_v22, %v3564_v54  ;;  %v3032_v38 = vadd.f32 %v8056_v24, %v6924_v51  ;;  %v5612_v51 = vld [vmem:[%s8898_s0 + $0x180] sm:$0xff] }
 0x35a   :  { %v4832_v58 = vadd.f32 %v4831_v37, %v4830_v26 }
 0x35b   :  { %v4630_v60 = vadd.f32 %v4456_v61, %v4097_v12  ;;  %5550 = vmatmul.msk.f32.gmra.mxu1 %vm142_vm1, %v5485_v6  ;;  %5675 = vmatmul.msk.f32.gmra.mxu2 %vm142_vm1, %v5610_v7  ;;  %v4459_v48 = vpop.f32.mrf.mxu0 }
 0x35d   :  { %v4696_v3 = vadd.f32 %v7956_v9, %v4630_v60  ;;  %5804 = vmatmul.msk.f32.gmra.mxu3 %vm142_vm1, %v5739_v35  ;;  %v5487_v35 = vld [vmem:[%s8898_s0 + $0x1ca] sm:$0xff] }
 0x35e   :  { %v3393_v59 = vpop.f32.mrf.mxu2  ;;  %5933 = vmatmul.msk.f32.gmra.mxu0 %vm142_vm1, %v5483_v16  ;;  %v5740_v16 = vld [vmem:[%s8898_s0 + $0x171] sm:$0xff] }
 0x35f   :  { %v4760_v17 = vmax.f32 %v4696_v3, 0.0  ;;  %v3565_v41 = vadd.f32 %v3393_v59, %v3031_v43  ;;  %v3033_v59 = vadd.f32 %v8075_v18, %v6943_v8  ;;  %v5613_v8 = vld [vmem:[%s8898_s0 + $0x188] sm:$0xff] }
 0x360   :  { %v8132_v26 = vpop.f32.mrf.mxu1  ;;  %v3926_v2 = vpop.f32.mrf.mxu3 }
 0x361   :  { %v4833_v34 = vsel %vm4815_vm2, %v4760_v17, 0.0  ;;  %v4098_v61 = vadd.f32 %v3926_v2, %v3565_v41 }
 0x362   :  { %v4834_v5 = vadd.f32 %v4833_v34, %v4832_v58 }
 0x363   :  { %v4631_v39 = vadd.f32 %v4459_v48, %v4098_v61  ;;  %5551 = vmatmul.msk.f32.gmra.mxu1 %vm142_vm1, %v5486_v62  ;;  %5676 = vmatmul.msk.f32.gmra.mxu2 %vm142_vm1, %v5611_v27  ;;  %v4462_v0 = vpop.f32.mrf.mxu0 }
 0x365   :  { %v4697_v54 = vadd.f32 %v7956_v9, %v4631_v39  ;;  %5805 = vmatmul.msk.f32.gmra.mxu3 %vm142_vm1, %v5740_v16 }
 0x366   :  { %v3396_v22 = vpop.f32.mrf.mxu2  ;;  %5934 = vmatmul.msk.f32.gmra.mxu0 %vm142_vm1, %v5484_v55  ;;  %v5741_v55 = vld [vmem:[%s8898_s0 + $0x181] sm:$0xff] }
 0x367   :  { %v4761_v7 = vmax.f32 %v4697_v54, 0.0  ;;  %v3566_v37 = vadd.f32 %v3396_v22, %v3032_v38  ;;  %v3034_v54 = vadd.f32 %v8094_v14, %v6965_v29  ;;  %v5614_v29 = vld [vmem:[%s8898_s0 + $0x198] sm:$0xff] }
 0x368   :  { %v8151_v12 = vpop.f32.mrf.mxu1  ;;  %v3929_v58 = vpop.f32.mrf.mxu3 }
 0x369   :  { %v4835_v24 = vsel %vm4815_vm2, %v4761_v7, 0.0  ;;  %v4099_v60 = vadd.f32 %v3929_v58, %v3566_v37 }
 0x36a   :  { %v4836_v48 = vadd.f32 %v4835_v24, %v4834_v5  ;;  %v5488_v5 = vld [vmem:[%s8898_s0 + $0x1d2] sm:$0xff]  ;;  %v5489_v24 = vld [vmem:[%s8898_s0 + $0x1e2] sm:$0xff] }
 0x36b   :  { %v4632_v43 = vadd.f32 %v4462_v0, %v4099_v60  ;;  %5552 = vmatmul.msk.f32.gmra.mxu1 %vm142_vm1, %v5487_v35  ;;  %5677 = vmatmul.msk.f32.gmra.mxu2 %vm142_vm1, %v5612_v51  ;;  %v4465_v3 = vpop.f32.mrf.mxu0 }
 0x36d   :  { %v4698_v17 = vadd.f32 %v7956_v9, %v4632_v43  ;;  %5806 = vmatmul.msk.f32.gmra.mxu3 %vm142_vm1, %v5741_v55 }
 0x36e   :  { %v3399_v41 = vpop.f32.mrf.mxu2  ;;  %5935 = vmatmul.msk.f32.gmra.mxu0 %vm142_vm1, %v5485_v6  ;;  %v5742_v6 = vld [vmem:[%s8898_s0 + $0x189] sm:$0xff] }
 0x36f   :  { %v4762_v2 = vmax.f32 %v4698_v17, 0.0  ;;  %v3567_v27 = vadd.f32 %v3399_v41, %v3033_v59  ;;  %v3035_v59 = vadd.f32 %v8113_v20, %v6987_v44  ;;  %v5615_v44 = vld [vmem:[%s8898_s0 + $0x1a0] sm:$0xff] }
 0x370   :  { %v8170_v34 = vpop.f32.mrf.mxu1  ;;  %v3932_v61 = vpop.f32.mrf.mxu3 }
 0x371   :  { %v4837_v18 = vsel %vm4815_vm2, %v4762_v2, 0.0  ;;  %v4100_v16 = vadd.f32 %v3932_v61, %v3567_v27 }
 0x372   :  { %v4838_v39 = vadd.f32 %v4837_v18, %v4836_v48 }
 0x373   :  { %v4633_v0 = vadd.f32 %v4465_v3, %v4100_v16  ;;  %5553 = vmatmul.msk.f32.gmra.mxu1 %vm142_vm1, %v5488_v5  ;;  %5678 = vmatmul.msk.f32.gmra.mxu2 %vm142_vm1, %v5613_v8  ;;  %v4468_v38 = vpop.f32.mrf.mxu0  ;;  %v5872_v3 = vld [vmem:[%s8898_s0 + $0x19a] sm:$0xff]  ;;  %v5490_v8 = vld [vmem:[%s8898_s0 + $0x1ea] sm:$0xff] }
 0x375   :  { %v4699_v22 = vadd.f32 %v7956_v9, %v4633_v0  ;;  %5807 = vmatmul.msk.f32.gmra.mxu3 %vm142_vm1, %v5742_v6 }
 0x376   :  { %v3402_v7 = vpop.f32.mrf.mxu2  ;;  %5936 = vmatmul.msk.f32.gmra.mxu0 %vm142_vm1, %v5486_v62  ;;  %v5743_v62 = vld [vmem:[%s8898_s0 + $0x199] sm:$0xff] }
 0x377   :  { %v4763_v37 = vmax.f32 %v4699_v22, 0.0  ;;  %v3568_v58 = vadd.f32 %v3402_v7, %v3034_v54  ;;  %v3036_v54 = vadd.f32 %v8132_v26, %v7006_v52  ;;  %v5616_v52 = vld [vmem:[%s8898_s0 + $0x1e0] sm:$0xff] }
 0x378   :  { %v8189_v35 = vpop.f32.mrf.mxu1  ;;  %v3935_v51 = vpop.f32.mrf.mxu3 }
 0x379   :  { %v4839_v14 = vsel %vm4815_vm2, %v4763_v37, 0.0  ;;  %v4101_v60 = vadd.f32 %v3935_v51, %v3568_v58 }
 0x37a   :  { %v4840_v48 = vadd.f32 %v4839_v14, %v4838_v39  ;;  %v5744_v39 = vld [vmem:[%s8898_s0 + $0x1a1] sm:$0xff] }
 0x37b   :  { %v4634_v55 = vadd.f32 %v4468_v38, %v4101_v60  ;;  %5554 = vmatmul.msk.f32.gmra.mxu1 %vm142_vm1, %v5489_v24  ;;  %5679 = vmatmul.msk.f32.gmra.mxu2 %vm142_vm1, %v5614_v29  ;;  %v4471_v43 = vpop.f32.mrf.mxu0  ;;  %v5873_v38 = vld [vmem:[%s8898_s0 + $0x1a2] sm:$0xff]  ;;  %v5491_v14 = vld [vmem:[%s8898_s0 + $0x1fa] sm:$0xff] }
 0x37d   :  { %v4700_v17 = vadd.f32 %v7956_v9, %v4634_v55  ;;  %5808 = vmatmul.msk.f32.gmra.mxu3 %vm142_vm1, %v5743_v62  ;;  %v5745_v62 = vld [vmem:[%s8898_s0 + $0x1e1] sm:$0xff] }
 0x37e   :  { %v3405_v41 = vpop.f32.mrf.mxu2  ;;  %5937 = vmatmul.msk.f32.gmra.mxu0 %vm142_vm1, %v5872_v3  ;;  %v3037_v3 = vadd.f32 %v8151_v12, %v7025_v53  ;;  %v5617_v53 = vld [vmem:[%s8898_s0 + $0x1e8] sm:$0xff] }
 0x37f   :  { %v4764_v2 = vmax.f32 %v4700_v17, 0.0  ;;  %v3569_v27 = vadd.f32 %v3405_v41, %v3035_v59 }
 0x380   :  { %v8211_v61 = vpop.f32.mrf.mxu1  ;;  %v3938_v5 = vpop.f32.mrf.mxu3 }
 0x381   :  { %v4841_v20 = vsel %vm4815_vm2, %v4764_v2, 0.0  ;;  %v4102_v18 = vadd.f32 %v3938_v5, %v3569_v27 }
 0x382   :  { %v4842_v16 = vadd.f32 %v4841_v20, %v4840_v48 }
 0x383   :  { %v4635_v6 = vadd.f32 %v4471_v43, %v4102_v18  ;;  %5555 = vmatmul.msk.f32.gmra.mxu1 %vm142_vm1, %v5490_v8  ;;  %5680 = vmatmul.msk.f32.gmra.mxu2 %vm142_vm1, %v5615_v44  ;;  %v4474_v0 = vpop.f32.mrf.mxu0  ;;  %v5492_v44 = vld [vmem:[%s8898_s0 + $0x202] sm:$0xff] }
 0x385   :  { %v4701_v22 = vadd.f32 %v7956_v9, %v4635_v6  ;;  %5809 = vmatmul.msk.f32.gmra.mxu3 %vm142_vm1, %v5744_v39  ;;  %v3038_v6 = vadd.f32 %v8170_v34, %v7044_v47  ;;  %v5618_v47 = vld [vmem:[%s8898_s0 + $0x1f8] sm:$0xff] }
 0x386   :  { %v3408_v7 = vpop.f32.mrf.mxu2  ;;  %5938 = vmatmul.msk.f32.gmra.mxu0 %vm142_vm1, %v5873_v38 }
 0x387   :  { %v4765_v37 = vmax.f32 %v4701_v22, 0.0  ;;  %v3570_v58 = vadd.f32 %v3408_v7, %v3036_v54 }
 0x388   :  { %v8233_v51 = vpop.f32.mrf.mxu1  ;;  %v3941_v29 = vpop.f32.mrf.mxu3 }
 0x389   :  { %v4843_v26 = vsel %vm4815_vm2, %v4765_v37, 0.0  ;;  %v4103_v60 = vadd.f32 %v3941_v29, %v3570_v58  ;;  %v5493_v58 = vld [vmem:[%s8898_s0 + $0x212] sm:$0xff] }
 0x38a   :  { %v4844_v48 = vadd.f32 %v4843_v26, %v4842_v16 }
 0x38b   :  { %v4636_v55 = vadd.f32 %v4474_v0, %v4103_v60  ;;  %5556 = vmatmul.msk.f32.gmra.mxu1 %vm142_vm1, %v5491_v14  ;;  %5681 = vmatmul.msk.f32.gmra.mxu2 %vm142_vm1, %v5616_v52  ;;  %v4477_v43 = vpop.f32.mrf.mxu0 }
 0x38d   :  { %v4702_v59 = vadd.f32 %v7956_v9, %v4636_v55  ;;  %5810 = vmatmul.msk.f32.gmra.mxu3 %vm142_vm1, %v5745_v62 }
 0x38e   :  { %v3411_v17 = vpop.f32.mrf.mxu2  ;;  %5939 = vmatmul.msk.f32.gmra.mxu0 %vm142_vm1, %v5489_v24  ;;  %v5746_v24 = vld [vmem:[%s8898_s0 + $0x1e9] sm:$0xff] }
 0x38f   :  { %v4766_v41 = vmax.f32 %v4702_v59, 0.0  ;;  %v3571_v2 = vadd.f32 %v3411_v17, %v3037_v3 }
 0x390   :  { %v8252_v27 = vpop.f32.mrf.mxu1  ;;  %v3944_v5 = vpop.f32.mrf.mxu3 }
 0x391   :  { %v4845_v12 = vsel %vm4815_vm2, %v4766_v41, 0.0  ;;  %v4104_v20 = vadd.f32 %v3944_v5, %v3571_v2  ;;  %v5494_v41 = vld [vmem:[%s8898_s0 + $0x21a] sm:$0xff] }
 0x392   :  { %v4846_v18 = vadd.f32 %v4845_v12, %v4844_v48  ;;  %v3039_v48 = vadd.f32 %v8189_v35, %v7063_v50  ;;  %v5619_v50 = vld [vmem:[%s8898_s0 + $0x200] sm:$0xff] }
 0x393   :  { %v4637_v16 = vadd.f32 %v4477_v43, %v4104_v20  ;;  %5557 = vmatmul.msk.f32.gmra.mxu1 %vm142_vm1, %v5492_v44  ;;  %5682 = vmatmul.msk.f32.gmra.mxu2 %vm142_vm1, %v5617_v53  ;;  %v4480_v39 = vpop.f32.mrf.mxu0  ;;  %v3040_v20 = vadd.f32 %v8211_v61, %v7082_v31  ;;  %v5620_v31 = vld [vmem:[%s8898_s0 + $0x210] sm:$0xff] }
 0x395   :  { %v4703_v0 = vadd.f32 %v7956_v9, %v4637_v16  ;;  %5811 = vmatmul.msk.f32.gmra.mxu3 %vm142_vm1, %v5746_v24 }
 0x396   :  { %v3414_v38 = vpop.f32.mrf.mxu2  ;;  %5940 = vmatmul.msk.f32.gmra.mxu0 %vm142_vm1, %v5490_v8  ;;  %v5747_v8 = vld [vmem:[%s8898_s0 + $0x1f9] sm:$0xff] }
 0x397   :  { %v4767_v54 = vmax.f32 %v4703_v0, 0.0  ;;  %v3572_v22 = vadd.f32 %v3414_v38, %v3038_v6  ;;  %v5495_v38 = vld [vmem:[%s8898_s0 + $0x22a] sm:$0xff] }
 0x398   :  { %v8271_v7 = vpop.f32.mrf.mxu1  ;;  %v3947_v37 = vpop.f32.mrf.mxu3 }
 0x399   :  { %v4847_v34 = vsel %vm4815_vm2, %v4767_v54, 0.0  ;;  %v4105_v29 = vadd.f32 %v3947_v37, %v3572_v22 }
 0x39a   :  { %v4848_v52 = vadd.f32 %v4847_v34, %v4846_v18  ;;  %v3041_v34 = vadd.f32 %v8233_v51, %v7101_v63  ;;  %v5621_v63 = vld [vmem:[%s8898_s0 + $0x218] sm:$0xff] }
 0x39b   :  { %v4638_v26 = vadd.f32 %v4480_v39, %v4105_v29  ;;  %5558 = vmatmul.msk.f32.gmra.mxu1 %vm142_vm1, %v5493_v58  ;;  %5683 = vmatmul.msk.f32.gmra.mxu2 %vm142_vm1, %v5618_v47  ;;  %v4483_v60 = vpop.f32.mrf.mxu0 }
 0x39d   :  { %v4704_v62 = vadd.f32 %v7956_v9, %v4638_v26  ;;  %5812 = vmatmul.msk.f32.gmra.mxu3 %vm142_vm1, %v5747_v8 }
 0x39e   :  { %v3417_v55 = vpop.f32.mrf.mxu2  ;;  %5941 = vmatmul.msk.f32.gmra.mxu0 %vm142_vm1, %v5491_v14  ;;  %v5748_v14 = vld [vmem:[%s8898_s0 + $0x201] sm:$0xff] }
 0x39f   :  { %v4768_v43 = vmax.f32 %v4704_v62, 0.0  ;;  %v3573_v3 = vadd.f32 %v3417_v55, %v3039_v48  ;;  %v5496_v62 = vld [vmem:[%s8898_s0 + $0x232] sm:$0xff] }
 0x3a0   :  { %v8290_v59 = vpop.f32.mrf.mxu1  ;;  %v3950_v17 = vpop.f32.mrf.mxu3 }
 0x3a1   :  { %v4849_v35 = vsel %vm4815_vm2, %v4768_v43, 0.0  ;;  %v4106_v2 = vadd.f32 %v3950_v17, %v3573_v3 }
 0x3a2   :  { %v4850_v5 = vadd.f32 %v4849_v35, %v4848_v52 }
 0x3a3   :  { %v4639_v53 = vadd.f32 %v4483_v60, %v4106_v2  ;;  %5559 = vmatmul.msk.f32.gmra.mxu1 %vm142_vm1, %v5494_v41  ;;  %5684 = vmatmul.msk.f32.gmra.mxu2 %vm142_vm1, %v5619_v50  ;;  %v4486_v12 = vpop.f32.mrf.mxu0  ;;  %v3042_v50 = vadd.f32 %v8252_v27, %v7120_v56  ;;  %v5622_v56 = vld [vmem:[%s8898_s0 + $0x228] sm:$0xff] }
 0x3a5   :  { %v4705_v18 = vadd.f32 %v7956_v9, %v4639_v53  ;;  %5813 = vmatmul.msk.f32.gmra.mxu3 %vm142_vm1, %v5748_v14 }
 0x3a6   :  { %v3420_v24 = vpop.f32.mrf.mxu2  ;;  %5942 = vmatmul.msk.f32.gmra.mxu0 %vm142_vm1, %v5492_v44  ;;  %v5749_v44 = vld [vmem:[%s8898_s0 + $0x211] sm:$0xff] }
 0x3a7   :  { %v4769_v16 = vmax.f32 %v4705_v18, 0.0  ;;  %v3574_v39 = vadd.f32 %v3420_v24, %v3040_v20  ;;  %v5497_v20 = vld [vmem:[%s8898_s0 + $0x242] sm:$0xff] }
 0x3a8   :  { %v8309_v6 = vpop.f32.mrf.mxu1  ;;  %v3953_v0 = vpop.f32.mrf.mxu3 }
 0x3a9   :  { %v4851_v61 = vsel %vm4815_vm2, %v4769_v16, 0.0  ;;  %v4107_v54 = vadd.f32 %v3953_v0, %v3574_v39  ;;  %v3043_v0 = vadd.f32 %v8271_v7, %v7139_v25  ;;  %v5623_v25 = vld [vmem:[%s8898_s0 + $0x230] sm:$0xff] }
 0x3aa   :  { %v4852_v22 = vadd.f32 %v4851_v61, %v4850_v5 }
 0x3ab   :  { %v4640_v37 = vadd.f32 %v4486_v12, %v4107_v54  ;;  %5560 = vmatmul.msk.f32.gmra.mxu1 %vm142_vm1, %v5495_v38  ;;  %5685 = vmatmul.msk.f32.gmra.mxu2 %vm142_vm1, %v5620_v31  ;;  %v4489_v47 = vpop.f32.mrf.mxu0 }
 0x3ad   :  { %v4706_v29 = vadd.f32 %v7956_v9, %v4640_v37  ;;  %5814 = vmatmul.msk.f32.gmra.mxu3 %vm142_vm1, %v5749_v44 }
 0x3ae   :  { %v3423_v52 = vpop.f32.mrf.mxu2  ;;  %5943 = vmatmul.msk.f32.gmra.mxu0 %vm142_vm1, %v5493_v58  ;;  %v5750_v58 = vld [vmem:[%s8898_s0 + $0x219] sm:$0xff] }
 0x3af   :  { %v4770_v8 = vmax.f32 %v4706_v29, 0.0  ;;  %v3575_v26 = vadd.f32 %v3423_v52, %v3041_v34 }
 0x3b0   :  { %v8328_v60 = vpop.f32.mrf.mxu1  ;;  %v3956_v48 = vpop.f32.mrf.mxu3 }
 0x3b1   :  { %v4853_v51 = vsel %vm4815_vm2, %v4770_v8, 0.0  ;;  %v4108_v55 = vadd.f32 %v3956_v48, %v3575_v26  ;;  %v3044_v26 = vadd.f32 %v8290_v59, %v7158_v19  ;;  %v5624_v19 = vld [vmem:[%s8898_s0 + $0x240] sm:$0xff] }
 0x3b2   :  { %v4854_v43 = vadd.f32 %v4853_v51, %v4852_v22 }
 0x3b3   :  { %v4641_v3 = vadd.f32 %v4489_v47, %v4108_v55  ;;  %5561 = vmatmul.msk.f32.gmra.mxu1 %vm142_vm1, %v5496_v62  ;;  %5686 = vmatmul.msk.f32.gmra.mxu2 %vm142_vm1, %v5621_v63  ;;  %v4492_v17 = vpop.f32.mrf.mxu0  ;;  %v5498_v47 = vld [vmem:[%s8898_s0 + $0x24a] sm:$0xff] }
 0x3b5   :  { %v4707_v35 = vadd.f32 %v7956_v9, %v4641_v3  ;;  %5815 = vmatmul.msk.f32.gmra.mxu3 %vm142_vm1, %v5750_v58  ;;  %v5499_v3 = vld [vmem:[%s8898_s0 + $0x25a] sm:$0xff] }
 0x3b6   :  { %v3426_v2 = vpop.f32.mrf.mxu2  ;;  %5944 = vmatmul.msk.f32.gmra.mxu0 %vm142_vm1, %v5494_v41  ;;  %v5751_v41 = vld [vmem:[%s8898_s0 + $0x229] sm:$0xff] }
 0x3b7   :  { %v4771_v5 = vmax.f32 %v4707_v35, 0.0  ;;  %v3576_v14 = vadd.f32 %v3426_v2, %v3042_v50 }
 0x3b8   :  { %v8347_v53 = vpop.f32.mrf.mxu1  ;;  %v3959_v12 = vpop.f32.mrf.mxu3 }
 0x3b9   :  { %v4855_v27 = vsel %vm4815_vm2, %v4771_v5, 0.0  ;;  %v4109_v18 = vadd.f32 %v3959_v12, %v3576_v14  ;;  %v3045_v5 = vadd.f32 %v8309_v6, %v7177_v49  ;;  %v5625_v49 = vld [vmem:[%s8898_s0 + $0x248] sm:$0xff] }
 0x3ba   :  { %v4856_v24 = vadd.f32 %v4855_v27, %v4854_v43 }
 0x3bb   :  { %v4642_v16 = vadd.f32 %v4492_v17, %v4109_v18  ;;  %5562 = vmatmul.msk.f32.gmra.mxu1 %vm142_vm1, %v5497_v20  ;;  %5687 = vmatmul.msk.f32.gmra.mxu2 %vm142_vm1, %v5622_v56  ;;  %v4495_v39 = vpop.f32.mrf.mxu0 }
 0x3bd   :  { %v4708_v31 = vadd.f32 %v7956_v9, %v4642_v16  ;;  %5816 = vmatmul.msk.f32.gmra.mxu3 %vm142_vm1, %v5751_v41  ;;  %v5500_v41 = vld [vmem:[%s8898_s0 + $0x262] sm:$0xff] }
 0x3be   :  { %v3429_v61 = vpop.f32.mrf.mxu2  ;;  %5945 = vmatmul.msk.f32.gmra.mxu0 %vm142_vm1, %v5495_v38  ;;  %v5752_v38 = vld [vmem:[%s8898_s0 + $0x231] sm:$0xff] }
 0x3bf   :  { %v4772_v54 = vmax.f32 %v4708_v31, 0.0  ;;  %v3577_v22 = vadd.f32 %v3429_v61, %v3043_v0  ;;  %v3046_v61 = vadd.f32 %v8328_v60, %v7196_v4  ;;  %v5626_v4 = vld [vmem:[%s8898_s0 + $0x258] sm:$0xff] }
 0x3c0   :  { %v8366_v44 = vpop.f32.mrf.mxu1  ;;  %v3962_v37 = vpop.f32.mrf.mxu3 }
 0x3c1   :  { %v4857_v7 = vsel %vm4815_vm2, %v4772_v54, 0.0  ;;  %v4110_v34 = vadd.f32 %v3962_v37, %v3577_v22 }
 0x3c2   :  { %v4858_v29 = vadd.f32 %v4857_v7, %v4856_v24 }
 0x3c3   :  { %v4643_v52 = vadd.f32 %v4495_v39, %v4110_v34  ;;  %5563 = vmatmul.msk.f32.gmra.mxu1 %vm142_vm1, %v5498_v47  ;;  %5688 = vmatmul.msk.f32.gmra.mxu2 %vm142_vm1, %v5623_v25  ;;  %v4498_v8 = vpop.f32.mrf.mxu0 }
 0x3c5   :  { %v4709_v48 = vadd.f32 %v7956_v9, %v4643_v52  ;;  %5817 = vmatmul.msk.f32.gmra.mxu3 %vm142_vm1, %v5752_v38 }
 0x3c6   :  { %v3432_v63 = vpop.f32.mrf.mxu2  ;;  %5946 = vmatmul.msk.f32.gmra.mxu0 %vm142_vm1, %v5496_v62  ;;  %v5753_v62 = vld [vmem:[%s8898_s0 + $0x241] sm:$0xff] }
 0x3c7   :  { %v4773_v51 = vmax.f32 %v4709_v48, 0.0  ;;  %v3578_v55 = vadd.f32 %v3432_v63, %v3044_v26  ;;  %v3047_v48 = vadd.f32 %v8347_v53, %v7215_v1  ;;  %v5627_v1 = vld [vmem:[%s8898_s0 + $0x260] sm:$0xff] }
 0x3c8   :  { %v8385_v43 = vpop.f32.mrf.mxu1  ;;  %v3965_v58 = vpop.f32.mrf.mxu3 }
 0x3c9   :  { %v4859_v59 = vsel %vm4815_vm2, %v4773_v51, 0.0  ;;  %v4111_v17 = vadd.f32 %v3965_v58, %v3578_v55 }
 0x3ca   :  { %v4860_v50 = vadd.f32 %v4859_v59, %v4858_v29  ;;  %v5501_v29 = vld [vmem:[%s8898_s0 + $0x272] sm:$0xff] }
 0x3cb   :  { %v4644_v35 = vadd.f32 %v4498_v8, %v4111_v17  ;;  %5564 = vmatmul.msk.f32.gmra.mxu1 %vm142_vm1, %v5499_v3  ;;  %5689 = vmatmul.msk.f32.gmra.mxu2 %vm142_vm1, %v5624_v19  ;;  %v4501_v2 = vpop.f32.mrf.mxu0  ;;  %v5502_v17 = vld [vmem:[%s8898_s0 + $0x27a] sm:$0xff] }
 0x3cd   :  { %v4710_v14 = vadd.f32 %v7956_v9, %v4644_v35  ;;  %5818 = vmatmul.msk.f32.gmra.mxu3 %vm142_vm1, %v5753_v62 }
 0x3ce   :  { %v3435_v12 = vpop.f32.mrf.mxu2  ;;  %5947 = vmatmul.msk.f32.gmra.mxu0 %vm142_vm1, %v5497_v20  ;;  %v5754_v20 = vld [vmem:[%s8898_s0 + $0x249] sm:$0xff] }
 0x3cf   :  { %v4774_v56 = vmax.f32 %v4710_v14, 0.0  ;;  %v3579_v27 = vadd.f32 %v3435_v12, %v3045_v5  ;;  %v3048_v5 = vadd.f32 %v8366_v44, %v7234_v32  ;;  %v5628_v32 = vld [vmem:[%s8898_s0 + $0x270] sm:$0xff] }
 0x3d0   :  { %v8404_v18 = vpop.f32.mrf.mxu1  ;;  %v3968_v24 = vpop.f32.mrf.mxu3 }
 0x3d1   :  { %v4861_v6 = vsel %vm4815_vm2, %v4774_v56, 0.0  ;;  %v4112_v16 = vadd.f32 %v3968_v24, %v3579_v27 }
 0x3d2   :  { %v4862_v39 = vadd.f32 %v4861_v6, %v4860_v50  ;;  %v5503_v6 = vld [vmem:[%s8898_s0 + $0x28a] sm:$0xff] }
 0x3d3   :  { %v4645_v0 = vadd.f32 %v4501_v2, %v4112_v16  ;;  %5565 = vmatmul.msk.f32.gmra.mxu1 %vm142_vm1, %v5500_v41  ;;  %5690 = vmatmul.msk.f32.gmra.mxu2 %vm142_vm1, %v5625_v49  ;;  %v4504_v31 = vpop.f32.mrf.mxu0 }
 0x3d5   :  { %v4711_v54 = vadd.f32 %v7956_v9, %v4645_v0  ;;  %5819 = vmatmul.msk.f32.gmra.mxu3 %vm142_vm1, %v5754_v20  ;;  %v3049_v0 = vadd.f32 %v8385_v43, %v7253_v13  ;;  %v5504_v13 = vld [vmem:[%s8898_s0 + $0x292] sm:$0xff] }
 0x3d6   :  { %v3438_v22 = vpop.f32.mrf.mxu2  ;;  %5948 = vmatmul.msk.f32.gmra.mxu0 %vm142_vm1, %v5498_v47  ;;  %v5755_v47 = vld [vmem:[%s8898_s0 + $0x259] sm:$0xff] }
 0x3d7   :  { %v4775_v37 = vmax.f32 %v4711_v54, 0.0  ;;  %v3580_v25 = vadd.f32 %v3438_v22, %v3046_v61  ;;  %v5629_v43 = vld [vmem:[%s8898_s0 + $0x278] sm:$0xff] }
 0x3d8   :  { %v8423_v7 = vpop.f32.mrf.mxu1  ;;  %v3971_v34 = vpop.f32.mrf.mxu3 }
 0x3d9   :  { %v4863_v60 = vsel %vm4815_vm2, %v4775_v37, 0.0  ;;  %v4113_v38 = vadd.f32 %v3971_v34, %v3580_v25 }
 0x3da   :  { %v4864_v52 = vadd.f32 %v4863_v60, %v4862_v39 }
 0x3db   :  { %v4646_v8 = vadd.f32 %v4504_v31, %v4113_v38  ;;  %5566 = vmatmul.msk.f32.gmra.mxu1 %vm142_vm1, %v5501_v29  ;;  %5691 = vmatmul.msk.f32.gmra.mxu2 %vm142_vm1, %v5626_v4  ;;  %v4507_v26 = vpop.f32.mrf.mxu0  ;;  %v8480_v31 = vld [vmem:[%s8899_s1 + $0x24] ss:$0 sm:$0xff] }
 0x3dd   :  { %v4712_v63 = vadd.f32 %v7956_v9, %v4646_v8  ;;  %5820 = vmatmul.msk.f32.gmra.mxu3 %vm142_vm1, %v5755_v47  ;;  %v3050_v8 = vadd.f32 %v8404_v18, %v7272_v36  ;;  %v5630_v36 = vld [vmem:[%s8898_s0 + $0x288] sm:$0xff] }
 0x3de   :  { %v3441_v51 = vpop.f32.mrf.mxu2  ;;  %5949 = vmatmul.msk.f32.gmra.mxu0 %vm142_vm1, %v5499_v3  ;;  %v5756_v3 = vld [vmem:[%s8898_s0 + $0x261] sm:$0xff] }
 0x3df   :  { %v4776_v55 = vmax.f32 %v4712_v63, 0.0  ;;  %v3581_v58 = vadd.f32 %v3441_v51, %v3047_v48 }
 0x3e0   :  { %v8442_v19 = vpop.f32.mrf.mxu1  ;;  %v3974_v59 = vpop.f32.mrf.mxu3 }
 0x3e1   :  { %v4865_v53 = vsel %vm4815_vm2, %v4776_v55, 0.0  ;;  %v4114_v50 = vadd.f32 %v3974_v59, %v3581_v58  ;;  %v5505_v59 = vld [vmem:[%s8898_s0 + $0x2a2] sm:$0xff] }
 0x3e2   :  { %v4866_v62 = vadd.f32 %v4865_v53, %v4864_v52 }
 0x3e3   :  { %v4647_v35 = vadd.f32 %v4507_v26, %v4114_v50  ;;  %5567 = vmatmul.msk.f32.gmra.mxu1 %vm142_vm1, %v5502_v17  ;;  %5692 = vmatmul.msk.f32.gmra.mxu2 %vm142_vm1, %v5627_v1  ;;  %v4510_v2 = vpop.f32.mrf.mxu0 }
 0x3e5   :  { %v4713_v14 = vadd.f32 %v7956_v9, %v4647_v35  ;;  %5821 = vmatmul.msk.f32.gmra.mxu3 %vm142_vm1, %v5756_v3  ;;  %v3051_v3 = vadd.f32 %v8423_v7, %v7291_v40  ;;  %v5631_v40 = vld [vmem:[%s8898_s0 + $0x290] sm:$0xff] }
 0x3e6   :  { %v3444_v12 = vpop.f32.mrf.mxu2  ;;  %5950 = vmatmul.msk.f32.gmra.mxu0 %vm142_vm1, %v5500_v41  ;;  %v5757_v41 = vld [vmem:[%s8898_s0 + $0x271] sm:$0xff] }
 0x3e7   :  { %v4777_v56 = vmax.f32 %v4713_v14, 0.0  ;;  %v3582_v27 = vadd.f32 %v3444_v12, %v3048_v5 }
 0x3e8   :  { %v8461_v24 = vpop.f32.mrf.mxu1  ;;  %v3977_v49 = vpop.f32.mrf.mxu3 }
 0x3e9   :  { %v4867_v9 = vsel %vm4815_vm2, %v4777_v56, 0.0  ;;  %v4115_v44 = vadd.f32 %v3977_v49, %v3582_v27  ;;  %v5506_v27 = vld [vmem:[%s8898_s0 + $0x2aa] sm:$0xff] }
 0x3ea   :  { %v4868_v16 = vadd.f32 %v4867_v9, %v4866_v62 }
 0x3eb   :  { %v4648_v39 = vadd.f32 %v4510_v2, %v4115_v44  ;;  %5568 = vmatmul.msk.f32.gmra.mxu1 %vm142_vm1, %v5503_v6  ;;  %5693 = vmatmul.msk.f32.gmra.mxu2 %vm142_vm1, %v5628_v32  ;;  %v4513_v20 = vpop.f32.mrf.mxu0 }
 0x3ed   :  { %v4714_v61 = vadd.f32 %v8480_v31, %v4648_v39  ;;  %5822 = vmatmul.msk.f32.gmra.mxu3 %vm142_vm1, %v5757_v41 }
 0x3ee   :  { %v3447_v54 = vpop.f32.mrf.mxu2  ;;  %5951 = vmatmul.msk.f32.gmra.mxu0 %vm142_vm1, %v5501_v29  ;;  %v5758_v29 = vld [vmem:[%s8898_s0 + $0x279] sm:$0xff] }
 0x3ef   :  { %v4778_v22 = vmax.f32 %v4714_v61, 0.0  ;;  %v3583_v37 = vadd.f32 %v3447_v54, %v3049_v0 }
 0x3f0   :  { %v8485_v25 = vpop.f32.mrf.mxu1  ;;  %v3980_v34 = vpop.f32.mrf.mxu3 }
 0x3f1   :  { %v4869_v4 = vsel %vm4815_vm2, %v4778_v22, 0.0  ;;  %v4116_v60 = vadd.f32 %v3980_v34, %v3583_v37  ;;  %v5507_v22 = vld [vmem:[%s8898_s0 + $0x2ba] sm:$0xff] }
 0x3f2   :  { %v4870_v38 = vadd.f32 %v4869_v4, %v4868_v16  ;;  %v3052_v16 = vadd.f32 %v8442_v19, %v7310_v33  ;;  %v5632_v33 = vld [vmem:[%s8898_s0 + $0x2a0] sm:$0xff] }
 0x3f3   :  { %v4649_v52 = vadd.f32 %v4513_v20, %v4116_v60  ;;  %5569 = vmatmul.msk.f32.gmra.mxu1 %vm142_vm1, %v5504_v13  ;;  %5694 = vmatmul.msk.f32.gmra.mxu2 %vm142_vm1, %v5629_v43  ;;  %v4516_v47 = vpop.f32.mrf.mxu0  ;;  %v3053_v60 = vadd.f32 %v8461_v24, %v7329_v30  ;;  %v5633_v30 = vld [vmem:[%s8898_s0 + $0x2a8] sm:$0xff] }
 0x3f5   :  { %v4715_v26 = vadd.f32 %v8480_v31, %v4649_v52  ;;  %5823 = vmatmul.msk.f32.gmra.mxu3 %vm142_vm1, %v5758_v29 }
 0x3f6   :  { %v3450_v48 = vpop.f32.mrf.mxu2  ;;  %5952 = vmatmul.msk.f32.gmra.mxu0 %vm142_vm1, %v5502_v17  ;;  %v5759_v17 = vld [vmem:[%s8898_s0 + $0x289] sm:$0xff] }
 0x3f7   :  { %v4779_v63 = vmax.f32 %v4715_v26, 0.0  ;;  %v3584_v51 = vadd.f32 %v3450_v48, %v3050_v8  ;;  %v5508_v48 = vld [vmem:[%s8898_s0 + $0x2c2] sm:$0xff] }
 0x3f8   :  { %v8504_v55 = vpop.f32.mrf.mxu1  ;;  %v3983_v58 = vpop.f32.mrf.mxu3 }
 0x3f9   :  { %v4871_v18 = vsel %vm4815_vm2, %v4779_v63, 0.0  ;;  %v4117_v1 = vadd.f32 %v3983_v58, %v3584_v51  ;;  %v5762_v58 = vld [vmem:[%s8898_s0 + $0x2a9] sm:$0xff] }
 0x3fa   :  { %v4872_v53 = vadd.f32 %v4871_v18, %v4870_v38  ;;  %v3054_v18 = vadd.f32 %v8485_v25, %v7348_v28  ;;  %v5763_v25 = vld [vmem:[%s8898_s0 + $0x2b9] sm:$0xff] }
 0x3fb   :  { %v4650_v50 = vadd.f32 %v4516_v47, %v4117_v1  ;;  %5570 = vmatmul.msk.f32.gmra.mxu1 %vm142_vm1, %v5505_v59  ;;  %5695 = vmatmul.msk.f32.gmra.mxu2 %vm142_vm1, %v5630_v36  ;;  %v4519_v62 = vpop.f32.mrf.mxu0 }
 0x3fd   :  { %v4716_v35 = vadd.f32 %v8480_v31, %v4650_v50  ;;  %5824 = vmatmul.msk.f32.gmra.mxu3 %vm142_vm1, %v5759_v17 }
 0x3fe   :  { %v3453_v2 = vpop.f32.mrf.mxu2  ;;  %5953 = vmatmul.msk.f32.gmra.mxu0 %vm142_vm1, %v5503_v6  ;;  %v5760_v6 = vld [vmem:[%s8898_s0 + $0x291] sm:$0xff] }
 0x3ff   :  { %v4780_v5 = vmax.f32 %v4716_v35, 0.0  ;;  %v3585_v14 = vadd.f32 %v3453_v2, %v3051_v3  ;;  %v5634_v3 = vld [vmem:[%s8898_s0 + $0x2b8] sm:$0xff] }
 0x400   :  { %v8523_v12 = vpop.f32.mrf.mxu1  ;;  %v3986_v56 = vpop.f32.mrf.mxu3 }
 0x401   :  { %v4873_v7 = vsel %vm4815_vm2, %v4780_v5, 0.0  ;;  %v4118_v49 = vadd.f32 %v3986_v56, %v3585_v14  ;;  %v3055_v14 = vadd.f32 %v8504_v55, %v7367_v15  ;;  %v5635_v15 = vld [vmem:[%s8898_s0 + $0x2c0] sm:$0xff] }
 0x402   :  { %v4874_v32 = vadd.f32 %v4873_v7, %v4872_v53 }
 0x403   :  { %v4651_v9 = vadd.f32 %v4519_v62, %v4118_v49  ;;  %5571 = vmatmul.msk.f32.gmra.mxu1 %vm142_vm1, %v5506_v27  ;;  %5696 = vmatmul.msk.f32.gmra.mxu2 %vm142_vm1, %v5631_v40  ;;  %v4522_v44 = vpop.f32.mrf.mxu0  ;;  %v5509_v62 = vld [vmem:[%s8898_s0 + $0x2d2] sm:$0xff] }
 0x405   :  { %v4717_v41 = vadd.f32 %v8480_v31, %v4651_v9  ;;  %5825 = vmatmul.msk.f32.gmra.mxu3 %vm142_vm1, %v5760_v6  ;;  %v5510_v9 = vld [vmem:[%s8898_s0 + $0x2da] sm:$0xff] }
 0x406   :  { %v3456_v39 = vpop.f32.mrf.mxu2  ;;  %5954 = vmatmul.msk.f32.gmra.mxu0 %vm142_vm1, %v5504_v13  ;;  %v5761_v13 = vld [vmem:[%s8898_s0 + $0x2a1] sm:$0xff] }
 0x407   :  { %v4781_v20 = vmax.f32 %v4717_v41, 0.0  ;;  %v3586_v0 = vadd.f32 %v3456_v39, %v3052_v16  ;;  %v5764_v39 = vld [vmem:[%s8898_s0 + $0x2c1] sm:$0xff] }
 0x408   :  { %v8542_v61 = vpop.f32.mrf.mxu1  ;;  %v3989_v54 = vpop.f32.mrf.mxu3 }
 0x409   :  { %v4875_v19 = vsel %vm4815_vm2, %v4781_v20, 0.0  ;;  %v4119_v37 = vadd.f32 %v3989_v54, %v3586_v0  ;;  %v3056_v54 = vadd.f32 %v8523_v12, %v7386_v42  ;;  %v5636_v42 = vld [vmem:[%s8898_s0 + $0x2d0] sm:$0xff] }
 0x40a   :  { %v4876_v34 = vadd.f32 %v4875_v19, %v4874_v32 }
 0x40b   :  { %v4652_v43 = vadd.f32 %v4522_v44, %v4119_v37  ;;  %5572 = vmatmul.msk.f32.gmra.mxu1 %vm142_vm1, %v5507_v22  ;;  %5697 = vmatmul.msk.f32.gmra.mxu2 %vm142_vm1, %v5632_v33  ;;  %v4525_v4 = vpop.f32.mrf.mxu0 }
 0x40d   :  { %v4718_v38 = vadd.f32 %v8480_v31, %v4652_v43  ;;  %5826 = vmatmul.msk.f32.gmra.mxu3 %vm142_vm1, %v5761_v13  ;;  %v5511_v43 = vld [vmem:[%s8898_s0 + $0x2ea] sm:$0xff] }
 0x40e   :  { %v3459_v29 = vpop.f32.mrf.mxu2  ;;  %5955 = vmatmul.msk.f32.gmra.mxu0 %vm142_vm1, %v5505_v59 }
 0x40f   :  { %v4782_v52 = vmax.f32 %v4718_v38, 0.0  ;;  %v3587_v47 = vadd.f32 %v3459_v29, %v3053_v60  ;;  %v5765_v38 = vld [vmem:[%s8898_s0 + $0x2d1] sm:$0xff] }
 0x410   :  { %v8561_v8 = vpop.f32.mrf.mxu1  ;;  %v3992_v26 = vpop.f32.mrf.mxu3 }
 0x411   :  { %v4877_v24 = vsel %vm4815_vm2, %v4782_v52, 0.0  ;;  %v4120_v63 = vadd.f32 %v3992_v26, %v3587_v47  ;;  %v3057_v47 = vadd.f32 %v8542_v61, %v7405_v23 }
 0x412   :  { %v8570_v51 = vadd.f32 %v4877_v24, %v4876_v34 }
 0x413   :  { %v4653_v59 = vadd.f32 %v4525_v4, %v4120_v63  ;;  %5573 = vmatmul.msk.f32.gmra.mxu1 %vm142_vm1, %v5508_v48  ;;  %5698 = vmatmul.msk.f32.gmra.mxu2 %vm142_vm1, %v5633_v30  ;;  %v4528_v36 = vpop.f32.mrf.mxu0 }
 0x415   :  { %5827 = vmatmul.msk.f32.gmra.mxu3 %vm142_vm1, %v5762_v58  ;;  %v4719_v35 = vadd.f32 %v8480_v31, %v4653_v59  ;;  %v5512_v59 = vld [vmem:[%s8898_s0 + $0x2f2] sm:$0xff] }
 0x416   :  { %v3462_v1 = vpop.f32.mrf.mxu2  ;;  %5956 = vmatmul.msk.f32.gmra.mxu0 %vm142_vm1, %v5506_v27 }
 0x417   :  { %v3588_v53 = vadd.f32 %v3462_v1, %v3054_v18  ;;  %v4783_v56 = vmax.f32 %v4719_v35, 0.0 }
 0x418   :  { %v8581_v17 = vpop.f32.mrf.mxu1  ;;  %v3995_v50 = vpop.f32.mrf.mxu3 }
 0x419   :  { %v4121_v28 = vadd.f32 %v3995_v50, %v3588_v53  ;;  %v4885_v55 = vsel %vm4815_vm2, %v4783_v56, 0.0  ;;  %v5766_v53 = vld [vmem:[%s8898_s0 + $0x2d9] sm:$0xff]  ;;  %v5638_v56 = vld [vmem:[%s8898_s0 + $0x2e8] sm:$0xff] }
 0x41b   :  { %v4654_v2 = vadd.f32 %v4528_v36, %v4121_v28  ;;  %5574 = vmatmul.msk.f32.gmra.mxu1 %vm142_vm1, %v5509_v62  ;;  %5699 = vmatmul.msk.f32.gmra.mxu2 %vm142_vm1, %v5634_v3  ;;  %v4531_v5 = vpop.f32.mrf.mxu0  ;;  %v5637_v36 = vld [vmem:[%s8898_s0 + $0x2d8] sm:$0xff]  ;;  %v3058_v3 = vadd.f32 %v8561_v8, %v7424_v21 }
 0x41d   :  { %v4720_v27 = vadd.f32 %v8480_v31, %v4654_v2  ;;  %5828 = vmatmul.msk.f32.gmra.mxu3 %vm142_vm1, %v5763_v25 }
 0x41e   :  { %v3465_v40 = vpop.f32.mrf.mxu2  ;;  %5957 = vmatmul.msk.f32.gmra.mxu0 %vm142_vm1, %v5507_v22 }
 0x41f   :  { %v4784_v7 = vmax.f32 %v4720_v27, 0.0  ;;  %v3589_v49 = vadd.f32 %v3465_v40, %v3055_v14  ;;  %v5513_v14 = vld [vmem:[%s8898_s0 + $0x302] sm:$0xff] }
 0x420   :  { %v8600_v32 = vpop.f32.mrf.mxu1  ;;  %v3998_v6 = vpop.f32.mrf.mxu3 }
 0x421   :  { %v4886_v44 = vsel %vm4815_vm2, %v4784_v7, 0.0  ;;  %v4122_v16 = vadd.f32 %v3998_v6, %v3589_v49  ;;  %v5767_v7 = vld [vmem:[%s8898_s0 + $0x2e9] sm:$0xff] }
 0x422   :  { %v4887_v41 = vadd.f32 %v4886_v44, %v4885_v55 }
 0x423   :  { %v4655_v20 = vadd.f32 %v4531_v5, %v4122_v16  ;;  %5575 = vmatmul.msk.f32.gmra.mxu1 %vm142_vm1, %v5510_v9  ;;  %5700 = vmatmul.msk.f32.gmra.mxu2 %vm142_vm1, %v5635_v15  ;;  %v4534_v0 = vpop.f32.mrf.mxu0 }
 0x425   :  { %v4721_v22 = vadd.f32 %v8480_v31, %v4655_v20  ;;  %5829 = vmatmul.msk.f32.gmra.mxu3 %vm142_vm1, %v5764_v39  ;;  %v5514_v39 = vld [vmem:[%s8898_s0 + $0x30a] sm:$0xff] }
 0x426   :  { %v3468_v33 = vpop.f32.mrf.mxu2  ;;  %5958 = vmatmul.msk.f32.gmra.mxu0 %vm142_vm1, %v5508_v48  ;;  %v5639_v20 = vld [vmem:[%s8898_s0 + $0x2f0] sm:$0xff] }
 0x427   :  { %v4785_v19 = vmax.f32 %v4721_v22, 0.0  ;;  %v3590_v37 = vadd.f32 %v3468_v33, %v3056_v54  ;;  %v5768_v22 = vld [vmem:[%s8898_s0 + $0x2f1] sm:$0xff] }
 0x428   :  { %v8620_v34 = vpop.f32.mrf.mxu1  ;;  %v4001_v13 = vpop.f32.mrf.mxu3 }
 0x429   :  { %v4888_v12 = vsel %vm4815_vm2, %v4785_v19, 0.0  ;;  %v4123_v4 = vadd.f32 %v4001_v13, %v3590_v37  ;;  %v3060_v37 = vadd.f32 %v8600_v32, %v7462_v11  ;;  %v8982_v32 = vld [vmem:[#allocation11_spill] sm:$0xff] }
 0x42a   :  { %v4889_v60 = vadd.f32 %v4888_v12, %v4887_v41 }
 0x42b   :  { %v4656_v29 = vadd.f32 %v4534_v0, %v4123_v4  ;;  %5576 = vmatmul.msk.f32.gmra.mxu1 %vm142_vm1, %v5511_v43  ;;  %5701 = vmatmul.msk.f32.gmra.mxu2 %vm142_vm1, %v5636_v42  ;;  %v4537_v52 = vpop.f32.mrf.mxu0 }
 0x42d   :  { %v4722_v26 = vadd.f32 %v8480_v31, %v4656_v29  ;;  %5830 = vmatmul.msk.f32.gmra.mxu3 %vm142_vm1, %v5765_v38  ;;  %v5640_v38 = vld [vmem:[%s8898_s0 + $0x300] sm:$0xff] }
 0x42e   :  { %v3471_v48 = vpop.f32.mrf.mxu2  ;;  %5959 = vmatmul.msk.f32.gmra.mxu0 %vm142_vm1, %v5509_v62 }
 0x42f   :  { %v4786_v30 = vmax.f32 %v4722_v26, 0.0  ;;  %v3591_v24 = vadd.f32 %v3471_v48, %v3057_v47  ;;  %v5769_v26 = vld [vmem:[%s8898_s0 + $0x301] sm:$0xff] }
 0x430   :  { %v2952_v63 = vpop.f32.mrf.mxu1  ;;  %v4004_v58 = vpop.f32.mrf.mxu3 }
 0x431   :  { %v4890_v23 = vsel %vm4815_vm2, %v4786_v30, 0.0  ;;  %v8647_v61 = vadd.f32 %v2952_v63, %v7500_v46  ;;  %v4124_v18 = vadd.f32 %v4004_v58, %v3591_v24  ;;  %v8983_v24 = vld [vmem:[#allocation9_spill] sm:$0xff] }
 0x432   :  { %v4891_v1 = vadd.f32 %v4890_v23, %v4889_v60  ;;  %v5515_v60 = vld [vmem:[%s8898_s0 + $0x31a] sm:$0xff]  ;;  %v3061_v63 = vadd.f32 %v8620_v34, %v8983_v24 }
 0x433   :  { %v4657_v50 = vadd.f32 %v4537_v52, %v4124_v18  ;;  %5577 = vmatmul.msk.f32.gmra.mxu1 %vm142_vm1, %v5512_v59  ;;  %5702 = vmatmul.msk.f32.gmra.mxu2 %vm142_vm1, %v5637_v36  ;;  %v4540_v62 = vpop.f32.mrf.mxu0 }
 0x435   :  { %v4723_v35 = vadd.f32 %v8480_v31, %v4657_v50  ;;  %5831 = vmatmul.msk.f32.gmra.mxu3 %vm142_vm1, %v5766_v53  ;;  %v5516_v53 = vld [vmem:[%s8898_s0 + $0x322] sm:$0xff] }
 0x436   :  { %v3474_v46 = vpop.f32.mrf.mxu2  ;;  %5960 = vmatmul.msk.f32.gmra.mxu0 %vm142_vm1, %v5510_v9  ;;  %v3059_v9 = vadd.f32 %v8581_v17, %v7443_v10  ;;  %v5641_v50 = vld [vmem:[%s8898_s0 + $0x308] sm:$0xff] }
 0x437   :  { %v4787_v28 = vmax.f32 %v4723_v35, 0.0  ;;  %v3592_v25 = vadd.f32 %v3474_v46, %v3058_v3 }
 0x438   :  { %v2955_v2 = vpop.f32.mrf.mxu1  ;;  %v4007_v5 = vpop.f32.mrf.mxu3 }
 0x439   :  { %v4892_v21 = vsel %vm4815_vm2, %v4787_v28, 0.0  ;;  %v8667_v8 = vadd.f32 %v2955_v2, %v7519_v57  ;;  %v4125_v27 = vadd.f32 %v4007_v5, %v3592_v25  ;;  %v5770_v28 = vld [vmem:[%s8898_s0 + $0x309] sm:$0xff] }
 0x43a   :  { %v4893_v40 = vadd.f32 %v4892_v21, %v4891_v1 }
 0x43b   :  { %v4658_v49 = vadd.f32 %v4540_v62, %v4125_v27  ;;  %5578 = vmatmul.msk.f32.gmra.mxu1 %vm142_vm1, %v5513_v14  ;;  %5703 = vmatmul.msk.f32.gmra.mxu2 %vm142_vm1, %v5638_v56  ;;  %v4543_v6 = vpop.f32.mrf.mxu0  ;;  %v8984_v62 = vld [vmem:[#allocation13_spill] sm:$0xff] }
 0x43d   :  { %v4724_v15 = vadd.f32 %v8480_v31, %v4658_v49  ;;  %5832 = vmatmul.msk.f32.gmra.mxu3 %vm142_vm1, %v5767_v7  ;;  %v5517_v7 = vld [vmem:[%s8898_s0 + $0x332] sm:$0xff] }
 0x43e   :  { %v3477_v57 = vpop.f32.mrf.mxu2  ;;  %5961 = vmatmul.msk.f32.gmra.mxu0 %vm142_vm1, %v5511_v43  ;;  %v5642_v49 = vld [vmem:[%s8898_s0 + $0x318] sm:$0xff] }
 0x43f   :  { %v4788_v55 = vmax.f32 %v4724_v15, 0.0  ;;  %v3593_v44 = vadd.f32 %v3477_v57, %v3059_v9  ;;  %v8985_v9 = vld [vmem:[#allocation15_spill] sm:$0xff] }
 0x440   :  { %v2958_v16 = vpop.f32.mrf.mxu1  ;;  %v4010_v41 = vpop.f32.mrf.mxu3 }
 0x441   :  { %v4894_v10 = vsel %vm4815_vm2, %v4788_v55, 0.0  ;;  %v8687_v17 = vadd.f32 %v2958_v16, %v7538_v45  ;;  %v4126_v0 = vadd.f32 %v4010_v41, %v3593_v44 }
 0x442   :  { %v4895_v54 = vadd.f32 %v4894_v10, %v4893_v40 }
 0x443   :  { %v4659_v33 = vadd.f32 %v4543_v6, %v4126_v0  ;;  %5579 = vmatmul.msk.f32.gmra.mxu1 %vm142_vm1, %v5514_v39  ;;  %5704 = vmatmul.msk.f32.gmra.mxu2 %vm142_vm1, %v5639_v20  ;;  %v4546_v19 = vpop.f32.mrf.mxu0 }
 0x445   :  { %v4725_v13 = vadd.f32 %v8480_v31, %v4659_v33  ;;  %5833 = vmatmul.msk.f32.gmra.mxu3 %vm142_vm1, %v5768_v22  ;;  %v5518_v22 = vld [vmem:[%s8898_s0 + $0x33a] sm:$0xff] }
 0x446   :  { %v3480_v45 = vpop.f32.mrf.mxu2  ;;  %5962 = vmatmul.msk.f32.gmra.mxu0 %vm142_vm1, %v5512_v59  ;;  %v5643_v33 = vld [vmem:[%s8898_s0 + $0x320] sm:$0xff] }
 0x447   :  { %v4789_v43 = vmax.f32 %v4725_v13, 0.0  ;;  %v3594_v42 = vadd.f32 %v3480_v45, %v3060_v37  ;;  %v8986_v37 = vld [vmem:[#allocation17_spill] sm:$0xff] }
 0x448   :  { %v2961_v12 = vpop.f32.mrf.mxu1  ;;  %v4013_v4 = vpop.f32.mrf.mxu3 }
 0x449   :  { %v4896_v11 = vsel %vm4815_vm2, %v4789_v43, 0.0  ;;  %v8707_v29 = vadd.f32 %v2961_v12, %v8982_v32  ;;  %v4127_v52 = vadd.f32 %v4013_v4, %v3594_v42 }
 0x44a   :  { %v4897_v47 = vadd.f32 %v4896_v11, %v4895_v54 }
 0x44b   :  { %v4660_v48 = vadd.f32 %v4546_v19, %v4127_v52  ;;  %5580 = vmatmul.msk.f32.gmra.mxu1 %vm142_vm1, %v5515_v60  ;;  %5705 = vmatmul.msk.f32.gmra.mxu2 %vm142_vm1, %v5640_v38  ;;  %v4549_v30 = vpop.f32.mrf.mxu0 }
 0x44d   :  { %v4726_v58 = vadd.f32 %v8480_v31, %v4660_v48  ;;  %5834 = vmatmul.msk.f32.gmra.mxu3 %vm142_vm1, %v5769_v26  ;;  %v8987_v48 = vld [vmem:[#allocation19_spill] sm:$0xff] }
 0x44e   :  { %v3483_v59 = vpop.f32.mrf.mxu2  ;;  %5963 = vmatmul.msk.f32.gmra.mxu0 %vm142_vm1, %v5513_v14 }
 0x44f   :  { %v4790_v36 = vmax.f32 %v4726_v58, 0.0  ;;  %v3595_v23 = vadd.f32 %v3483_v59, %v3061_v63  ;;  %v5773_v58 = vld [vmem:[%s8898_s0 + $0x331] sm:$0xff] }
 0x450   :  { %v2964_v18 = vpop.f32.mrf.mxu1  ;;  %v4016_v1 = vpop.f32.mrf.mxu3 }
 0x451   :  { %v4898_v34 = vsel %vm4815_vm2, %v4790_v36, 0.0  ;;  %v8727_v3 = vadd.f32 %v2964_v18, %v8984_v62  ;;  %v4128_v35 = vadd.f32 %v4016_v1, %v3595_v23 }
 0x452   :  { %v4899_v46 = vadd.f32 %v4898_v34, %v4897_v47  ;;  %v5644_v47 = vld [vmem:[%s8898_s0 + $0x330] sm:$0xff]  ;;  %v5645_v34 = vld [vmem:[%s8898_s0 + $0x338] sm:$0xff] }
 0x453   :  { %v4661_v25 = vadd.f32 %v4549_v30, %v4128_v35  ;;  %5581 = vmatmul.msk.f32.gmra.mxu1 %vm142_vm1, %v5516_v53  ;;  %5706 = vmatmul.msk.f32.gmra.mxu2 %vm142_vm1, %v5641_v50  ;;  %v4552_v2 = vpop.f32.mrf.mxu0  ;;  %v8988_v35 = vld [vmem:[#allocation21_spill] sm:$0xff] }
 0x455   :  { %v4727_v5 = vadd.f32 %v8480_v31, %v4661_v25  ;;  %5835 = vmatmul.msk.f32.gmra.mxu3 %vm142_vm1, %v5770_v28 }
 0x456   :  { %v3486_v14 = vpop.f32.mrf.mxu2  ;;  %5964 = vmatmul.msk.f32.gmra.mxu0 %vm142_vm1, %v5514_v39 }
 0x457   :  { %v4791_v56 = vmax.f32 %v4727_v5, 0.0  ;;  %v3596_v21 = vadd.f32 %v3486_v14, %v8647_v61  ;;  %v5771_v61 = vld [vmem:[%s8898_s0 + $0x319] sm:$0xff] }
 0x458   :  { %v2967_v27 = vpop.f32.mrf.mxu1  ;;  %v4019_v40 = vpop.f32.mrf.mxu3 }
 0x459   :  { %v4900_v6 = vsel %vm4815_vm2, %v4791_v56, 0.0  ;;  %v8746_v15 = vadd.f32 %v2967_v27, %v8985_v9  ;;  %v4129_v57 = vadd.f32 %v4019_v40, %v3596_v21  ;;  %v8989_v9 = vld [vmem:[#allocation23_spill] sm:$0xff] }
 0x45a   :  { %v4901_v55 = vadd.f32 %v4900_v6, %v4899_v46 }
 0x45b   :  { %v4662_v44 = vadd.f32 %v4552_v2, %v4129_v57  ;;  %5582 = vmatmul.msk.f32.gmra.mxu1 %vm142_vm1, %v5517_v7  ;;  %5707 = vmatmul.msk.f32.gmra.mxu2 %vm142_vm1, %v5642_v49  ;;  %v4555_v16 = vpop.f32.mrf.mxu0  ;;  %v5774_v2 = vld [vmem:[%s8898_s0 + $0x339] sm:$0xff]  ;;  %v5646_v49 = vld [vmem:[%s8898_s0 + $0x348] sm:$0xff] }
 0x45d   :  { %v4728_v41 = vadd.f32 %v8480_v31, %v4662_v44  ;;  %5836 = vmatmul.msk.f32.gmra.mxu3 %vm142_vm1, %v5771_v61  ;;  %v5775_v44 = vld [vmem:[%s8898_s0 + $0x349] sm:$0xff] }
 0x45e   :  { %v3489_v39 = vpop.f32.mrf.mxu2  ;;  %5965 = vmatmul.msk.f32.gmra.mxu0 %vm142_vm1, %v5515_v60 }
 0x45f   :  { %v4792_v20 = vmax.f32 %v4728_v41, 0.0  ;;  %v3597_v10 = vadd.f32 %v3489_v39, %v8667_v8  ;;  %v5772_v8 = vld [vmem:[%s8898_s0 + $0x321] sm:$0xff]  ;;  %v5904_v41 = vld [vmem:[%s8898_s0 + $0x34a] sm:$0xff] }
 0x460   :  { %v2970_v0 = vpop.f32.mrf.mxu1  ;;  %v4022_v54 = vpop.f32.mrf.mxu3 }
 0x461   :  { %v4902_v19 = vsel %vm4815_vm2, %v4792_v20, 0.0  ;;  %v8765_v13 = vadd.f32 %v2970_v0, %v8986_v37  ;;  %v4130_v45 = vadd.f32 %v4022_v54, %v3597_v10  ;;  %v8990_v37 = vld [vmem:[#allocation25_spill] sm:$0xff] }
 0x462   :  { %v4903_v43 = vadd.f32 %v4902_v19, %v4901_v55 }
 0x463   :  { %v4663_v42 = vadd.f32 %v4555_v16, %v4130_v45  ;;  %5583 = vmatmul.msk.f32.gmra.mxu1 %vm142_vm1, %v5518_v22  ;;  %5708 = vmatmul.msk.f32.gmra.mxu2 %vm142_vm1, %v5643_v33  ;;  %v4558_v12 = vpop.f32.mrf.mxu0  ;;  %v5647_v33 = vld [vmem:[%s8898_s0 + $0x350] sm:$0xff] }
 0x465   :  { %v4729_v4 = vadd.f32 %v8480_v31, %v4663_v42  ;;  %5837 = vmatmul.msk.f32.gmra.mxu3 %vm142_vm1, %v5772_v8  ;;  %v5776_v42 = vld [vmem:[%s8898_s0 + $0x351] sm:$0xff] }
 0x466   :  { %v3492_v60 = vpop.f32.mrf.mxu2  ;;  %5966 = vmatmul.msk.f32.gmra.mxu0 %vm142_vm1, %v5516_v53 }
 0x467   :  { %v4793_v38 = vmax.f32 %v4729_v4, 0.0  ;;  %v3598_v11 = vadd.f32 %v3492_v60, %v8687_v17  ;;  %v5905_v4 = vld [vmem:[%s8898_s0 + $0x352] sm:$0xff] }
 0x468   :  { %v2973_v32 = vpop.f32.mrf.mxu1  ;;  %v4025_v52 = vpop.f32.mrf.mxu3 }
 0x469   :  { %v4904_v26 = vsel %vm4815_vm2, %v4793_v38, 0.0  ;;  %v8781_v30 = vadd.f32 %v2973_v32, %v8987_v48  ;;  %v4131_v24 = vadd.f32 %v4025_v52, %v3598_v11  ;;  %v8991_v48 = vld [vmem:[#allocation27_spill] sm:$0xff] }
 0x46a   :  { %v4905_v63 = vadd.f32 %v4904_v26, %v4903_v43 }
 0x46b   :  { %v4664_v59 = vadd.f32 %v4558_v12, %v4131_v24  ;;  %5709 = vmatmul.msk.f32.gmra.mxu2 %vm142_vm1, %v5644_v47  ;;  %v4561_v17 = vpop.f32.mrf.mxu0 }
 0x46d   :  { %v4730_v36 = vadd.f32 %v8480_v31, %v4664_v59  ;;  %5838 = vmatmul.msk.f32.gmra.mxu3 %vm142_vm1, %v5773_v58 }
 0x46e   :  { %v3495_v23 = vpop.f32.mrf.mxu2  ;;  %5967 = vmatmul.msk.f32.gmra.mxu0 %vm142_vm1, %v5517_v7 }
 0x46f   :  { %v4794_v18 = vmax.f32 %v4730_v36, 0.0  ;;  %v3599_v1 = vadd.f32 %v3495_v23, %v8707_v29 }
 0x470   :  { %v2976_v53 = vpop.f32.mrf.mxu1  ;;  %v4028_v50 = vpop.f32.mrf.mxu3 }
 0x471   :  { %v4906_v62 = vsel %vm4815_vm2, %v4794_v18, 0.0  ;;  %v8796_v46 = vadd.f32 %v2976_v53, %v8988_v35  ;;  %v4132_v28 = vadd.f32 %v4028_v50, %v3599_v1 }
 0x472   :  { %v4907_v25 = vadd.f32 %v4906_v62, %v4905_v63 }
 0x473   :  { %v4665_v5 = vadd.f32 %v4561_v17, %v4132_v28  ;;  %5710 = vmatmul.msk.f32.gmra.mxu2 %vm142_vm1, %v5645_v34  ;;  %v4564_v29 = vpop.f32.mrf.mxu0 }
 0x475   :  { %v4731_v14 = vadd.f32 %v8480_v31, %v4665_v5  ;;  %5839 = vmatmul.msk.f32.gmra.mxu3 %vm142_vm1, %v5774_v2 }
 0x476   :  { %v3498_v56 = vpop.f32.mrf.mxu2  ;;  %5968 = vmatmul.msk.f32.gmra.mxu0 %vm142_vm1, %v5518_v22 }
 0x477   :  { %v4795_v21 = vmax.f32 %v4731_v14, 0.0  ;;  %v3600_v27 = vadd.f32 %v3498_v56, %v8727_v3 }
 0x478   :  { %v2979_v40 = vpop.f32.mrf.mxu1  ;;  %v4031_v7 = vpop.f32.mrf.mxu3 }
 0x479   :  { %v4908_v6 = vsel %vm4815_vm2, %v4795_v21, 0.0  ;;  %v8811_v57 = vadd.f32 %v2979_v40, %v8989_v9  ;;  %v4133_v55 = vadd.f32 %v4031_v7, %v3600_v27 }
 0x47a   :  { %v4909_v61 = vadd.f32 %v4908_v6, %v4907_v25 }
 0x47b   :  { %v4666_v16 = vadd.f32 %v4564_v29, %v4133_v55  ;;  %5711 = vmatmul.msk.f32.gmra.mxu2 %vm142_vm1, %v5646_v49  ;;  %v4567_v3 = vpop.f32.mrf.mxu0 }
 0x47d   :  { %v4732_v39 = vadd.f32 %v8480_v31, %v4666_v16  ;;  %5840 = vmatmul.msk.f32.gmra.mxu3 %vm142_vm1, %v5775_v44 }
 0x47e   :  { %v3501_v20 = vpop.f32.mrf.mxu2  ;;  %5969 = vmatmul.msk.f32.gmra.mxu0 %vm142_vm1, %v5904_v41 }
 0x47f   :  { %v4796_v10 = vmax.f32 %v4732_v39, 0.0  ;;  %v3601_v0 = vadd.f32 %v3501_v20, %v8746_v15 }
 0x480   :  { %v2982_v54 = vpop.f32.mrf.mxu1  ;;  %v4034_v22 = vpop.f32.mrf.mxu3 }
 0x481   :  { %v4910_v19 = vsel %vm4815_vm2, %v4796_v10, 0.0  ;;  %v3072_v45 = vadd.f32 %v2982_v54, %v8990_v37  ;;  %v4134_v43 = vadd.f32 %v4034_v22, %v3601_v0 }
 0x482   :  { %v4911_v8 = vadd.f32 %v4910_v19, %v4909_v61 }
 0x483   :  { %v4667_v12 = vadd.f32 %v4567_v3, %v4134_v43  ;;  %5712 = vmatmul.msk.f32.gmra.mxu2 %vm142_vm1, %v5647_v33  ;;  %v4570_v15 = vpop.f32.mrf.mxu0 }
 0x485   :  { %v4733_v60 = vadd.f32 %v8480_v31, %v4667_v12  ;;  %5841 = vmatmul.msk.f32.gmra.mxu3 %vm142_vm1, %v5776_v42 }
 0x486   :  { %v3504_v38 = vpop.f32.mrf.mxu2  ;;  %5970 = vmatmul.msk.f32.gmra.mxu0 %vm142_vm1, %v5905_v4 }
 0x487   :  { %v4797_v11 = vmax.f32 %v4733_v60, 0.0  ;;  %v3602_v32 = vadd.f32 %v3504_v38, %v8765_v13 }
 0x488   :  { %v2985_v52 = vpop.f32.mrf.mxu1  ;;  %v4037_v47 = vpop.f32.mrf.mxu3 }
 0x489   :  { %v4912_v26 = vsel %vm4815_vm2, %v4797_v11, 0.0  ;;  %v3073_v24 = vadd.f32 %v2985_v52, %v8991_v48  ;;  %v4135_v63 = vadd.f32 %v4037_v47, %v3602_v32  ;;  %v8992_v52 = vld [vmem:[#allocation29_spill] sm:$0xff] }
 0x48a   :  { %v4913_v58 = vadd.f32 %v4912_v26, %v4911_v8 }
 0x48b   :  { %v4668_v59 = vadd.f32 %v4570_v15, %v4135_v63  ;;  %v4573_v17 = vpop.f32.mrf.mxu0 }
 0x48d   :  { %v4734_v36 = vadd.f32 %v8480_v31, %v4668_v59 }
 0x48e   :  { %v3507_v23 = vpop.f32.mrf.mxu2 }
 0x48f   :  { %v4798_v18 = vmax.f32 %v4734_v36, 0.0  ;;  %v3603_v1 = vadd.f32 %v3507_v23, %v8781_v30 }
 0x490   :  { %v4040_v53 = vpop.f32.mrf.mxu3  ;;  %v2988_v7 = vpop.f32.mrf.mxu1 }
 0x491   :  { %v4914_v50 = vsel %vm4815_vm2, %v4798_v18, 0.0  ;;  %v4136_v13 = vadd.f32 %v4040_v53, %v3603_v1  ;;  %v3074_v47 = vadd.f32 %v2988_v7, %v8992_v52  ;;  %v8993_v53 = vld [vmem:[#allocation31_spill] sm:$0xff] }
 0x492   :  { %v4915_v34 = vadd.f32 %v4914_v50, %v4913_v58 }
 0x493   :  { %v4669_v62 = vadd.f32 %v4573_v17, %v4136_v13  ;;  %v4576_v35 = vpop.f32.mrf.mxu0 }
 0x495   :  { %v4735_v28 = vadd.f32 %v8480_v31, %v4669_v62 }
 0x496   :  { %v3510_v25 = vpop.f32.mrf.mxu2 }
 0x497   :  { %v4799_v2 = vmax.f32 %v4735_v28, 0.0  ;;  %v3604_v5 = vadd.f32 %v3510_v25, %v8796_v46 }
 0x498   :  { %v4043_v29 = vpop.f32.mrf.mxu3  ;;  %v2991_v0 = vpop.f32.mrf.mxu1 }
 0x499   :  { %v4916_v14 = vsel %vm4815_vm2, %v4799_v2, 0.0  ;;  %v4137_v56 = vadd.f32 %v4043_v29, %v3604_v5  ;;  %v3075_v50 = vadd.f32 %v2991_v0, %v8993_v53 }
 0x49a   :  { %v4917_v21 = vadd.f32 %v4916_v14, %v4915_v34 }
 0x49b   :  { %v4670_v27 = vadd.f32 %v4576_v35, %v4137_v56  ;;  %v4579_v30 = vpop.f32.mrf.mxu0  ;;  %v8994_v56 = vld [vmem:[#allocation33_spill] sm:$0xff] }
 0x49d   :  { %v4736_v40 = vadd.f32 %v8480_v31, %v4670_v27 }
 0x49e   :  { %v3513_v49 = vpop.f32.mrf.mxu2 }
 0x49f   :  { %v4800_v6 = vmax.f32 %v4736_v40, 0.0  ;;  %v3605_v9 = vadd.f32 %v3513_v49, %v8811_v57 }
 0x4a0   :  { %v4046_v55 = vpop.f32.mrf.mxu3  ;;  %v2994_v38 = vpop.f32.mrf.mxu1 }
 0x4a1   :  { %v4918_v61 = vsel %vm4815_vm2, %v4800_v6, 0.0  ;;  %v4138_v44 = vadd.f32 %v4046_v55, %v3605_v9 }
 0x4a2   :  { %v4919_v16 = vadd.f32 %v4918_v61, %v4917_v21  ;;  %v3076_v21 = vadd.f32 %v2994_v38, %v8994_v56 }
 0x4a3   :  { %v4671_v46 = vadd.f32 %v4579_v30, %v4138_v44  ;;  %v4582_v3 = vpop.f32.mrf.mxu0 }
 0x4a5   :  { %v4737_v41 = vadd.f32 %v8480_v31, %v4671_v46  ;;  %v8995_v46 = vld [vmem:[#allocation5_spill] sm:$0xff] }
 0x4a6   :  { %v3516_v39 = vpop.f32.mrf.mxu2 }
 0x4a7   :  { %v4801_v20 = vmax.f32 %v4737_v41, 0.0  ;;  %v3606_v10 = vadd.f32 %v3516_v39, %v3072_v45 }
 0x4a8   :  { %v4049_v54 = vpop.f32.mrf.mxu3  ;;  %v2997_v1 = vpop.f32.mrf.mxu1 }
 0x4a9   :  { %v4920_v22 = vsel %vm4815_vm2, %v4801_v20, 0.0  ;;  %v4139_v33 = vadd.f32 %v4049_v54, %v3606_v10 }
 0x4aa   :  { %v4921_v19 = vadd.f32 %v4920_v22, %v4919_v16 }
 0x4ab   :  { %v4672_v37 = vadd.f32 %v4582_v3, %v4139_v33  ;;  %v4585_v57 = vpop.f32.mrf.mxu0  ;;  %v3077_v3 = vadd.f32 %v2997_v1, %v8995_v46 }
 0x4ad   :  { %v4738_v43 = vadd.f32 %v8480_v31, %v4672_v37 }
 0x4ae   :  { %v3519_v8 = vpop.f32.mrf.mxu2 }
 0x4af   :  { %v4802_v42 = vmax.f32 %v4738_v43, 0.0  ;;  %v3607_v12 = vadd.f32 %v3519_v8, %v3073_v24  ;;  %v8996_v43 = vld [vmem:[#allocation6_spill] sm:$0xff] }
 0x4b0   :  { %v4052_v15 = vpop.f32.mrf.mxu3  ;;  %v3000_v30 = vpop.f32.mrf.mxu1 }
 0x4b1   :  { %v4922_v4 = vsel %vm4815_vm2, %v4802_v42, 0.0  ;;  %v4140_v60 = vadd.f32 %v4052_v15, %v3607_v12  ;;  %v3078_v8 = vadd.f32 %v3000_v30, %v8996_v43 }
 0x4b2   :  { %v4923_v11 = vadd.f32 %v4922_v4, %v4921_v19 }
 0x4b3   :  { %v4673_v45 = vadd.f32 %v4585_v57, %v4140_v60  ;;  %v4588_v32 = vpop.f32.mrf.mxu0 }
 0x4b5   :  { %v4739_v26 = vadd.f32 %v8480_v31, %v4673_v45 }
 0x4b6   :  { %v3522_v48 = vpop.f32.mrf.mxu2 }
 0x4b7   :  { %v4803_v63 = vmax.f32 %v4739_v26, 0.0  ;;  %v3608_v58 = vadd.f32 %v3522_v48, %v3074_v47  ;;  %v8997_v26 = vld [vmem:[#allocation7_spill] sm:$0xff] }
 0x4b8   :  { %v4055_v59 = vpop.f32.mrf.mxu3  ;;  %v3003_v0 = vpop.f32.mrf.mxu1 }
 0x4b9   :  { %v4924_v17 = vsel %vm4815_vm2, %v4803_v63, 0.0  ;;  %v4141_v36 = vadd.f32 %v4055_v59, %v3608_v58  ;;  %v3079_v48 = vadd.f32 %v3003_v0, %v8997_v26 }
 0x4ba   :  { %v4925_v24 = vadd.f32 %v4924_v17, %v4923_v11 }
 0x4bb   :  { %v4674_v23 = vadd.f32 %v4588_v32, %v4141_v36  ;;  %v4591_v18 = vpop.f32.mrf.mxu0 }
 0x4bd   :  { %v4740_v13 = vadd.f32 %v8480_v31, %v4674_v23 }
 0x4be   :  { %v3525_v34 = vpop.f32.mrf.mxu2 }
 0x4bf   :  { %v4804_v62 = vmax.f32 %v4740_v13, 0.0  ;;  %v3609_v35 = vadd.f32 %v3525_v34, %v3075_v50  ;;  %v8998_v13 = vld [vmem:[#allocation8_spill] sm:$0xff] }
 0x4c0   :  { %v4058_v28 = vpop.f32.mrf.mxu3  ;;  %v3006_v45 = vpop.f32.mrf.mxu1 }
 0x4c1   :  { %v4926_v25 = vsel %vm4815_vm2, %v4804_v62, 0.0  ;;  %v4142_v2 = vadd.f32 %v4058_v28, %v3609_v35  ;;  %v3080_v34 = vadd.f32 %v3006_v45, %v8998_v13 }
 0x4c2   :  { %v4927_v5 = vadd.f32 %v4926_v25, %v4925_v24 }
 0x4c3   :  { %v4675_v29 = vadd.f32 %v4591_v18, %v4142_v2  ;;  %v4594_v14 = vpop.f32.mrf.mxu0 }
 0x4c5   :  { %v4741_v27 = vadd.f32 %v8480_v31, %v4675_v29 }
 0x4c6   :  { %v3528_v40 = vpop.f32.mrf.mxu2 }
 0x4c7   :  { %v4805_v7 = vmax.f32 %v4741_v27, 0.0  ;;  %v3610_v49 = vadd.f32 %v3528_v40, %v3076_v21  ;;  %v8999_v27 = vld [vmem:[#allocation10_spill] sm:$0xff] }
 0x4c8   :  { %v4061_v6 = vpop.f32.mrf.mxu3  ;;  %v3009_v50 = vpop.f32.mrf.mxu1 }
 0x4c9   :  { %v4928_v9 = vsel %vm4815_vm2, %v4805_v7, 0.0  ;;  %v4143_v55 = vadd.f32 %v4061_v6, %v3610_v49  ;;  %v3081_v30 = vadd.f32 %v3009_v50, %v8999_v27 }
 0x4ca   :  { %v4929_v61 = vadd.f32 %v4928_v9, %v4927_v5 }
 0x4cb   :  { %v4676_v44 = vadd.f32 %v4594_v14, %v4143_v55  ;;  %v4597_v16 = vpop.f32.mrf.mxu0 }
 0x4cd   :  { %v4742_v41 = vadd.f32 %v8480_v31, %v4676_v44 }
 0x4ce   :  { %v3531_v39 = vpop.f32.mrf.mxu2 }
 0x4cf   :  { %v4806_v20 = vmax.f32 %v4742_v41, 0.0  ;;  %v3611_v10 = vadd.f32 %v3531_v39, %v3077_v3  ;;  %v9000_v41 = vld [vmem:[#allocation12_spill] sm:$0xff] }
 0x4d0   :  { %v4064_v54 = vpop.f32.mrf.mxu3  ;;  %v3012_v7 = vpop.f32.mrf.mxu1 }
 0x4d1   :  { %v4930_v22 = vsel %vm4815_vm2, %v4806_v20, 0.0  ;;  %v4144_v33 = vadd.f32 %v4064_v54, %v3611_v10  ;;  %v3082_v39 = vadd.f32 %v3012_v7, %v9000_v41  ;;  %v5979_v20 = vld [vmem:[%s8899_s1 + $0x24] ss:$0 sm:$0xff] }
 0x4d2   :  { %v4931_v19 = vadd.f32 %v4930_v22, %v4929_v61 }
 0x4d3   :  { %v4677_v37 = vadd.f32 %v4597_v16, %v4144_v33  ;;  %v4600_v57 = vpop.f32.mrf.mxu0 }
 0x4d5   :  { %v4743_v42 = vadd.f32 %v8480_v31, %v4677_v37 }
 0x4d6   :  { %v3534_v12 = vpop.f32.mrf.mxu2 }
 0x4d7   :  { %v4807_v15 = vmax.f32 %v4743_v42, 0.0  ;;  %v3612_v4 = vadd.f32 %v3534_v12, %v3078_v8  ;;  %v9001_v8 = vld [vmem:[#allocation14_spill] sm:$0xff] }
 0x4d8   :  { %v4067_v60 = vpop.f32.mrf.mxu3  ;;  %v3015_v22 = vpop.f32.mrf.mxu1 }
 0x4d9   :  { %v4932_v38 = vsel %vm4815_vm2, %v4807_v15, 0.0  ;;  %v4145_v11 = vadd.f32 %v4067_v60, %v3612_v4  ;;  %v3083_v42 = vadd.f32 %v3015_v22, %v9001_v8 }
 0x4da   :  { %v4933_v32 = vadd.f32 %v4932_v38, %v4931_v19 }
 0x4db   :  { %v4678_v52 = vadd.f32 %v4600_v57, %v4145_v11  ;;  %v4603_v47 = vpop.f32.mrf.mxu0 }
 0x4dd   :  { %v4744_v63 = vadd.f32 %v8480_v31, %v4678_v52 }
 0x4de   :  { %v3537_v58 = vpop.f32.mrf.mxu2 }
 0x4df   :  { %v4808_v59 = vmax.f32 %v4744_v63, 0.0  ;;  %v3613_v17 = vadd.f32 %v3537_v58, %v3079_v48  ;;  %v9002_v48 = vld [vmem:[#allocation16_spill] sm:$0xff] }
 0x4e0   :  { %v4070_v36 = vpop.f32.mrf.mxu3  ;;  %v3018_v52 = vpop.f32.mrf.mxu1 }
 0x4e1   :  { %v4934_v24 = vsel %vm4815_vm2, %v4808_v59, 0.0  ;;  %v4146_v23 = vadd.f32 %v4070_v36, %v3613_v17  ;;  %v3084_v63 = vadd.f32 %v3018_v52, %v9002_v48 }
 0x4e2   :  { %v4935_v18 = vadd.f32 %v4934_v24, %v4933_v32  ;;  %v4879_v24 = vrot.slane %v8570_v51, 4 }
 0x4e3   :  { %v4679_v1 = vadd.f32 %v4603_v47, %v4146_v23  ;;  %v4606_v53 = vpop.f32.mrf.mxu0 }
 0x4e5   :  { %v4745_v62 = vadd.f32 %v8480_v31, %v4679_v1 }
 0x4e6   :  { %v3540_v35 = vpop.f32.mrf.mxu2 }
 0x4e7   :  { %v4809_v28 = vmax.f32 %v4745_v62, 0.0  ;;  %v3614_v25 = vadd.f32 %v3540_v35, %v3080_v34  ;;  %v4880_v34 = vadd.f32 %v4879_v24, %v8570_v51  ;;  %v5977_v51 = vld [vmem:[%s8899_s1 + $0x30] ss:$0 sm:$0xff] }
 0x4e8   :  { %v4073_v2 = vpop.f32.mrf.mxu3 }
 0x4e9   :  { %v4936_v5 = vsel %vm4815_vm2, %v4809_v28, 0.0  ;;  %v4147_v29 = vadd.f32 %v4073_v2, %v3614_v25  ;;  %v4881_v28 = vrot.slane %v4880_v34, 2 }
 0x4ea   :  { %v4937_v14 = vadd.f32 %v4936_v5, %v4935_v18 }
 0x4eb   :  { %v4680_v56 = vadd.f32 %v4606_v53, %v4147_v29  ;;  %v4609_v21 = vpop.f32.mrf.mxu0  ;;  %v4882_v5 = vadd.f32 %v4881_v28, %v4880_v34 }
 0x4ed   :  { %v4746_v40 = vadd.f32 %v8480_v31, %v4680_v56  ;;  %v4883_v56 = vrot.slane %v4882_v5, 1 }
 0x4ee   :  { %v3543_v49 = vpop.f32.mrf.mxu2 }
 0x4ef   :  { %v4810_v6 = vmax.f32 %v4746_v40, 0.0  ;;  %v3615_v9 = vadd.f32 %v3543_v49, %v3081_v30  ;;  %v4884_v30 = vadd.f32 %v4883_v56, %v4882_v5 }
 0x4f0   :  { %v4076_v55 = vpop.f32.mrf.mxu3 }
 0x4f1   :  { %v4938_v61 = vsel %vm4815_vm2, %v4810_v6, 0.0  ;;  %v4148_v44 = vadd.f32 %v4076_v55, %v3615_v9  ;;  %v4954_v6 = vmul.f32 0.00390625, %v4884_v30 }
 0x4f2   :  { %v4939_v16 = vadd.f32 %v4938_v61, %v4937_v14 }
 0x4f3   :  { %v4681_v46 = vadd.f32 %v4609_v21, %v4148_v44  ;;  %v4612_v3 = vpop.f32.mrf.mxu0 }
 0x4f5   :  { %v4747_v10 = vadd.f32 %v5979_v20, %v4681_v46 }
 0x4f6   :  { %v3546_v0 = vpop.f32.mrf.mxu2 }
 0x4f7   :  { %v4811_v31 = vmax.f32 %v4747_v10, 0.0  ;;  %v3616_v54 = vadd.f32 %v3546_v0, %v3082_v39 }
 0x4f8   :  { %v4079_v33 = vpop.f32.mrf.mxu3 }
 0x4f9   :  { %v4940_v19 = vsel %vm4815_vm2, %v4811_v31, 0.0  ;;  %v4149_v37 = vadd.f32 %v4079_v33, %v3616_v54 }
 0x4fa   :  { %v4941_v57 = vadd.f32 %v4940_v19, %v4939_v16 }
 0x4fb   :  { %v4682_v43 = vadd.f32 %v4612_v3, %v4149_v37  ;;  %v4615_v4 = vpop.f32.mrf.mxu0 }
 0x4fd   :  { %v4748_v12 = vadd.f32 %v5979_v20, %v4682_v43 }
 0x4fe   :  { %v3549_v15 = vpop.f32.mrf.mxu2 }
 0x4ff   :  { %v4812_v60 = vmax.f32 %v4748_v12, 0.0  ;;  %v3617_v38 = vadd.f32 %v3549_v15, %v3083_v42 }
 0x500   :  { %v4082_v11 = vpop.f32.mrf.mxu3 }
 0x501   :  { %v4942_v45 = vsel %vm4815_vm2, %v4812_v60, 0.0  ;;  %v4150_v32 = vadd.f32 %v4082_v11, %v3617_v38 }
 0x502   :  { %v4943_v47 = vadd.f32 %v4942_v45, %v4941_v57 }
 0x503   :  { %v4683_v26 = vadd.f32 %v4615_v4, %v4150_v32  ;;  %v4618_v18 = vpop.f32.mrf.mxu0 }
 0x505   :  { %v4749_v58 = vadd.f32 %v5979_v20, %v4683_v26 }
 0x506   :  { %v3552_v59 = vpop.f32.mrf.mxu2 }
 0x507   :  { %v4813_v17 = vmax.f32 %v4749_v58, 0.0  ;;  %v3618_v36 = vadd.f32 %v3552_v59, %v3084_v63 }
 0x508   :  { %v4085_v23 = vpop.f32.mrf.mxu3 }
 0x509   :  { %v4944_v1 = vsel %vm4815_vm2, %v4813_v17, 0.0  ;;  %v4151_v53 = vadd.f32 %v4085_v23, %v3618_v36 }
 0x50a   :  { %v4945_v50 = vadd.f32 %v4944_v1, %v4943_v47 }
 0x50b   :  { %v4684_v13 = vadd.f32 %v4618_v18, %v4151_v53 }
 0x50d   :  { %v4750_v62 = vadd.f32 %v5979_v20, %v4684_v13 }
 0x50f   :  { %v4814_v35 = vmax.f32 %v4750_v62, 0.0 }
 0x511   :  { %v4946_v25 = vsel %vm4815_vm2, %v4814_v35, 0.0 }
 0x512   :  { %v4947_v2 = vadd.f32 %v4946_v25, %v4945_v50 }
 0x514   :  { %v4948_v29 = vrot.slane %v4947_v2, 4 }
 0x516   :  { %v4949_v14 = vadd.f32 %v4948_v29, %v4947_v2 }
 0x518   :  { %v4950_v21 = vrot.slane %v4949_v14, 2 }
 0x51a   :  { %v4951_v27 = vadd.f32 %v4950_v21, %v4949_v14 }
 0x51c   :  { %v4952_v40 = vrot.slane %v4951_v27, 1 }
 0x51e   :  { %v4953_v7 = vadd.f32 %v4952_v40, %v4951_v27 }
 0x520   :  { %v4955_v49 = vmul.f32 0.00390625, %v4953_v7 }
 0x522   :  { %v4962_v9 = vsel %vm4961_vm3, %v4955_v49, %v4954_v6 }
 0x523   :  { %5971 = vmatmul.msk.f32.vlgmr.msrb.gmra.mxu1 %vm4815_vm2, %v4962_v9 }
 0x5a0   :  { %v4982_v55 = vpop.f32.mrf.mxu1 }
 0x5a1   :  { %v4983_v61 = vadd.f32 %v5977_v51, %v4982_v55 }
 0x5a3   :  { %4985 = vst [vmem:[#allocation2] sm:$0x3] %v4983_v61 }
 0x5a4   :  { %4996 = dma.vmem_to_hbm [thread:$0]  %s4992_s25, 32, %s4994_s28, [#allocation3]  }
 0x5a5   :  { %6004 = dma.done.wait [#allocation3], 32  }
 0x5a6   :  { %6005 = vsyncadd [#allocation3], 4294967264 }
 0x5a7   :  { %5001 = vsyncpa [#allocation3], 1 }

</bundles_post_ra>
